<compile_context>
chip_gen: v7x
topology: tpu7x:2x2x1
jax: 0.10.0
libtpu: 0.0.40
codegen_flags: <defaults>
</compile_context>

<pallas_src>
import jax
import jax.numpy as jnp
import numpy as np
from jax import lax
from jax.experimental import pallas as pl
from jax.experimental.pallas import tpu as pltpu


# --------------------------------------------------------------------------------------
# Fused kernel: one batch element per grid step.  Activation layout inside the kernel is
# channels-last (channels on the TPU lane dim); the "flatten" reorder is absorbed into the
# pre-permuted FC weight, so the kernel never reshapes across the lane dimension.
# --------------------------------------------------------------------------------------
def _cnn_fused_kernel(x_ref, w1_ref, s1_ref, sh1_ref, w2_ref, s2_ref, sh2_ref,
                      wfc_ref, bfc_ref, o_ref, xp1, xp2):
    # x_ref:   (1, H, W, Cin)           one image, NHWC
    # w1_ref:  (9*Cin, C1)              conv1 weights, rows ordered (dy, dx, ci)
    # s1/sh1:  (1, C1)                  folded BN1 scale / shift (includes conv bias)
    # w2_ref:  (9*C1, C2)               conv2 weights, rows ordered (dy, dx, ci)
    # s2/sh2:  (1, C2)
    # wfc_ref: (3, H//4, W-2, C2)       folded fc1@fc2@fc3 weight, permuted to kernel layout,
    #                                   zero everywhere except raw columns w % 4 == 0
    # bfc_ref: (1, 3)                   folded fc bias
    # o_ref:   (1, 1, 3)
    # xp1:     (H+2, W+2, Cin) scratch  zero-padded conv1 input
    # xp2:     (H//2+2, W+4, C1) scratch  zero-padded (row-pooled, col-pair-maxed) conv2 input
    _, H, W, Cin = x_ref.shape
    C1 = w1_ref.shape[1]
    C2 = w2_ref.shape[1]
    H1 = H // 2
    H2 = H1 // 2
    NOUT = o_ref.shape[2]

    # ---------------- stage 1: pad -> conv1 (single im2col dot) -> BN -> ReLU ----------
    xp1[...] = jnp.zeros_like(xp1)
    xp1[1:H + 1, 1:W + 1, :] = x_ref[0]
    cols1 = [xp1[dy:dy + H, dx:dx + W, :].reshape(H * W, Cin)
             for dy in range(3) for dx in range(3)]
    y1 = jnp.dot(jnp.concatenate(cols1, axis=1), w1_ref[...],
                 preferred_element_type=jnp.float32)                 # (H*W, C1)
    y1 = jnp.maximum(y1 * s1_ref[...] + sh1_ref[...], 0.0)

    # ---------------- pool1 (2x2 / stride 2), value level ------------------------------
    r1 = y1.reshape(H1, 2, W, C1)                                    # rows = (h//2, h%2, w)
    hp = jnp.maximum(r1[:, 0], r1[:, 1])                             # (H1, W, C1)  row-pooled
    # pairwise max along w; valid pooled value sits at every even raw column
    wm = jnp.maximum(hp[:, 0:W - 1, :], hp[:, 1:W, :])               # (H1, W-1, C1)

    # ---------------- stage 2: pad -> conv2 (single dot, taps dilated x2 in w) ---------
    # xp2[1+i, 2+w, :] = wm[i, w, :]; valid pooled1(i, j) lives at column 2 + 2*j, the
    # zero border covers rows 0 / H1+1 and even columns 0 / W+2.
    xp2[...] = jnp.zeros_like(xp2)
    xp2[1:H1 + 1, 2:W + 1, :] = wm
    cols2 = [xp2[dy:dy + H1, 2 * dx:2 * dx + W, :].reshape(H1 * W, C1)
             for dy in range(3) for dx in range(3)]
    y2 = jnp.dot(jnp.concatenate(cols2, axis=1), w2_ref[...],
                 preferred_element_type=jnp.float32)                 # (H1*W, C2)
    y2 = jnp.maximum(y2 * s2_ref[...] + sh2_ref[...], 0.0)           # valid at even raw w

    # ---------------- pool2 -------------------------------------------------------------
    r2 = y2.reshape(H2, 2, W, C2)
    g = jnp.maximum(r2[:, 0], r2[:, 1])                              # (H2, W, C2)
    # true column pairs are raw columns (4t, 4t+2); valid result at raw w % 4 == 0
    q = jnp.maximum(g[:, 0:W - 2, :], g[:, 2:W, :])                  # (H2, W-2, C2)

    # ---------------- folded fc1 -> fc2 -> fc3 (single affine, VPU/XLU contraction) -----
    # wfc is zero at the garbage (non-multiple-of-4) columns, so no masking is needed.
    for n in range(NOUT):
        prod = q * wfc_ref[n]                                        # (H2, W-2, C2)
        t = jnp.sum(prod, axis=0)                                    # (W-2, C2)
        t = jnp.sum(t, axis=0, keepdims=True)                        # (1, C2)
        t = jnp.sum(t, axis=1, keepdims=True)                        # (1, 1)
        o_ref[0, :, n:n + 1] = (t + bfc_ref[:, n:n + 1]).astype(o_ref.dtype)


# --------------------------------------------------------------------------------------
# Host-side parameter folding / layout prep (tiny, hoistable ops).
# --------------------------------------------------------------------------------------
def _fold_bn(conv_b, gamma, beta, mean, var, eps=1e-5):
    s = gamma / jnp.sqrt(var + eps)
    shift = (conv_b - mean) * s + beta
    return s.reshape(1, -1), shift.reshape(1, -1)


def prepare_kernel_params(params, H, W):
    C1 = params["conv1_w"].shape[0]
    C2 = params["conv2_w"].shape[0]
    Cin = params["conv1_w"].shape[1]
    H2, W2 = H // 4, W // 4

    # conv weights OIHW -> (kh, kw, ci, co) -> (9*ci, co), matching the kernel's im2col order
    w1m = jnp.transpose(params["conv1_w"], (2, 3, 1, 0)).reshape(9 * Cin, C1)
    w2m = jnp.transpose(params["conv2_w"], (2, 3, 1, 0)).reshape(9 * C1, C2)

    s1, sh1 = _fold_bn(params["conv1_b"], params["bn1_gamma"], params["bn1_beta"],
                       params["bn1_mean"], params["bn1_var"])
    s2, sh2 = _fold_bn(params["conv2_b"], params["bn2_gamma"], params["bn2_beta"],
                       params["bn2_mean"], params["bn2_var"])

    # fold the activation-free MLP into a single (C2*H2*W2, 3) affine map
    w1t, w2t, w3t = params["fc1_w"].T, params["fc2_w"].T, params["fc3_w"].T
    wfold = w1t @ w2t @ w3t                                               # (128, 3)
    bfold = (params["fc1_b"] @ w2t + params["fc2_b"]) @ w3t + params["fc3_b"]
    nout = wfold.shape[1]

    # rows of wfold are in PyTorch x.view(B,-1) order (c, h, w); permute to the kernel's
    # (h, raw_w, c) layout and dilate w by 4 (valid pooled2 columns sit at raw w % 4 == 0)
    wperm = jnp.transpose(wfold.reshape(C2, H2, W2, nout), (3, 1, 2, 0))  # (3, H2, W2, C2)
    wexp = jnp.zeros((nout, H2, W - 2, C2), jnp.float32).at[:, :, ::4, :].set(wperm)

    return dict(w1=w1m, s1=s1, sh1=sh1, w2=w2m, s2=s2, sh2=sh2,
                wfc=wexp, bfc=bfold.reshape(1, nout))


def cnn_forward(params, x_nchw):
    x = jnp.transpose(x_nchw, (0, 2, 3, 1)).astype(jnp.float32)           # NCHW -> NHWC
    B, H, W, Cin = x.shape
    p = prepare_kernel_params(params, H, W)
    C1 = p["w1"].shape[1]
    H1 = H // 2
    nout = p["bfc"].shape[1]

    out = pl.pallas_call(
        _cnn_fused_kernel,
        out_shape=jax.ShapeDtypeStruct((B, 1, nout), jnp.float32),
        grid=(B,),
        in_specs=[
            pl.BlockSpec((1, H, W, Cin), lambda b: (b, 0, 0, 0)),
            pl.BlockSpec(p["w1"].shape, lambda b: (0, 0)),
            pl.BlockSpec(p["s1"].shape, lambda b: (0, 0)),
            pl.BlockSpec(p["sh1"].shape, lambda b: (0, 0)),
            pl.BlockSpec(p["w2"].shape, lambda b: (0, 0)),
            pl.BlockSpec(p["s2"].shape, lambda b: (0, 0)),
            pl.BlockSpec(p["sh2"].shape, lambda b: (0, 0)),
            pl.BlockSpec(p["wfc"].shape, lambda b: (0, 0, 0, 0)),
            pl.BlockSpec(p["bfc"].shape, lambda b: (0, 0)),
        ],
        out_specs=pl.BlockSpec((1, 1, nout), lambda b: (b, 0, 0)),
        scratch_shapes=[
            pltpu.VMEM((H + 2, W + 2, Cin), jnp.float32),     # padded conv1 input
            pltpu.VMEM((H1 + 2, W + 4, C1), jnp.float32),     # padded pooled1 (raw-w) input
        ],
        compiler_params=pltpu.CompilerParams(dimension_semantics=("parallel",)),
    )(x, p["w1"], p["s1"], p["sh1"], p["w2"], p["s2"], p["sh2"], p["wfc"], p["bfc"])
    return out.reshape(B, nout)


# --------------------------------------------------------------------------------------
# Parameters (deterministic, PyTorch-style shapes).
# --------------------------------------------------------------------------------------
def init_params(key):
    ks = jax.random.split(key, 10)

    def u(k, shape, fan_in):
        bound = 1.0 / np.sqrt(fan_in)
        return jax.random.uniform(k, shape, jnp.float32, -bound, bound)

    p = {
        "conv1_w": u(ks[0], (4, 2, 3, 3), 2 * 9),   # OIHW, like nn.Conv2d
        "conv1_b": u(ks[1], (4,), 2 * 9),
        "conv2_w": u(ks[2], (8, 4, 3, 3), 4 * 9),
        "conv2_b": u(ks[3], (8,), 4 * 9),
        "fc1_w": u(ks[4], (32, 128), 128), "fc1_b": u(ks[5], (32,), 128),
        "fc2_w": u(ks[6], (12, 32), 32),   "fc2_b": u(ks[7], (12,), 32),
        "fc3_w": u(ks[8], (3, 12), 12),    "fc3_b": u(ks[9], (3,), 12),
    }
    # Freshly constructed BatchNorm2d state: gamma=1, beta=0, running_mean=0, running_var=1.
    for name, c in (("bn1", 4), ("bn2", 8)):
        p[f"{name}_gamma"] = jnp.ones((c,), jnp.float32)
        p[f"{name}_beta"] = jnp.zeros((c,), jnp.float32)
        p[f"{name}_mean"] = jnp.zeros((c,), jnp.float32)
        p[f"{name}_var"] = jnp.ones((c,), jnp.float32)
    return p


# --------------------------------------------------------------------------------------
# Pure-JAX reference for correctness checking.
# --------------------------------------------------------------------------------------
def cnn_forward_ref(params, x_nchw):
    def conv(x, w, b):
        y = lax.conv_general_dilated(x, w, (1, 1), "SAME",
                                     dimension_numbers=("NCHW", "OIHW", "NCHW"))
        return y + b.reshape(1, -1, 1, 1)

    def bn(x, g, be, m, v, eps=1e-5):
        return ((x - m.reshape(1, -1, 1, 1)) / jnp.sqrt(v.reshape(1, -1, 1, 1) + eps)
                * g.reshape(1, -1, 1, 1) + be.reshape(1, -1, 1, 1))

    def pool(x):
        B, C, H, W = x.shape
        return x.reshape(B, C, H // 2, 2, W // 2, 2).max(axis=(3, 5))

    h = pool(jnp.maximum(bn(conv(x_nchw, params["conv1_w"], params["conv1_b"]),
                            params["bn1_gamma"], params["bn1_beta"],
                            params["bn1_mean"], params["bn1_var"]), 0.0))
    h = pool(jnp.maximum(bn(conv(h, params["conv2_w"], params["conv2_b"]),
                            params["bn2_gamma"], params["bn2_beta"],
                            params["bn2_mean"], params["bn2_var"]), 0.0))
    h = h.reshape(h.shape[0], -1)
    h = h @ params["fc1_w"].T + params["fc1_b"]
    h = h @ params["fc2_w"].T + params["fc2_b"]
    h = h @ params["fc3_w"].T + params["fc3_b"]
    return h


if __name__ == "__main__":
    key = jax.random.PRNGKey(0)
    pkey, xkey = jax.random.split(key)
    params = init_params(pkey)
    # Input (NCHW, like PyTorch): fc1 in_features=128 = 8*(16/4)*(16/4) => 16x16 spatial.
    x = jax.random.normal(xkey, (2, 2, 16, 16), jnp.float32)

    out = jax.jit(cnn_forward)(params, x)
    out = jax.block_until_ready(out)

    ref = cnn_forward_ref(params, x)
    assert out.shape == (2, 3), out.shape
    if not np.allclose(np.asarray(out), np.asarray(ref), rtol=1e-3, atol=1e-3):
        raise AssertionError("Pallas kernel output mismatch vs pure-JAX reference")
    print("KERNEL_OK")
</pallas_src>

<mosaic_0001>
module attributes {stable_mosaic.version = 11 : i64} {
  func.func @_cnn_fused_kernel(%arg0: i32, %arg1: memref<1x16x16x2xf32, #tpu.memory_space<vmem>>, %arg2: memref<18x4xf32, #tpu.memory_space<vmem>>, %arg3: memref<1x4xf32, #tpu.memory_space<vmem>>, %arg4: memref<1x4xf32, #tpu.memory_space<vmem>>, %arg5: memref<36x8xf32, #tpu.memory_space<vmem>>, %arg6: memref<1x8xf32, #tpu.memory_space<vmem>>, %arg7: memref<1x8xf32, #tpu.memory_space<vmem>>, %arg8: memref<3x4x14x8xf32, #tpu.memory_space<vmem>>, %arg9: memref<1x3xf32, #tpu.memory_space<vmem>>, %arg10: memref<1x1x3xf32, #tpu.memory_space<vmem>>, %arg11: memref<18x18x2xf32, #tpu.memory_space<vmem>>, %arg12: memref<10x20x4xf32, #tpu.memory_space<vmem>>) attributes {dimension_semantics = [#tpu.dimension_semantics<parallel>], iteration_bounds = array<i64: 2>, scalar_prefetch = 0 : i64, scratch_operands = 2 : i64, tpu.core_type = #tpu.core_type<tc>, window_params = [{transform_indices = @transform_0, window_bounds = array<i64: 1, 16, 16, 2>}, {pipeline_mode = #tpu.pipeline_mode<synchronous>, transform_indices = @transform_1, window_bounds = array<i64: 18, 4>}, {pipeline_mode = #tpu.pipeline_mode<synchronous>, transform_indices = @transform_2, window_bounds = array<i64: 1, 4>}, {pipeline_mode = #tpu.pipeline_mode<synchronous>, transform_indices = @transform_3, window_bounds = array<i64: 1, 4>}, {pipeline_mode = #tpu.pipeline_mode<synchronous>, transform_indices = @transform_4, window_bounds = array<i64: 36, 8>}, {pipeline_mode = #tpu.pipeline_mode<synchronous>, transform_indices = @transform_5, window_bounds = array<i64: 1, 8>}, {pipeline_mode = #tpu.pipeline_mode<synchronous>, transform_indices = @transform_6, window_bounds = array<i64: 1, 8>}, {pipeline_mode = #tpu.pipeline_mode<synchronous>, transform_indices = @transform_7, window_bounds = array<i64: 3, 4, 14, 8>}, {pipeline_mode = #tpu.pipeline_mode<synchronous>, transform_indices = @transform_8, window_bounds = array<i64: 1, 3>}, {transform_indices = @transform_9, window_bounds = array<i64: 1, 1, 3>}]} {
    %cst = arith.constant 0.000000e+00 : f32
    %0 = vector.broadcast %cst : f32 to vector<18x18x2xf32>
    %c0 = arith.constant 0 : index
    %c0_0 = arith.constant 0 : index
    %c0_1 = arith.constant 0 : index
    %1 = vector.load %arg11[%c0, %c0_0, %c0_1] : memref<18x18x2xf32, #tpu.memory_space<vmem>>, vector<18x18x2xf32>
    tpu.vector_store %arg11[%c0, %c0_0, %c0_1], %0 {strides = array<i32>} : memref<18x18x2xf32, #tpu.memory_space<vmem>>, vector<18x18x2xf32>,
    %c0_2 = arith.constant 0 : index
    %c0_3 = arith.constant 0 : index
    %c0_4 = arith.constant 0 : index
    %c0_5 = arith.constant 0 : index
    %2 = vector.load %arg1[%c0_2, %c0_3, %c0_4, %c0_5] : memref<1x16x16x2xf32, #tpu.memory_space<vmem>>, vector<1x16x16x2xf32>
    %3 = vector.shape_cast %2 : vector<1x16x16x2xf32> to vector<16x16x2xf32>
    %c1 = arith.constant 1 : index
    %c1_6 = arith.constant 1 : index
    %c0_7 = arith.constant 0 : index
    %4 = vector.load %arg11[%c1, %c1_6, %c0_7] : memref<18x18x2xf32, #tpu.memory_space<vmem>>, vector<16x16x2xf32>
    tpu.vector_store %arg11[%c1, %c1_6, %c0_7], %3 {strides = array<i32>} : memref<18x18x2xf32, #tpu.memory_space<vmem>>, vector<16x16x2xf32>,
    %c0_8 = arith.constant 0 : index
    %c0_9 = arith.constant 0 : index
    %c0_10 = arith.constant 0 : index
    %5 = vector.load %arg11[%c0_8, %c0_9, %c0_10] : memref<18x18x2xf32, #tpu.memory_space<vmem>>, vector<16x16x2xf32>
    %6 = vector.shape_cast %5 : vector<16x16x2xf32> to vector<256x2xf32>
    %c0_11 = arith.constant 0 : index
    %c1_12 = arith.constant 1 : index
    %c0_13 = arith.constant 0 : index
    %7 = vector.load %arg11[%c0_11, %c1_12, %c0_13] : memref<18x18x2xf32, #tpu.memory_space<vmem>>, vector<16x16x2xf32>
    %8 = vector.shape_cast %7 : vector<16x16x2xf32> to vector<256x2xf32>
    %c0_14 = arith.constant 0 : index
    %c2 = arith.constant 2 : index
    %c0_15 = arith.constant 0 : index
    %9 = vector.load %arg11[%c0_14, %c2, %c0_15] : memref<18x18x2xf32, #tpu.memory_space<vmem>>, vector<16x16x2xf32>
    %10 = vector.shape_cast %9 : vector<16x16x2xf32> to vector<256x2xf32>
    %c1_16 = arith.constant 1 : index
    %c0_17 = arith.constant 0 : index
    %c0_18 = arith.constant 0 : index
    %11 = vector.load %arg11[%c1_16, %c0_17, %c0_18] : memref<18x18x2xf32, #tpu.memory_space<vmem>>, vector<16x16x2xf32>
    %12 = vector.shape_cast %11 : vector<16x16x2xf32> to vector<256x2xf32>
    %c1_19 = arith.constant 1 : index
    %c1_20 = arith.constant 1 : index
    %c0_21 = arith.constant 0 : index
    %13 = vector.load %arg11[%c1_19, %c1_20, %c0_21] : memref<18x18x2xf32, #tpu.memory_space<vmem>>, vector<16x16x2xf32>
    %14 = vector.shape_cast %13 : vector<16x16x2xf32> to vector<256x2xf32>
    %c1_22 = arith.constant 1 : index
    %c2_23 = arith.constant 2 : index
    %c0_24 = arith.constant 0 : index
    %15 = vector.load %arg11[%c1_22, %c2_23, %c0_24] : memref<18x18x2xf32, #tpu.memory_space<vmem>>, vector<16x16x2xf32>
    %16 = vector.shape_cast %15 : vector<16x16x2xf32> to vector<256x2xf32>
    %c2_25 = arith.constant 2 : index
    %c0_26 = arith.constant 0 : index
    %c0_27 = arith.constant 0 : index
    %17 = vector.load %arg11[%c2_25, %c0_26, %c0_27] : memref<18x18x2xf32, #tpu.memory_space<vmem>>, vector<16x16x2xf32>
    %18 = vector.shape_cast %17 : vector<16x16x2xf32> to vector<256x2xf32>
    %c2_28 = arith.constant 2 : index
    %c1_29 = arith.constant 1 : index
    %c0_30 = arith.constant 0 : index
    %19 = vector.load %arg11[%c2_28, %c1_29, %c0_30] : memref<18x18x2xf32, #tpu.memory_space<vmem>>, vector<16x16x2xf32>
    %20 = vector.shape_cast %19 : vector<16x16x2xf32> to vector<256x2xf32>
    %c2_31 = arith.constant 2 : index
    %c2_32 = arith.constant 2 : index
    %c0_33 = arith.constant 0 : index
    %21 = vector.load %arg11[%c2_31, %c2_32, %c0_33] : memref<18x18x2xf32, #tpu.memory_space<vmem>>, vector<16x16x2xf32>
    %22 = vector.shape_cast %21 : vector<16x16x2xf32> to vector<256x2xf32>
    %23 = tpu.concatenate %6, %8, %10, %12, %14, %16, %18, %20, %22 in 1 : vector<256x2xf32>, vector<256x2xf32>, vector<256x2xf32>, vector<256x2xf32>, vector<256x2xf32>, vector<256x2xf32>, vector<256x2xf32>, vector<256x2xf32>, vector<256x2xf32> -> vector<256x18xf32>
    %c0_34 = arith.constant 0 : index
    %c0_35 = arith.constant 0 : index
    %24 = vector.load %arg2[%c0_34, %c0_35] : memref<18x4xf32, #tpu.memory_space<vmem>>, vector<18x4xf32>
    %cst_36 = arith.constant dense<0.000000e+00> : vector<256x4xf32>
    %25 = tpu.matmul %23, %24, %cst_36 {dimension_numbers = #tpu.dot_dimension_numbers<[1], [0], [0], [1], [0, 0, 1, 1], [], []>} : vector<256x18xf32>, vector<18x4xf32>, vector<256x4xf32> -> vector<256x4xf32>
    %c0_37 = arith.constant 0 : index
    %c0_38 = arith.constant 0 : index
    %26 = vector.load %arg3[%c0_37, %c0_38] : memref<1x4xf32, #tpu.memory_space<vmem>>, vector<1x4xf32>
    %27 = vector.broadcast %26 : vector<1x4xf32> to vector<256x4xf32>
    %28 = arith.mulf %25, %27 : vector<256x4xf32>
    %c0_39 = arith.constant 0 : index
    %c0_40 = arith.constant 0 : index
    %29 = vector.load %arg4[%c0_39, %c0_40] : memref<1x4xf32, #tpu.memory_space<vmem>>, vector<1x4xf32>
    %30 = vector.broadcast %29 : vector<1x4xf32> to vector<256x4xf32>
    %31 = arith.addf %28, %30 : vector<256x4xf32>
    %cst_41 = arith.constant 0.000000e+00 : f32
    %32 = vector.broadcast %cst_41 : f32 to vector<256x4xf32>
    %33 = arith.maximumf %31, %32 : vector<256x4xf32>
    %34 = vector.shape_cast %33 : vector<256x4xf32> to vector<8x2x16x4xf32>
    %35 = vector.extract_strided_slice %34 {offsets = [0, 0, 0, 0], sizes = [8, 1, 16, 4], strides = [1, 1, 1, 1]} : vector<8x2x16x4xf32> to vector<8x1x16x4xf32>
    %36 = vector.shape_cast %35 : vector<8x1x16x4xf32> to vector<8x16x4xf32>
    %37 = vector.extract_strided_slice %34 {offsets = [0, 1, 0, 0], sizes = [8, 1, 16, 4], strides = [1, 1, 1, 1]} : vector<8x2x16x4xf32> to vector<8x1x16x4xf32>
    %38 = vector.shape_cast %37 : vector<8x1x16x4xf32> to vector<8x16x4xf32>
    %39 = arith.maximumf %36, %38 : vector<8x16x4xf32>
    %40 = vector.extract_strided_slice %39 {offsets = [0, 0, 0], sizes = [8, 15, 4], strides = [1, 1, 1]} : vector<8x16x4xf32> to vector<8x15x4xf32>
    %41 = vector.extract_strided_slice %39 {offsets = [0, 1, 0], sizes = [8, 15, 4], strides = [1, 1, 1]} : vector<8x16x4xf32> to vector<8x15x4xf32>
    %42 = arith.maximumf %40, %41 : vector<8x15x4xf32>
    %cst_42 = arith.constant 0.000000e+00 : f32
    %43 = vector.broadcast %cst_42 : f32 to vector<10x20x4xf32>
    %c0_43 = arith.constant 0 : index
    %c0_44 = arith.constant 0 : index
    %c0_45 = arith.constant 0 : index
    %44 = vector.load %arg12[%c0_43, %c0_44, %c0_45] : memref<10x20x4xf32, #tpu.memory_space<vmem>>, vector<10x20x4xf32>
    tpu.vector_store %arg12[%c0_43, %c0_44, %c0_45], %43 {strides = array<i32>} : memref<10x20x4xf32, #tpu.memory_space<vmem>>, vector<10x20x4xf32>,
    %c1_46 = arith.constant 1 : index
    %c2_47 = arith.constant 2 : index
    %c0_48 = arith.constant 0 : index
    %45 = vector.load %arg12[%c1_46, %c2_47, %c0_48] : memref<10x20x4xf32, #tpu.memory_space<vmem>>, vector<8x15x4xf32>
    tpu.vector_store %arg12[%c1_46, %c2_47, %c0_48], %42 {strides = array<i32>} : memref<10x20x4xf32, #tpu.memory_space<vmem>>, vector<8x15x4xf32>,
    %c0_49 = arith.constant 0 : index
    %c0_50 = arith.constant 0 : index
    %c0_51 = arith.constant 0 : index
    %46 = vector.load %arg12[%c0_49, %c0_50, %c0_51] : memref<10x20x4xf32, #tpu.memory_space<vmem>>, vector<8x16x4xf32>
    %47 = vector.shape_cast %46 : vector<8x16x4xf32> to vector<128x4xf32>
    %c0_52 = arith.constant 0 : index
    %c2_53 = arith.constant 2 : index
    %c0_54 = arith.constant 0 : index
    %48 = vector.load %arg12[%c0_52, %c2_53, %c0_54] : memref<10x20x4xf32, #tpu.memory_space<vmem>>, vector<8x16x4xf32>
    %49 = vector.shape_cast %48 : vector<8x16x4xf32> to vector<128x4xf32>
    %c0_55 = arith.constant 0 : index
    %c4 = arith.constant 4 : index
    %c0_56 = arith.constant 0 : index
    %50 = vector.load %arg12[%c0_55, %c4, %c0_56] : memref<10x20x4xf32, #tpu.memory_space<vmem>>, vector<8x16x4xf32>
    %51 = vector.shape_cast %50 : vector<8x16x4xf32> to vector<128x4xf32>
    %c1_57 = arith.constant 1 : index
    %c0_58 = arith.constant 0 : index
    %c0_59 = arith.constant 0 : index
    %52 = vector.load %arg12[%c1_57, %c0_58, %c0_59] : memref<10x20x4xf32, #tpu.memory_space<vmem>>, vector<8x16x4xf32>
    %53 = vector.shape_cast %52 : vector<8x16x4xf32> to vector<128x4xf32>
    %c1_60 = arith.constant 1 : index
    %c2_61 = arith.constant 2 : index
    %c0_62 = arith.constant 0 : index
    %54 = vector.load %arg12[%c1_60, %c2_61, %c0_62] : memref<10x20x4xf32, #tpu.memory_space<vmem>>, vector<8x16x4xf32>
    %55 = vector.shape_cast %54 : vector<8x16x4xf32> to vector<128x4xf32>
    %c1_63 = arith.constant 1 : index
    %c4_64 = arith.constant 4 : index
    %c0_65 = arith.constant 0 : index
    %56 = vector.load %arg12[%c1_63, %c4_64, %c0_65] : memref<10x20x4xf32, #tpu.memory_space<vmem>>, vector<8x16x4xf32>
    %57 = vector.shape_cast %56 : vector<8x16x4xf32> to vector<128x4xf32>
    %c2_66 = arith.constant 2 : index
    %c0_67 = arith.constant 0 : index
    %c0_68 = arith.constant 0 : index
    %58 = vector.load %arg12[%c2_66, %c0_67, %c0_68] : memref<10x20x4xf32, #tpu.memory_space<vmem>>, vector<8x16x4xf32>
    %59 = vector.shape_cast %58 : vector<8x16x4xf32> to vector<128x4xf32>
    %c2_69 = arith.constant 2 : index
    %c2_70 = arith.constant 2 : index
    %c0_71 = arith.constant 0 : index
    %60 = vector.load %arg12[%c2_69, %c2_70, %c0_71] : memref<10x20x4xf32, #tpu.memory_space<vmem>>, vector<8x16x4xf32>
    %61 = vector.shape_cast %60 : vector<8x16x4xf32> to vector<128x4xf32>
    %c2_72 = arith.constant 2 : index
    %c4_73 = arith.constant 4 : index
    %c0_74 = arith.constant 0 : index
    %62 = vector.load %arg12[%c2_72, %c4_73, %c0_74] : memref<10x20x4xf32, #tpu.memory_space<vmem>>, vector<8x16x4xf32>
    %63 = vector.shape_cast %62 : vector<8x16x4xf32> to vector<128x4xf32>
    %64 = tpu.concatenate %47, %49, %51, %53, %55, %57, %59, %61, %63 in 1 : vector<128x4xf32>, vector<128x4xf32>, vector<128x4xf32>, vector<128x4xf32>, vector<128x4xf32>, vector<128x4xf32>, vector<128x4xf32>, vector<128x4xf32>, vector<128x4xf32> -> vector<128x36xf32>
    %c0_75 = arith.constant 0 : index
    %c0_76 = arith.constant 0 : index
    %65 = vector.load %arg5[%c0_75, %c0_76] : memref<36x8xf32, #tpu.memory_space<vmem>>, vector<36x8xf32>
    %cst_77 = arith.constant dense<0.000000e+00> : vector<128x8xf32>
    %66 = tpu.matmul %64, %65, %cst_77 {dimension_numbers = #tpu.dot_dimension_numbers<[1], [0], [0], [1], [0, 0, 1, 1], [], []>} : vector<128x36xf32>, vector<36x8xf32>, vector<128x8xf32> -> vector<128x8xf32>
    %c0_78 = arith.constant 0 : index
    %c0_79 = arith.constant 0 : index
    %67 = vector.load %arg6[%c0_78, %c0_79] : memref<1x8xf32, #tpu.memory_space<vmem>>, vector<1x8xf32>
    %68 = vector.broadcast %67 : vector<1x8xf32> to vector<128x8xf32>
    %69 = arith.mulf %66, %68 : vector<128x8xf32>
    %c0_80 = arith.constant 0 : index
    %c0_81 = arith.constant 0 : index
    %70 = vector.load %arg7[%c0_80, %c0_81] : memref<1x8xf32, #tpu.memory_space<vmem>>, vector<1x8xf32>
    %71 = vector.broadcast %70 : vector<1x8xf32> to vector<128x8xf32>
    %72 = arith.addf %69, %71 : vector<128x8xf32>
    %cst_82 = arith.constant 0.000000e+00 : f32
    %73 = vector.broadcast %cst_82 : f32 to vector<128x8xf32>
    %74 = arith.maximumf %72, %73 : vector<128x8xf32>
    %75 = vector.shape_cast %74 : vector<128x8xf32> to vector<4x2x16x8xf32>
    %76 = vector.extract_strided_slice %75 {offsets = [0, 0, 0, 0], sizes = [4, 1, 16, 8], strides = [1, 1, 1, 1]} : vector<4x2x16x8xf32> to vector<4x1x16x8xf32>
    %77 = vector.shape_cast %76 : vector<4x1x16x8xf32> to vector<4x16x8xf32>
    %78 = vector.extract_strided_slice %75 {offsets = [0, 1, 0, 0], sizes = [4, 1, 16, 8], strides = [1, 1, 1, 1]} : vector<4x2x16x8xf32> to vector<4x1x16x8xf32>
    %79 = vector.shape_cast %78 : vector<4x1x16x8xf32> to vector<4x16x8xf32>
    %80 = arith.maximumf %77, %79 : vector<4x16x8xf32>
    %81 = vector.extract_strided_slice %80 {offsets = [0, 0, 0], sizes = [4, 14, 8], strides = [1, 1, 1]} : vector<4x16x8xf32> to vector<4x14x8xf32>
    %82 = vector.extract_strided_slice %80 {offsets = [0, 2, 0], sizes = [4, 14, 8], strides = [1, 1, 1]} : vector<4x16x8xf32> to vector<4x14x8xf32>
    %83 = arith.maximumf %81, %82 : vector<4x14x8xf32>
    %c0_83 = arith.constant 0 : index
    %c0_84 = arith.constant 0 : index
    %c0_85 = arith.constant 0 : index
    %c0_86 = arith.constant 0 : index
    %84 = vector.load %arg8[%c0_83, %c0_84, %c0_85, %c0_86] : memref<3x4x14x8xf32, #tpu.memory_space<vmem>>, vector<1x4x14x8xf32>
    %85 = vector.shape_cast %84 : vector<1x4x14x8xf32> to vector<4x14x8xf32>
    %86 = arith.mulf %83, %85 : vector<4x14x8xf32>
    %cst_87 = arith.constant dense<0.000000e+00> : vector<14x8xf32>
    %87 = vector.multi_reduction <add>, %86, %cst_87 [0] : vector<4x14x8xf32> to vector<14x8xf32>
    %cst_88 = arith.constant dense<0.000000e+00> : vector<8xf32>
    %88 = vector.multi_reduction <add>, %87, %cst_88 [0] : vector<14x8xf32> to vector<8xf32>
    %89 = vector.shape_cast %88 : vector<8xf32> to vector<1x8xf32>
    %cst_89 = arith.constant dense<0.000000e+00> : vector<1xf32>
    %90 = vector.multi_reduction <add>, %89, %cst_89 [1] : vector<1x8xf32> to vector<1xf32>
    %91 = vector.shape_cast %90 : vector<1xf32> to vector<1x1xf32>
    %c0_90 = arith.constant 0 : index
    %c0_91 = arith.constant 0 : index
    %92 = vector.load %arg9[%c0_90, %c0_91] : memref<1x3xf32, #tpu.memory_space<vmem>>, vector<1x1xf32>
    %93 = arith.addf %91, %92 : vector<1x1xf32>
    %c0_92 = arith.constant 0 : index
    %c0_93 = arith.constant 0 : index
    %c0_94 = arith.constant 0 : index
    %94 = vector.load %arg10[%c0_92, %c0_93, %c0_94] : memref<1x1x3xf32, #tpu.memory_space<vmem>>, vector<1x1x1xf32>
    %95 = vector.shape_cast %94 : vector<1x1x1xf32> to vector<1x1xf32>
    %96 = vector.shape_cast %93 : vector<1x1xf32> to vector<1x1x1xf32>
    tpu.vector_store %arg10[%c0_92, %c0_93, %c0_94], %96 {strides = array<i32>} : memref<1x1x3xf32, #tpu.memory_space<vmem>>, vector<1x1x1xf32>,
    %c1_95 = arith.constant 1 : index
    %c0_96 = arith.constant 0 : index
    %c0_97 = arith.constant 0 : index
    %c0_98 = arith.constant 0 : index
    %97 = vector.load %arg8[%c1_95, %c0_96, %c0_97, %c0_98] : memref<3x4x14x8xf32, #tpu.memory_space<vmem>>, vector<1x4x14x8xf32>
    %98 = vector.shape_cast %97 : vector<1x4x14x8xf32> to vector<4x14x8xf32>
    %99 = arith.mulf %83, %98 : vector<4x14x8xf32>
    %cst_99 = arith.constant dense<0.000000e+00> : vector<14x8xf32>
    %100 = vector.multi_reduction <add>, %99, %cst_99 [0] : vector<4x14x8xf32> to vector<14x8xf32>
    %cst_100 = arith.constant dense<0.000000e+00> : vector<8xf32>
    %101 = vector.multi_reduction <add>, %100, %cst_100 [0] : vector<14x8xf32> to vector<8xf32>
    %102 = vector.shape_cast %101 : vector<8xf32> to vector<1x8xf32>
    %cst_101 = arith.constant dense<0.000000e+00> : vector<1xf32>
    %103 = vector.multi_reduction <add>, %102, %cst_101 [1] : vector<1x8xf32> to vector<1xf32>
    %104 = vector.shape_cast %103 : vector<1xf32> to vector<1x1xf32>
    %c0_102 = arith.constant 0 : index
    %c1_103 = arith.constant 1 : index
    %105 = vector.load %arg9[%c0_102, %c1_103] : memref<1x3xf32, #tpu.memory_space<vmem>>, vector<1x1xf32>
    %106 = arith.addf %104, %105 : vector<1x1xf32>
    %c0_104 = arith.constant 0 : index
    %c0_105 = arith.constant 0 : index
    %c1_106 = arith.constant 1 : index
    %107 = vector.load %arg10[%c0_104, %c0_105, %c1_106] : memref<1x1x3xf32, #tpu.memory_space<vmem>>, vector<1x1x1xf32>
    %108 = vector.shape_cast %107 : vector<1x1x1xf32> to vector<1x1xf32>
    %109 = vector.shape_cast %106 : vector<1x1xf32> to vector<1x1x1xf32>
    tpu.vector_store %arg10[%c0_104, %c0_105, %c1_106], %109 {strides = array<i32>} : memref<1x1x3xf32, #tpu.memory_space<vmem>>, vector<1x1x1xf32>,
    %c2_107 = arith.constant 2 : index
    %c0_108 = arith.constant 0 : index
    %c0_109 = arith.constant 0 : index
    %c0_110 = arith.constant 0 : index
    %110 = vector.load %arg8[%c2_107, %c0_108, %c0_109, %c0_110] : memref<3x4x14x8xf32, #tpu.memory_space<vmem>>, vector<1x4x14x8xf32>
    %111 = vector.shape_cast %110 : vector<1x4x14x8xf32> to vector<4x14x8xf32>
    %112 = arith.mulf %83, %111 : vector<4x14x8xf32>
    %cst_111 = arith.constant dense<0.000000e+00> : vector<14x8xf32>
    %113 = vector.multi_reduction <add>, %112, %cst_111 [0] : vector<4x14x8xf32> to vector<14x8xf32>
    %cst_112 = arith.constant dense<0.000000e+00> : vector<8xf32>
    %114 = vector.multi_reduction <add>, %113, %cst_112 [0] : vector<14x8xf32> to vector<8xf32>
    %115 = vector.shape_cast %114 : vector<8xf32> to vector<1x8xf32>
    %cst_113 = arith.constant dense<0.000000e+00> : vector<1xf32>
    %116 = vector.multi_reduction <add>, %115, %cst_113 [1] : vector<1x8xf32> to vector<1xf32>
    %117 = vector.shape_cast %116 : vector<1xf32> to vector<1x1xf32>
    %c0_114 = arith.constant 0 : index
    %c2_115 = arith.constant 2 : index
    %118 = vector.load %arg9[%c0_114, %c2_115] : memref<1x3xf32, #tpu.memory_space<vmem>>, vector<1x1xf32>
    %119 = arith.addf %117, %118 : vector<1x1xf32>
    %c0_116 = arith.constant 0 : index
    %c0_117 = arith.constant 0 : index
    %c2_118 = arith.constant 2 : index
    %120 = vector.load %arg10[%c0_116, %c0_117, %c2_118] : memref<1x1x3xf32, #tpu.memory_space<vmem>>, vector<1x1x1xf32>
    %121 = vector.shape_cast %120 : vector<1x1x1xf32> to vector<1x1xf32>
    %122 = vector.shape_cast %119 : vector<1x1xf32> to vector<1x1x1xf32>
    tpu.vector_store %arg10[%c0_116, %c0_117, %c2_118], %122 {strides = array<i32>} : memref<1x1x3xf32, #tpu.memory_space<vmem>>, vector<1x1x1xf32>,
    return
  }
  func.func @transform_0(%arg0: i32) -> (i32, i32, i32, i32) {
    %c0_i32 = arith.constant 0 : i32
    %c0_i32_0 = arith.constant 0 : i32
    %c0_i32_1 = arith.constant 0 : i32
    %c0_i32_2 = arith.constant 0 : i32
    return %arg0, %c0_i32, %c0_i32_0, %c0_i32_1 : i32, i32, i32, i32
  }
  func.func @transform_1(%arg0: i32) -> (i32, i32) {
    %c0_i32 = arith.constant 0 : i32
    %c0_i32_0 = arith.constant 0 : i32
    %c0_i32_1 = arith.constant 0 : i32
    return %c0_i32, %c0_i32_0 : i32, i32
  }
  func.func @transform_2(%arg0: i32) -> (i32, i32) {
    %c0_i32 = arith.constant 0 : i32
    %c0_i32_0 = arith.constant 0 : i32
    %c0_i32_1 = arith.constant 0 : i32
    return %c0_i32, %c0_i32_0 : i32, i32
  }
  func.func @transform_3(%arg0: i32) -> (i32, i32) {
    %c0_i32 = arith.constant 0 : i32
    %c0_i32_0 = arith.constant 0 : i32
    %c0_i32_1 = arith.constant 0 : i32
    return %c0_i32, %c0_i32_0 : i32, i32
  }
  func.func @transform_4(%arg0: i32) -> (i32, i32) {
    %c0_i32 = arith.constant 0 : i32
    %c0_i32_0 = arith.constant 0 : i32
    %c0_i32_1 = arith.constant 0 : i32
    return %c0_i32, %c0_i32_0 : i32, i32
  }
  func.func @transform_5(%arg0: i32) -> (i32, i32) {
    %c0_i32 = arith.constant 0 : i32
    %c0_i32_0 = arith.constant 0 : i32
    %c0_i32_1 = arith.constant 0 : i32
    return %c0_i32, %c0_i32_0 : i32, i32
  }
  func.func @transform_6(%arg0: i32) -> (i32, i32) {
    %c0_i32 = arith.constant 0 : i32
    %c0_i32_0 = arith.constant 0 : i32
    %c0_i32_1 = arith.constant 0 : i32
    return %c0_i32, %c0_i32_0 : i32, i32
  }
  func.func @transform_7(%arg0: i32) -> (i32, i32, i32, i32) {
    %c0_i32 = arith.constant 0 : i32
    %c0_i32_0 = arith.constant 0 : i32
    %c0_i32_1 = arith.constant 0 : i32
    %c0_i32_2 = arith.constant 0 : i32
    %c0_i32_3 = arith.constant 0 : i32
    return %c0_i32, %c0_i32_0, %c0_i32_1, %c0_i32_2 : i32, i32, i32, i32
  }
  func.func @transform_8(%arg0: i32) -> (i32, i32) {
    %c0_i32 = arith.constant 0 : i32
    %c0_i32_0 = arith.constant 0 : i32
    %c0_i32_1 = arith.constant 0 : i32
    return %c0_i32, %c0_i32_0 : i32, i32
  }
  func.func @transform_9(%arg0: i32) -> (i32, i32, i32) {
    %c0_i32 = arith.constant 0 : i32
    %c0_i32_0 = arith.constant 0 : i32
    %c0_i32_1 = arith.constant 0 : i32
    return %arg0, %c0_i32, %c0_i32_0 : i32, i32, i32
  }
}

</mosaic_0001>

<bundles_post_ra>
// kernel: cnn_forward.1
= control target key start
LH: loop header
LB: loop body
LE: loop exit
PB: predicated region body
PF: predicated region fallthrough
CT: control target
= control target key end

     0   :  { %14 = vsyncpa [#allocation5], 0  ;;  %s6597_s0 = inlined_call_operand.vmem [shape: f32[2,16,16,2], index: 0, kind: input, shape index: {}]   ;;  %s6598_s1 = inlined_call_operand.vmem [shape: f32[18,4], index: 1, kind: input, shape index: {}]   ;;  %s6599_s2 = inlined_call_operand.vmem [shape: f32[1,4], index: 2, kind: input, shape index: {}]   ;;  %s6600_s3 = inlined_call_operand.vmem [shape: f32[1,4], index: 3, kind: input, shape index: {}]   ;;  %s6601_s4 = inlined_call_operand.vmem [shape: f32[36,8], index: 4, kind: input, shape index: {}]   ;;  %s6602_s5 = inlined_call_operand.vmem [shape: f32[1,8], index: 5, kind: input, shape index: {}]   ;;  %s6603_s6 = inlined_call_operand.vmem [shape: f32[1,8], index: 6, kind: input, shape index: {}]   ;;  %s6604_s7 = inlined_call_operand.vmem [shape: f32[3,4,14,8], index: 7, kind: input, shape index: {}]   ;;  %s6605_s8 = inlined_call_operand.vmem [shape: f32[1,3], index: 8, kind: input, shape index: {}]   ;;  %s6606_s9 = inlined_call_operand.hbm [shape: f32[2,1,3], index: 9, kind: output, shape index: {}]  }
   0x1   :  { %16 = vsyncpa [#allocation5 + $0x1], 0  ;;  %s4337_s30 = smov 0   ;;  %s4339_s10 = smov 0  }
   0x2   :  { %s4341_s11 = smov 0   ;;  %s4343_s12 = smov 0  }
   0x3 LB: > { %s4358_s13 = sadd.s32 4294967295, %s4271_s12   ;;  %s3912_s14 = sadd.s32 4294967294, %s4271_s12   ;;  %s4271_s12 = sphi %s4343_s12, %s6615_s12   ;;  %s4267_s11 = sphi %s4341_s11, %s6614_s11   ;;  %s4263_s10 = sphi %s4339_s10, %s6613_s10   ;;  %s4259_s30 = sphi %s4337_s30, %s6612_s30  }
   0x4   : > { %s4362_s15 = sadd.s32 1, %s4271_s12   ;;  %s223_s16 = sadd.s32 1, %s4267_s11 }
   0x5   : > { %s220_s17 = ssub.s32 %s4271_s12, %s4362_s15  ;;  %p233_p0 = scmp.ne.s32.totalorder %s4267_s11, %s4263_s10 }
   0x6   : > { %p221_p1 = scmp.eq.s32.totalorder %s220_s17, 0  ;;  %p234_p2 = scmp.eq.s32.totalorder %s4358_s13, 1 }
   0x7   : > { %p239_p3 = scmp.ne.s32.totalorder %s4263_s10, %s4259_s30  ;;  %p240_p4 = scmp.eq.s32.totalorder %s3912_s14, 1 }
   0x8   : > { %s4373_s18 = scalar_select %p221_p1, %s4267_s11, %s223_s16  }
   0x9   : > { %p4375_p5 = por %p234_p2, %p233_p0  ;;  %p4379_p6 = por %p240_p4, %p239_p3 }
   0xa   : > { %p3915_p7 = scmp.ge.s32.totalorder %s4271_s12, 1  ;;  %p290_p8 = scmp.lt.s32.totalorder %s4271_s12, 3 }
   0xc   : > { %p291_p9 = pnand %p3915_p7, %p290_p8 }
   0xe   : > { %294 = sbr.rel (%p291_p9) target bundleno = 1490 (0x5d2), region = 56 }
  0x15   : > { %vm330_vm0 = vcmask 15360   ;;  %vm333_vm1 = vcmask 9216   ;;  %p325_p10 = scmp.lt.s32.totalorder %s4358_s13, 1  ;;  %v4273_v0 = vmov 0.0   ;;  %s4274_s26 = smov 2   ;;  %vm1796_vm2 = vcmask 31744  }
  0x16   : > { %331 = vst.msk [vmem:[#allocation2] sm:$0xff] %vm330_vm0, %v4273_v0  ;;  %332 = vst.msk [vmem:[#allocation2 + $0x8] sm:$0xff] %vm330_vm0, %v4273_v0  ;;  %s4275_s27 = smov 4   ;;  %s4276_s28 = smov 6   ;;  %v2027_v52 = vld [vmem:[%s6598_s1] sm:$0xff]  ;;  %v2028_v53 = vld [vmem:[%s6598_s1 + $0x8] sm:$0xff] }
  0x17   : > { %335 = vst.msk [vmem:[#allocation2 + $0x18] sm:$0xff] %vm330_vm0, %v4273_v0  ;;  %336 = vst.msk [vmem:[#allocation2 + $0x20] sm:$0xff] %vm330_vm0, %v4273_v0  ;;  %s326_s21 = scalar_select %p325_p10, %s4358_s13, 1  ;;  %v4136_v54 = vpack.c.bf16 %v2028_v53, %v2027_v52  ;;  %v2029_v56 = vld [vmem:[%s6598_s1 + $0x10] sm:$0x3]  ;;  %vm2127_vm3 = vcmask 1041408  }
  0x18   : > { %338 = vst.msk [vmem:[#allocation2 + $0x30] sm:$0xff] %vm330_vm0, %v4273_v0  ;;  %339 = vst.msk [vmem:[#allocation2 + $0x38] sm:$0xff] %vm330_vm0, %v4273_v0  ;;  %s4277_s29 = smov 8   ;;  %s4278_s14 = smov 10   ;;  %vm1829_vm4 = vcmask 48128   ;;  %vm1895_vm5 = vcmask 80896  }
  0x19   : > { %341 = vst.msk [vmem:[#allocation2 + $0x48] sm:$0xff] %vm330_vm0, %v4273_v0  ;;  %342 = vst.msk [vmem:[#allocation2 + $0x50] sm:$0xff] %vm330_vm0, %v4273_v0  ;;  %s3991_s22 = sshll.u32 %s326_s21, 8  ;;  %s4279_s16 = smov 12   ;;  %4137 = vmatprep.subr.bf16.mxu0 %v4136_v54  ;;  %4148 = vmatprep.subr.bf16.mxu1 %v4136_v54  ;;  %vm1862_vm6 = vcmask 64512   ;;  %vm1928_vm7 = vcmask 97280  }
  0x1a   : > { %344 = vst.msk [vmem:[#allocation2 + $0x60] sm:$0xff] %vm330_vm0, %v4273_v0  ;;  %345 = vst.msk [vmem:[#allocation2 + $0x68] sm:$0xff] %vm330_vm0, %v4273_v0  ;;  %s4500_s25 = scalar_lea.vmem %s6597_s0, %s3991_s22  ;;  %s4280_s24 = smov 14   ;;  %4139 = vmatpush3.bf16.msra.mxu0 %v4136_v54  ;;  %4150 = vmatpush3.bf16.msra.mxu1 %v4136_v54  ;;  %vm1961_vm8 = vcmask 113664   ;;  %vm1994_vm9 = vcmask 130048   ;;  %vm2030_vm10 = vcmask 146432  }
  0x1b   : > { %347 = vst.msk [vmem:[#allocation2 + $0x78] sm:$0xff] %vm330_vm0, %v4273_v0  ;;  %348 = vst.msk [vmem:[#allocation2 + $0x80] sm:$0xff] %vm330_vm0, %v4273_v0  ;;  %v386_v1 = vld [vmem:[%s4500_s25] sm:$0xff]  ;;  %v388_v2 = vld [vmem:[%s4500_s25 + $0x10] sm:$0xff]  ;;  %4052 = vmatprep.subr.msk.mxu0 %vm2127_vm3, %v2029_v56  ;;  %4149 = vmatprep.subr.msk.mxu1 %vm2127_vm3, %v2029_v56  ;;  %s4281_s22 = smov 16   ;;  %vm2557_vm11 = vcmask 27648  }
  0x1c   : > { %350 = vst.msk [vmem:[#allocation2 + $0x90] sm:$0xff] %vm330_vm0, %v4273_v0  ;;  %351 = vst.msk [vmem:[#allocation2 + $0x98] sm:$0xff] %vm330_vm0, %v4273_v0  ;;  %v387_v3 = vld [vmem:[%s4500_s25 + $0x8] sm:$0xff]  ;;  %v390_v4 = vld [vmem:[%s4500_s25 + $0x20] sm:$0xff]  ;;  %vm2498_vm12 = vcmask 1046528   ;;  %vm2588_vm13 = vcmask 30720  }
  0x1d   : > { %353 = vst.msk [vmem:[#allocation2 + $0xa8] sm:$0xff] %vm330_vm0, %v4273_v0  ;;  %354 = vst.msk [vmem:[#allocation2 + $0xb0] sm:$0xff] %vm330_vm0, %v4273_v0  ;;  %v389_v5 = vld [vmem:[%s4500_s25 + $0x18] sm:$0xff]  ;;  %v392_v6 = vld [vmem:[%s4500_s25 + $0x30] sm:$0xff]  ;;  %vm3447_vm14 = vcmask 1043456   ;;  %s4285_s21 = smov 32  }
  0x1e   : > { %356 = vst.msk [vmem:[#allocation2 + $0xc0] sm:$0xff] %vm330_vm0, %v4273_v0  ;;  %357 = vst.msk [vmem:[#allocation2 + $0xc8] sm:$0xff] %vm330_vm0, %v4273_v0  ;;  %v483_v7 = vld [vmem:[#allocation2 + $0x1] sm:$0xff]  ;;  %v393_v11 = vld [vmem:[%s4500_s25 + $0x38] sm:$0xff]  ;;  %4053 = vmatpush3.msk.msra.mxu0 %vm2127_vm3, %v2029_v56  ;;  %4151 = vmatpush3.msk.msra.mxu1 %vm2127_vm3, %v2029_v56  ;;  %vm3325_vm15 = vcmask 162816   ;;  %vm3376_vm3 = vcmask 261120  }
  0x1f   : > { %359 = vst.msk [vmem:[#allocation2 + $0xd8] sm:$0xff] %vm330_vm0, %v4273_v0  ;;  %360 = vst.msk [vmem:[#allocation2 + $0xe0] sm:$0xff] %vm330_vm0, %v4273_v0  ;;  %v391_v9 = vld [vmem:[%s4500_s25 + $0x28] sm:$0xff]  ;;  %772 = vrot.lane.b32.xlu0 %v483_v7, %s4274_s26  ;;  %v394_v10 = vld [vmem:[%s4500_s25 + $0x40] sm:$0xff]  ;;  %s3988_s17 = sshll.u32 %s4358_s13, 4 }
  0x20   : > { %362 = vst.msk [vmem:[#allocation2 + $0xf0] sm:$0xff] %vm330_vm0, %v4273_v0  ;;  %363 = vst.msk [vmem:[#allocation2 + $0xf8] sm:$0xff] %vm330_vm0, %v4273_v0  ;;  %v396_v12 = vld [vmem:[%s4500_s25 + $0x50] sm:$0xff]  ;;  %v395_v13 = vld [vmem:[%s4500_s25 + $0x48] sm:$0xff] }
  0x21   : > { %365 = vst.msk [vmem:[#allocation2 + $0x108] sm:$0xff] %vm330_vm0, %v4273_v0  ;;  %366 = vst.msk [vmem:[#allocation2 + $0x110] sm:$0xff] %vm330_vm0, %v4273_v0  ;;  %v398_v14 = vld [vmem:[%s4500_s25 + $0x60] sm:$0xff]  ;;  %v397_v15 = vld [vmem:[%s4500_s25 + $0x58] sm:$0xff] }
  0x22   : > { %368 = vst.msk [vmem:[#allocation2 + $0x120] sm:$0xff] %vm330_vm0, %v4273_v0  ;;  %369 = vst.msk [vmem:[#allocation2 + $0x128] sm:$0xff] %vm330_vm0, %v4273_v0  ;;  %v400_v16 = vld [vmem:[%s4500_s25 + $0x70] sm:$0xff]  ;;  %v399_v17 = vld [vmem:[%s4500_s25 + $0x68] sm:$0xff] }
  0x23   : > { %371 = vst.msk [vmem:[#allocation2 + $0x138] sm:$0xff] %vm330_vm0, %v4273_v0  ;;  %372 = vst.msk [vmem:[#allocation2 + $0x140] sm:$0xff] %vm330_vm0, %v4273_v0  ;;  %v402_v18 = vld [vmem:[%s4500_s25 + $0x80] sm:$0xff]  ;;  %v401_v19 = vld [vmem:[%s4500_s25 + $0x78] sm:$0xff] }
  0x24   : > { %374 = vst.msk [vmem:[#allocation2 + $0x150] sm:$0xff] %vm330_vm0, %v4273_v0  ;;  %375 = vst.msk [vmem:[#allocation2 + $0x158] sm:$0xff] %vm330_vm0, %v4273_v0  ;;  %v404_v20 = vld [vmem:[%s4500_s25 + $0x90] sm:$0xff]  ;;  %v403_v21 = vld [vmem:[%s4500_s25 + $0x88] sm:$0xff] }
  0x25   : > { %377 = vst.msk [vmem:[#allocation2 + $0x168] sm:$0xff] %vm330_vm0, %v4273_v0  ;;  %378 = vst.msk [vmem:[#allocation2 + $0x170] sm:$0xff] %vm330_vm0, %v4273_v0  ;;  %v406_v22 = vld [vmem:[%s4500_s25 + $0xa0] sm:$0xff]  ;;  %v405_v23 = vld [vmem:[%s4500_s25 + $0x98] sm:$0xff] }
  0x26   : > { %380 = vst.msk [vmem:[#allocation2 + $0x180] sm:$0xff] %vm330_vm0, %v4273_v0  ;;  %381 = vst.msk [vmem:[#allocation2 + $0x188] sm:$0xff] %vm330_vm0, %v4273_v0  ;;  %v515_v46 = vld [vmem:[#allocation2 + $0x2] sm:$0xff]  ;;  %v409_v54 = vld [vmem:[%s4500_s25 + $0xb8] sm:$0xff] }
  0x27   : > { %383 = vst.msk [vmem:[#allocation2 + $0x198] sm:$0xff] %vm330_vm0, %v4273_v0  ;;  %384 = vst.msk [vmem:[#allocation2 + $0x1a0] sm:$0xff] %vm330_vm0, %v4273_v0 }
  0x28   : > { %334 = vst.msk [vmem:[#allocation2 + $0x10] sm:$0x3] %vm333_vm1, %v4273_v0  ;;  %337 = vst.msk [vmem:[#allocation2 + $0x28] sm:$0x3] %vm333_vm1, %v4273_v0 }
  0x29   : > { %340 = vst.msk [vmem:[#allocation2 + $0x40] sm:$0x3] %vm333_vm1, %v4273_v0  ;;  %343 = vst.msk [vmem:[#allocation2 + $0x58] sm:$0x3] %vm333_vm1, %v4273_v0 }
  0x2a   : > { %346 = vst.msk [vmem:[#allocation2 + $0x70] sm:$0x3] %vm333_vm1, %v4273_v0  ;;  %349 = vst.msk [vmem:[#allocation2 + $0x88] sm:$0x3] %vm333_vm1, %v4273_v0 }
  0x2b   : > { %352 = vst.msk [vmem:[#allocation2 + $0xa0] sm:$0x3] %vm333_vm1, %v4273_v0  ;;  %355 = vst.msk [vmem:[#allocation2 + $0xb8] sm:$0x3] %vm333_vm1, %v4273_v0 }
  0x2c   : > { %358 = vst.msk [vmem:[#allocation2 + $0xd0] sm:$0x3] %vm333_vm1, %v4273_v0  ;;  %361 = vst.msk [vmem:[#allocation2 + $0xe8] sm:$0x3] %vm333_vm1, %v4273_v0 }
  0x2d   : > { %364 = vst.msk [vmem:[#allocation2 + $0x100] sm:$0x3] %vm333_vm1, %v4273_v0  ;;  %367 = vst.msk [vmem:[#allocation2 + $0x118] sm:$0x3] %vm333_vm1, %v4273_v0 }
  0x2e   : > { %370 = vst.msk [vmem:[#allocation2 + $0x130] sm:$0x3] %vm333_vm1, %v4273_v0  ;;  %373 = vst.msk [vmem:[#allocation2 + $0x148] sm:$0x3] %vm333_vm1, %v4273_v0 }
  0x2f   : > { %376 = vst.msk [vmem:[#allocation2 + $0x160] sm:$0x3] %vm333_vm1, %v4273_v0  ;;  %379 = vst.msk [vmem:[#allocation2 + $0x178] sm:$0x3] %vm333_vm1, %v4273_v0  ;;  %v484_v8 = vld [vmem:[#allocation2 + $0x9] sm:$0xff] }
  0x30   : > { %382 = vst.msk [vmem:[#allocation2 + $0x190] sm:$0x3] %vm333_vm1, %v4273_v0  ;;  %385 = vst.msk [vmem:[#allocation2 + $0x1a8] sm:$0x3] %vm333_vm1, %v4273_v0  ;;  %774 = vrot.lane.b32.xlu0 %v484_v8, %s4274_s26  ;;  %v516_v45 = vld [vmem:[#allocation2 + $0xa] sm:$0xff]  ;;  %vm3359_vm1 = vcmask 228352  }
  0x31   : > { %419 = vst.msk [vmem:[#allocation2 + $0x19] sm:$0xff] %vm330_vm0, %v386_v1  ;;  %421 = vst.msk [vmem:[#allocation2 + $0x31] sm:$0xff] %vm330_vm0, %v388_v2 }
  0x32   : > { %420 = vst.msk [vmem:[#allocation2 + $0x21] sm:$0xff] %vm330_vm0, %v387_v3  ;;  %423 = vst.msk [vmem:[#allocation2 + $0x49] sm:$0xff] %vm330_vm0, %v390_v4 }
  0x33   : > { %422 = vst.msk [vmem:[#allocation2 + $0x39] sm:$0xff] %vm330_vm0, %v389_v5  ;;  %425 = vst.msk [vmem:[#allocation2 + $0x61] sm:$0xff] %vm330_vm0, %v392_v6 }
  0x34   : > { %424 = vst.msk [vmem:[#allocation2 + $0x51] sm:$0xff] %vm330_vm0, %v391_v9  ;;  %427 = vst.msk [vmem:[#allocation2 + $0x79] sm:$0xff] %vm330_vm0, %v394_v10 }
  0x35   : > { %426 = vst.msk [vmem:[#allocation2 + $0x69] sm:$0xff] %vm330_vm0, %v393_v11  ;;  %429 = vst.msk [vmem:[#allocation2 + $0x91] sm:$0xff] %vm330_vm0, %v396_v12 }
  0x36   : > { %428 = vst.msk [vmem:[#allocation2 + $0x81] sm:$0xff] %vm330_vm0, %v395_v13  ;;  %431 = vst.msk [vmem:[#allocation2 + $0xa9] sm:$0xff] %vm330_vm0, %v398_v14 }
  0x37   : > { %430 = vst.msk [vmem:[#allocation2 + $0x99] sm:$0xff] %vm330_vm0, %v397_v15  ;;  %433 = vst.msk [vmem:[#allocation2 + $0xc1] sm:$0xff] %vm330_vm0, %v400_v16 }
  0x38   : > { %432 = vst.msk [vmem:[#allocation2 + $0xb1] sm:$0xff] %vm330_vm0, %v399_v17  ;;  %435 = vst.msk [vmem:[#allocation2 + $0xd9] sm:$0xff] %vm330_vm0, %v402_v18  ;;  %v4544_v24 = vld [vmem:[#allocation2 + $0x19] sm:$0xff]  ;;  %v4546_v25 = vld [vmem:[#allocation2 + $0x31] sm:$0xff] }
  0x39   : > { %434 = vst.msk [vmem:[#allocation2 + $0xc9] sm:$0xff] %vm330_vm0, %v401_v19  ;;  %437 = vst.msk [vmem:[#allocation2 + $0xf1] sm:$0xff] %vm330_vm0, %v404_v20  ;;  %776 = vrot.lane.b32.xlu1 %v4544_v24, %s4274_s26  ;;  %v4552_v26 = vld [vmem:[#allocation2 + $0x21] sm:$0xff]  ;;  %780 = vrot.lane.b32.xlu0 %v4546_v25, %s4274_s26  ;;  %v4556_v27 = vld [vmem:[#allocation2 + $0x49] sm:$0xff] }
  0x3a   : > { %436 = vst.msk [vmem:[#allocation2 + $0xe1] sm:$0xff] %vm330_vm0, %v403_v21  ;;  %439 = vst.msk [vmem:[#allocation2 + $0x109] sm:$0xff] %vm330_vm0, %v406_v22  ;;  %v4560_v28 = vld [vmem:[#allocation2 + $0x39] sm:$0xff]  ;;  %v4564_v29 = vld [vmem:[#allocation2 + $0x61] sm:$0xff] }
  0x3b   : > { %438 = vst.msk [vmem:[#allocation2 + $0xf9] sm:$0xff] %vm330_vm0, %v405_v23  ;;  %v4568_v30 = vld [vmem:[#allocation2 + $0x51] sm:$0xff]  ;;  %v4572_v31 = vld [vmem:[#allocation2 + $0x79] sm:$0xff]  ;;  %v612_v51 = vld [vmem:[#allocation2 + $0x22] sm:$0xff] }
  0x3c   : > { %v4576_v32 = vld [vmem:[#allocation2 + $0x69] sm:$0xff]  ;;  %v4580_v33 = vld [vmem:[#allocation2 + $0x91] sm:$0xff]  ;;  %2555 = vst.msk [vmem:[#allocation3] sm:$0xff] %vm1796_vm2, %v4273_v0  ;;  %2556 = vst.msk [vmem:[#allocation3 + $0x8] sm:$0xff] %vm1796_vm2, %v4273_v0 }
  0x3d   : > { %778 = vrot.lane.b32.xlu1 %v4552_v26, %s4274_s26  ;;  %784 = vrot.lane.b32.xlu0 %v4556_v27, %s4274_s26  ;;  %v4584_v34 = vld [vmem:[#allocation2 + $0x81] sm:$0xff]  ;;  %v4588_v35 = vld [vmem:[#allocation2 + $0xa9] sm:$0xff]  ;;  %2559 = vst.msk [vmem:[#allocation3 + $0x18] sm:$0xff] %vm1796_vm2, %v4273_v0  ;;  %2560 = vst.msk [vmem:[#allocation3 + $0x20] sm:$0xff] %vm1796_vm2, %v4273_v0 }
  0x3e   : > { %v4592_v36 = vld [vmem:[#allocation2 + $0x99] sm:$0xff]  ;;  %v4596_v37 = vld [vmem:[#allocation2 + $0xc1] sm:$0xff]  ;;  %2562 = vst.msk [vmem:[#allocation3 + $0x30] sm:$0xff] %vm1796_vm2, %v4273_v0  ;;  %2563 = vst.msk [vmem:[#allocation3 + $0x38] sm:$0xff] %vm1796_vm2, %v4273_v0 }
  0x3f   : > { %v4600_v38 = vld [vmem:[#allocation2 + $0xb1] sm:$0xff]  ;;  %v4604_v39 = vld [vmem:[#allocation2 + $0xd9] sm:$0xff]  ;;  %2565 = vst.msk [vmem:[#allocation3 + $0x48] sm:$0xff] %vm1796_vm2, %v4273_v0  ;;  %2566 = vst.msk [vmem:[#allocation3 + $0x50] sm:$0xff] %vm1796_vm2, %v4273_v0 }
  0x40   : > { %2568 = vst.msk [vmem:[#allocation3 + $0x60] sm:$0xff] %vm1796_vm2, %v4273_v0  ;;  %2569 = vst.msk [vmem:[#allocation3 + $0x68] sm:$0xff] %vm1796_vm2, %v4273_v0  ;;  %v4648_v40 = vld [vmem:[#allocation2 + $0xc9] sm:$0xff]  ;;  %v503_v41 = vld [vmem:[#allocation2 + $0xf1] sm:$0xff] }
  0x41   : > { %782 = vrot.lane.b32.xlu1 %v4560_v28, %s4274_s26  ;;  %788 = vrot.lane.b32.xlu0 %v4564_v29, %s4274_s26  ;;  %2571 = vst.msk [vmem:[#allocation3 + $0x78] sm:$0xff] %vm1796_vm2, %v4273_v0  ;;  %2572 = vst.msk [vmem:[#allocation3 + $0x80] sm:$0xff] %vm1796_vm2, %v4273_v0  ;;  %v4654_v42 = vld [vmem:[#allocation2 + $0xe1] sm:$0xff]  ;;  %v505_v43 = vld [vmem:[#allocation2 + $0x109] sm:$0xff] }
  0x42   : > { %2574 = vst.msk [vmem:[#allocation3 + $0x90] sm:$0xff] %vm1796_vm2, %v4273_v0  ;;  %2575 = vst.msk [vmem:[#allocation3 + $0x98] sm:$0xff] %vm1796_vm2, %v4273_v0  ;;  %v504_v44 = vld [vmem:[#allocation2 + $0xf9] sm:$0xff]  ;;  %v4676_v50 = vld [vmem:[#allocation2 + $0x30] sm:$0xff] }
  0x43   : > { %2577 = vst.msk [vmem:[#allocation3 + $0xa8] sm:$0xff] %vm1796_vm2, %v4273_v0  ;;  %2578 = vst.msk [vmem:[#allocation3 + $0xb0] sm:$0xff] %vm1796_vm2, %v4273_v0  ;;  %v4662_v47 = vld [vmem:[#allocation2 + $0x20] sm:$0xff]  ;;  %v4665_v48 = vld [vmem:[#allocation2 + $0x18] sm:$0xff] }
  0x44   : > { %2580 = vst.msk [vmem:[#allocation3 + $0xc0] sm:$0xff] %vm1796_vm2, %v4273_v0  ;;  %2581 = vst.msk [vmem:[#allocation3 + $0xc8] sm:$0xff] %vm1796_vm2, %v4273_v0  ;;  %v517_v49 = vld [vmem:[#allocation2 + $0x1a] sm:$0xff]  ;;  %v708_v57 = vld [vmem:[#allocation2 + $0x32] sm:$0xff] }
  0x45   : > { %786 = vrot.lane.b32.xlu1 %v4568_v30, %s4274_s26  ;;  %792 = vrot.lane.b32.xlu0 %v4572_v31, %s4274_s26  ;;  %2583 = vst.msk [vmem:[#allocation3 + $0xd8] sm:$0xff] %vm1796_vm2, %v4273_v0  ;;  %2584 = vst.msk [vmem:[#allocation3 + $0xe0] sm:$0xff] %vm1796_vm2, %v4273_v0  ;;  %v4691_v55 = vld [vmem:[#allocation2 + $0x38] sm:$0xff]  ;;  %v4711_v59 = vld [vmem:[#allocation2 + $0x48] sm:$0xff] }
  0x46   : > { %v709_v58 = vld [vmem:[#allocation2 + $0x3a] sm:$0xff]  ;;  %v4720_v60 = vld [vmem:[#allocation2 + $0x50] sm:$0xff]  ;;  %v4758_v7 = vld [vmem:[#allocation2 + $0x68] sm:$0xff]  ;;  %442 = vst.msk [vmem:[#allocation2 + $0x129] sm:$0xff] %vm330_vm0, %v409_v54 }
  0x47   : > { %v710_v61 = vld [vmem:[#allocation2 + $0x4a] sm:$0xff]  ;;  %v711_v63 = vld [vmem:[#allocation2 + $0x52] sm:$0xff]  ;;  %v4739_v1 = vld [vmem:[#allocation2 + $0x60] sm:$0xff]  ;;  %2561 = vst.msk [vmem:[#allocation3 + $0x28] sm:$0xf] %vm2557_vm11, %v4273_v0 }
  0x48   : > { %v712_v11 = vld [vmem:[#allocation2 + $0x62] sm:$0xff]  ;;  %v713_v17 = vld [vmem:[#allocation2 + $0x6a] sm:$0xff]  ;;  %v4796_v20 = vld [vmem:[#allocation2 + $0x78] sm:$0xff]  ;;  %2558 = vst.msk [vmem:[#allocation3 + $0x10] sm:$0xf] %vm2557_vm11, %v4273_v0 }
  0x49   : > { %790 = vrot.lane.b32.xlu1 %v4576_v32, %s4274_s26  ;;  %796 = vrot.lane.b32.xlu0 %v4580_v33, %s4274_s26  ;;  %v716_v54 = vld [vmem:[#allocation2 + $0x92] sm:$0xff]  ;;  %2564 = vst.msk [vmem:[#allocation3 + $0x40] sm:$0xf] %vm2557_vm11, %v4273_v0  ;;  %2567 = vst.msk [vmem:[#allocation3 + $0x58] sm:$0xf] %vm2557_vm11, %v4273_v0 }
  0x4a   : > { %2570 = vst.msk [vmem:[#allocation3 + $0x70] sm:$0xf] %vm2557_vm11, %v4273_v0  ;;  %2573 = vst.msk [vmem:[#allocation3 + $0x88] sm:$0xf] %vm2557_vm11, %v4273_v0 }
  0x4b   : > { %2576 = vst.msk [vmem:[#allocation3 + $0xa0] sm:$0xf] %vm2557_vm11, %v4273_v0  ;;  %2579 = vst.msk [vmem:[#allocation3 + $0xb8] sm:$0xf] %vm2557_vm11, %v4273_v0 }
  0x4c   : > { %2582 = vst.msk [vmem:[#allocation3 + $0xd0] sm:$0xf] %vm2557_vm11, %v4273_v0  ;;  %2585 = vst.msk [vmem:[#allocation3 + $0xe8] sm:$0xf] %vm2557_vm11, %v4273_v0 }
  0x4d   : > { %794 = vrot.lane.b32.xlu1 %v4584_v34, %s4274_s26  ;;  %800 = vrot.lane.b32.xlu0 %v4588_v35, %s4274_s26 }
  0x51   : > { %798 = vrot.lane.b32.xlu1 %v4592_v36, %s4274_s26  ;;  %804 = vrot.lane.b32.xlu0 %v4596_v37, %s4274_s26 }
  0x55   : > { %802 = vrot.lane.b32.xlu1 %v4600_v38, %s4274_s26  ;;  %808 = vrot.lane.b32.xlu0 %v4604_v39, %s4274_s26 }
  0x59   : > { %806 = vrot.lane.b32.xlu1 %v4648_v40, %s4274_s26  ;;  %812 = vrot.lane.b32.xlu0 %v503_v41, %s4274_s26 }
  0x5d   : > { %810 = vrot.lane.b32.xlu1 %v4654_v42, %s4274_s26  ;;  %816 = vrot.lane.b32.xlu0 %v505_v43, %s4274_s26 }
  0x61   : > { %814 = vrot.lane.b32.xlu1 %v504_v44, %s4274_s26  ;;  %902 = vrot.lane.b32.xlu0 %v516_v45, %s4275_s27  ;;  %v715_v44 = vld [vmem:[#allocation2 + $0x82] sm:$0xff] }
  0x65   : > { %900 = vrot.lane.b32.xlu1 %v515_v46, %s4275_s27  ;;  %1030 = vrot.lane.b32.xlu0 %v4662_v47, %s4276_s28  ;;  %v408_v46 = vld [vmem:[%s4500_s25 + $0xb0] sm:$0xff] }
  0x66   : > { %441 = vst.msk [vmem:[#allocation2 + $0x121] sm:$0xff] %vm330_vm0, %v408_v46 }
  0x69   : > { %1028 = vrot.lane.b32.xlu1 %v4665_v48, %s4276_s28  ;;  %1158 = vrot.lane.b32.xlu0 %v4552_v26, %s4277_s29  ;;  %v4816_v26 = vld [vmem:[#allocation2 + $0x80] sm:$0xff] }
  0x6d   : > { %1156 = vrot.lane.b32.xlu1 %v4544_v24, %s4277_s29  ;;  %904 = vrot.lane.b32.xlu0 %v517_v49, %s4275_s27 }
  0x71   : > { %1284 = vrot.lane.b32.xlu1 %v517_v49, %s4278_s14  ;;  %1412 = vrot.lane.b32.xlu0 %v4676_v50, %s4279_s16 }
  0x75   : > { %1286 = vrot.lane.b32.xlu1 %v612_v51, %s4278_s14  ;;  %1032 = vrot.lane.b32.xlu0 %v4676_v50, %s4276_s28 }
  0x79   : > { %906 = vrot.lane.b32.xlu1 %v612_v51, %s4275_s27  ;;  %1540 = vrot.lane.b32.xlu0 %v4546_v25, %s4280_s24  ;;  %v4846_v51 = vld [vmem:[#allocation2 + $0x90] sm:$0xff] }
  0x7d   : > { %1414 = vrot.lane.b32.xlu1 %v4691_v55, %s4279_s16  ;;  %1160 = vrot.lane.b32.xlu0 %v4546_v25, %s4277_s29 }
  0x81   : > { %1034 = vrot.lane.b32.xlu1 %v4691_v55, %s4276_s28  ;;  %1668 = vrot.lane.b32.xlu0 %v708_v57, %s4281_s22 }
  0x85   : > { %1542 = vrot.lane.b32.xlu1 %v4560_v28, %s4280_s24  ;;  %1288 = vrot.lane.b32.xlu0 %v708_v57, %s4278_s14 }
  0x89   : > { %1162 = vrot.lane.b32.xlu1 %v4560_v28, %s4277_s29  ;;  %908 = vrot.lane.b32.xlu0 %v708_v57, %s4275_s27  ;;  %v451_v57 = vld [vmem:[#allocation2] sm:$0xff] }
  0x8d   : > { %1670 = vrot.lane.b32.xlu1 %v709_v58, %s4281_s22  ;;  %1416 = vrot.lane.b32.xlu0 %v4711_v59, %s4279_s16 }
  0x91   : > { %1290 = vrot.lane.b32.xlu1 %v709_v58, %s4278_s14  ;;  %1036 = vrot.lane.b32.xlu0 %v4711_v59, %s4276_s28  ;;  %v4734_v62 = vpop.permute.xlu0 %772 }
  0x95   : > { %910 = vrot.lane.b32.xlu1 %v709_v58, %s4275_s27  ;;  %1544 = vrot.lane.b32.xlu0 %v4556_v27, %s4280_s24 }
  0x99   : > { %1418 = vrot.lane.b32.xlu1 %v4720_v60, %s4279_s16  ;;  %1164 = vrot.lane.b32.xlu0 %v4556_v27, %s4277_s29 }
  0x9d   : > { %1038 = vrot.lane.b32.xlu1 %v4720_v60, %s4276_s28  ;;  %1672 = vrot.lane.b32.xlu0 %v710_v61, %s4281_s22 }
  0xa1   : > { %1546 = vrot.lane.b32.xlu1 %v4568_v30, %s4280_s24  ;;  %1292 = vrot.lane.b32.xlu0 %v710_v61, %s4278_s14 }
  0xa2   : > { %v4741_v2 = vpop.permute.xlu0 %774 }
  0xa5   : > { %1166 = vrot.lane.b32.xlu1 %v4568_v30, %s4277_s29  ;;  %912 = vrot.lane.b32.xlu0 %v710_v61, %s4275_s27  ;;  %v4862_v61 = vld [vmem:[#allocation2 + $0x98] sm:$0xff] }
  0xa9   : > { %1674 = vrot.lane.b32.xlu1 %v711_v63, %s4281_s22  ;;  %1420 = vrot.lane.b32.xlu0 %v4739_v1, %s4279_s16 }
  0xab   : > { %v4746_v3 = vpop.permute.xlu1 %776  ;;  %v4748_v4 = vpop.permute.xlu0 %780 }
  0xad   : > { %1294 = vrot.lane.b32.xlu1 %v711_v63, %s4278_s14  ;;  %1040 = vrot.lane.b32.xlu0 %v4739_v1, %s4276_s28 }
  0xaf   : > { %v4753_v5 = vpop.permute.xlu1 %778  ;;  %v4755_v6 = vpop.permute.xlu0 %784 }
  0xb1   : > { %914 = vrot.lane.b32.xlu1 %v711_v63, %s4275_s27  ;;  %1548 = vrot.lane.b32.xlu0 %v4564_v29, %s4280_s24  ;;  %v1764_v63 = vsel %vm330_vm0, %v451_v57, %v4734_v62 }
  0xb3   : > { %v4762_v8 = vpop.permute.xlu1 %782  ;;  %v4764_v9 = vpop.permute.xlu0 %788 }
  0xb5   : > { %1422 = vrot.lane.b32.xlu1 %v4758_v7, %s4279_s16  ;;  %1168 = vrot.lane.b32.xlu0 %v4564_v29, %s4277_s29  ;;  %v714_v29 = vld [vmem:[#allocation2 + $0x7a] sm:$0xff] }
  0xb7   : > { %v4770_v10 = vpop.permute.xlu1 %786  ;;  %v4772_v12 = vpop.permute.xlu0 %792 }
  0xb9   : > { %1042 = vrot.lane.b32.xlu1 %v4758_v7, %s4276_s28  ;;  %1676 = vrot.lane.b32.xlu0 %v712_v11, %s4281_s22 }
  0xbb   : > { %v4777_v13 = vpop.permute.xlu1 %790  ;;  %v4779_v14 = vpop.permute.xlu0 %796 }
  0xbd   : > { %1550 = vrot.lane.b32.xlu1 %v4576_v32, %s4280_s24  ;;  %1296 = vrot.lane.b32.xlu0 %v712_v11, %s4278_s14 }
  0xbf   : > { %v4784_v15 = vpop.permute.xlu1 %794  ;;  %v4786_v16 = vpop.permute.xlu0 %800 }
  0xc1   : > { %1170 = vrot.lane.b32.xlu1 %v4576_v32, %s4277_s29  ;;  %916 = vrot.lane.b32.xlu0 %v712_v11, %s4275_s27 }
  0xc3   : > { %v4791_v18 = vpop.permute.xlu1 %798  ;;  %v4793_v19 = vpop.permute.xlu0 %804 }
  0xc5   : > { %1678 = vrot.lane.b32.xlu1 %v713_v17, %s4281_s22  ;;  %1424 = vrot.lane.b32.xlu0 %v4796_v20, %s4279_s16 }
  0xc7   : > { %v4800_v21 = vpop.permute.xlu1 %802  ;;  %v4802_v22 = vpop.permute.xlu0 %808 }
  0xc9   : > { %1298 = vrot.lane.b32.xlu1 %v713_v17, %s4278_s14  ;;  %1044 = vrot.lane.b32.xlu0 %v4796_v20, %s4276_s28 }
  0xcb   : > { %v4807_v23 = vpop.permute.xlu1 %806  ;;  %v4809_v24 = vpop.permute.xlu0 %812 }
  0xcd   : > { %918 = vrot.lane.b32.xlu1 %v713_v17, %s4275_s27  ;;  %1552 = vrot.lane.b32.xlu0 %v4572_v31, %s4280_s24 }
  0xcf   : > { %v4814_v25 = vpop.permute.xlu1 %810  ;;  %v4818_v27 = vpop.permute.xlu0 %816 }
  0xd1   : > { %1426 = vrot.lane.b32.xlu1 %v4816_v26, %s4279_s16  ;;  %1172 = vrot.lane.b32.xlu0 %v4572_v31, %s4277_s29 }
  0xd3   : > { %v4824_v28 = vpop.permute.xlu1 %814  ;;  %v4826_v30 = vpop.permute.xlu0 %902 }
  0xd5   : > { %1046 = vrot.lane.b32.xlu1 %v4816_v26, %s4276_s28  ;;  %1680 = vrot.lane.b32.xlu0 %v714_v29, %s4281_s22 }
  0xd7   : > { %v901_v32 = vpop.permute.xlu1 %900  ;;  %v4831_v41 = vpop.permute.xlu0 %1030 }
  0xd8   : > { %v1797_v17 = vsel %vm1796_vm2, %v1764_v63, %v901_v32 }
  0xd9   : > { %1554 = vrot.lane.b32.xlu1 %v4584_v34, %s4280_s24  ;;  %1300 = vrot.lane.b32.xlu0 %v714_v29, %s4278_s14 }
  0xdb   : > { %v1029_v31 = vpop.permute.xlu1 %1028  ;;  %v4836_v43 = vpop.permute.xlu0 %1158 }
  0xdd   : > { %1174 = vrot.lane.b32.xlu1 %v4584_v34, %s4277_s29  ;;  %920 = vrot.lane.b32.xlu0 %v714_v29, %s4275_s27  ;;  %v1830_v29 = vsel %vm1829_vm4, %v1797_v17, %v1029_v31  ;;  %v407_v17 = vld [vmem:[%s4500_s25 + $0xa8] sm:$0xff] }
  0xde   : > { %440 = vst.msk [vmem:[#allocation2 + $0x111] sm:$0xff] %vm330_vm0, %v407_v17 }
  0xdf   : > { %v1157_v45 = vpop.permute.xlu1 %1156  ;;  %v4842_v49 = vpop.permute.xlu0 %904 }
  0xe0   : > { %v1863_v46 = vsel %vm1862_vm6, %v1830_v29, %v1157_v45 }
  0xe1   : > { %1682 = vrot.lane.b32.xlu1 %v715_v44, %s4281_s22  ;;  %1428 = vrot.lane.b32.xlu0 %v4846_v51, %s4279_s16 }
  0xe3   : > { %v1285_v52 = vpop.permute.xlu1 %1284  ;;  %v1413_v53 = vpop.permute.xlu0 %1412 }
  0xe4   : > { %v1896_v62 = vsel %vm1895_vm5, %v1863_v46, %v1285_v52  ;;  %v452_v52 = vld [vmem:[#allocation2 + $0x8] sm:$0xff]  ;;  %v410_v46 = vld [vmem:[%s4500_s25 + $0xc0] sm:$0xff] }
  0xe5   : > { %1302 = vrot.lane.b32.xlu1 %v715_v44, %s4278_s14  ;;  %1048 = vrot.lane.b32.xlu0 %v4846_v51, %s4276_s28  ;;  %443 = vst.msk [vmem:[#allocation2 + $0x139] sm:$0xff] %vm330_vm0, %v410_v46  ;;  %v411_v46 = vld [vmem:[%s4500_s25 + $0xc8] sm:$0xff] }
  0xe6   : > { %444 = vst.msk [vmem:[#allocation2 + $0x141] sm:$0xff] %vm330_vm0, %v411_v46 }
  0xe7   : > { %v1287_v34 = vpop.permute.xlu1 %1286  ;;  %v4854_v56 = vpop.permute.xlu0 %1032 }
  0xe9   : > { %922 = vrot.lane.b32.xlu1 %v715_v44, %s4275_s27  ;;  %1556 = vrot.lane.b32.xlu0 %v4580_v33, %s4280_s24 }
  0xeb   : > { %v4860_v58 = vpop.permute.xlu1 %906  ;;  %v1541_v11 = vpop.permute.xlu0 %1540 }
  0xed   : > { %1430 = vrot.lane.b32.xlu1 %v4862_v61, %s4279_s16  ;;  %1176 = vrot.lane.b32.xlu0 %v4580_v33, %s4277_s29  ;;  %v1929_v33 = vsel %vm1928_vm7, %v1896_v62, %v1413_v53  ;;  %v1765_v53 = vsel %vm330_vm0, %v452_v52, %v4741_v2 }
  0xee   : > { %v1962_v31 = vsel %vm1961_vm8, %v1929_v33, %v1541_v11  ;;  %v1798_v62 = vsel %vm1796_vm2, %v1765_v53, %v4826_v30  ;;  %v717_v33 = vld [vmem:[#allocation2 + $0x9a] sm:$0xff]  ;;  %v4925_v53 = vld [vmem:[#allocation2 + $0xb0] sm:$0xff] }
  0xef   : > { %v1415_v44 = vpop.permute.xlu1 %1414  ;;  %v1161_v57 = vpop.permute.xlu0 %1160 }
  0xf1   : > { %1050 = vrot.lane.b32.xlu1 %v4862_v61, %s4276_s28  ;;  %1684 = vrot.lane.b32.xlu0 %v716_v54, %s4281_s22 }
  0xf3   : > { %v4877_v32 = vpop.permute.xlu1 %1034  ;;  %v1669_v45 = vpop.permute.xlu0 %1668 }
  0xf4   : > { %v1995_v63 = vsel %vm1994_vm9, %v1962_v31, %v1669_v45  ;;  %v1831_v31 = vsel %vm1829_vm4, %v1798_v62, %v4831_v41 }
  0xf5   : > { %1558 = vrot.lane.b32.xlu1 %v4592_v36, %s4280_s24  ;;  %1304 = vrot.lane.b32.xlu0 %v716_v54, %s4278_s14  ;;  %v1864_v2 = vsel %vm1862_vm6, %v1831_v31, %v4836_v43  ;;  %v1766_v31 = vsel %vm330_vm0, %v4665_v48, %v4746_v3 }
  0xf6   : > { %4054 = vmatprep.mubr.msk.f32.mxu0 %vm2030_vm10, %v1995_v63  ;;  %v1897_v52 = vsel %vm1895_vm5, %v1864_v2, %v1287_v34 }
  0xf7   : > { %v1543_v29 = vpop.permute.xlu1 %1542  ;;  %v1289_v11 = vpop.permute.xlu0 %1288  ;;  %v1930_v30 = vsel %vm1928_vm7, %v1897_v52, %v1415_v44  ;;  %v718_v52 = vld [vmem:[#allocation2 + $0xaa] sm:$0xff] }
  0xf8   : > { %v1963_v17 = vsel %vm1961_vm8, %v1930_v30, %v1543_v29 }
  0xf9   : > { %1178 = vrot.lane.b32.xlu1 %v4592_v36, %s4277_s29  ;;  %924 = vrot.lane.b32.xlu0 %v716_v54, %s4275_s27  ;;  %v4905_v36 = vld [vmem:[#allocation2 + $0xa8] sm:$0xff] }
  0xfb   : > { %v1163_v45 = vpop.permute.xlu1 %1162  ;;  %v4902_v63 = vpop.permute.xlu0 %908 }
  0xfd   : > { %1686 = vrot.lane.b32.xlu1 %v717_v33, %s4281_s22  ;;  %1432 = vrot.lane.b32.xlu0 %v4905_v36, %s4279_s16 }
  0xff   : > { %v1671_v41 = vpop.permute.xlu1 %1670  ;;  %v1417_v43 = vpop.permute.xlu0 %1416 }
 0x100   : > { %v1996_v54 = vsel %vm1994_vm9, %v1963_v17, %v1671_v41 }
 0x101   : > { %1306 = vrot.lane.b32.xlu1 %v717_v33, %s4278_s14  ;;  %4055 = vmatmul.mubr.msk.f32.vlgmr.msra.gmra.mrb[0].mxu0 %vm2030_vm10, %v1996_v54 }
 0x102   : > { %1052 = vrot.lane.b32.xlu0 %v4905_v36, %s4276_s28 }
 0x103   : > { %v1291_v34 = vpop.permute.xlu1 %1290  ;;  %v4918_v44 = vpop.permute.xlu0 %1036 }
 0x105   : > { %926 = vrot.lane.b32.xlu1 %v717_v33, %s4275_s27  ;;  %v1799_v33 = vsel %vm1796_vm2, %v1766_v31, %v4842_v49 }
 0x106   : > { %1560 = vrot.lane.b32.xlu0 %v4588_v35, %s4280_s24  ;;  %v1832_v30 = vsel %vm1829_vm4, %v1799_v33, %v4854_v56 }
 0x107   : > { %v4923_v29 = vpop.permute.xlu1 %910  ;;  %v1545_v62 = vpop.permute.xlu0 %1544  ;;  %v1865_v41 = vsel %vm1862_vm6, %v1832_v30, %v1161_v57  ;;  %v1767_v57 = vsel %vm330_vm0, %v4662_v47, %v4753_v5  ;;  %v4967_v47 = vld [vmem:[#allocation2 + $0xc0] sm:$0xff] }
 0x108   : > { %v1898_v54 = vsel %vm1895_vm5, %v1865_v41, %v1289_v11 }
 0x109   : > { %1434 = vrot.lane.b32.xlu1 %v4925_v53, %s4279_s16 }
 0x10a   : > { %1180 = vrot.lane.b32.xlu0 %v4588_v35, %s4277_s29  ;;  %v1931_v35 = vsel %vm1928_vm7, %v1898_v54, %v1417_v43  ;;  %v1800_v43 = vsel %vm1796_vm2, %v1767_v57, %v4860_v58 }
 0x10b   : > { %v1419_v2 = vpop.permute.xlu1 %1418  ;;  %v1165_v17 = vpop.permute.xlu0 %1164  ;;  %v1964_v3 = vsel %vm1961_vm8, %v1931_v35, %v1545_v62  ;;  %v719_v62 = vld [vmem:[#allocation2 + $0xb2] sm:$0xff]  ;;  %v1833_v31 = vsel %vm1829_vm4, %v1800_v43, %v4877_v32  ;;  %v4985_v35 = vld [vmem:[#allocation2 + $0xc8] sm:$0xff] }
 0x10c   : > { %v1866_v30 = vsel %vm1862_vm6, %v1833_v31, %v1163_v45  ;;  %v720_v43 = vld [vmem:[#allocation2 + $0xc2] sm:$0xff] }
 0x10d   : > { %1054 = vrot.lane.b32.xlu1 %v4925_v53, %s4276_s28  ;;  %v1899_v41 = vsel %vm1895_vm5, %v1866_v30, %v1291_v34 }
 0x10e   : > { %1688 = vrot.lane.b32.xlu0 %v718_v52, %s4281_s22 }
 0x10f   : > { %v4943_v48 = vpop.permute.xlu1 %1038  ;;  %v1673_v49 = vpop.permute.xlu0 %1672 }
 0x110   : > { %v1997_v56 = vsel %vm1994_vm9, %v1964_v3, %v1673_v49  ;;  %v412_v3 = vld [vmem:[%s4500_s25 + $0xd0] sm:$0xff] }
 0x111   : > { %1562 = vrot.lane.b32.xlu1 %v4600_v38, %s4280_s24  ;;  %4057 = vmatprep.mubr.msk.f32.mxu0 %vm2030_vm10, %v1997_v56  ;;  %445 = vst.msk [vmem:[#allocation2 + $0x151] sm:$0xff] %vm330_vm0, %v412_v3  ;;  %v1768_v56 = vsel %vm330_vm0, %v4676_v50, %v4748_v4 }
 0x112   : > { %1308 = vrot.lane.b32.xlu0 %v718_v52, %s4278_s14  ;;  %v1801_v57 = vsel %vm1796_vm2, %v1768_v56, %v4902_v63 }
 0x113   : > { %v1547_v46 = vpop.permute.xlu1 %1546  ;;  %v1293_v11 = vpop.permute.xlu0 %1292 }
 0x115   : > { %1182 = vrot.lane.b32.xlu1 %v4600_v38, %s4277_s29  ;;  %v1932_v38 = vsel %vm1928_vm7, %v1899_v41, %v1419_v2 }
 0x116   : > { %928 = vrot.lane.b32.xlu0 %v718_v52, %s4275_s27  ;;  %v1965_v5 = vsel %vm1961_vm8, %v1932_v38, %v1547_v46 }
 0x117   : > { %v1167_v33 = vpop.permute.xlu1 %1166  ;;  %v4964_v54 = vpop.permute.xlu0 %912 }
 0x119   : > { %1690 = vrot.lane.b32.xlu1 %v719_v62, %s4281_s22 }
 0x11a   : > { %1436 = vrot.lane.b32.xlu0 %v4967_v47, %s4279_s16 }
 0x11b   : > { %v1675_v58 = vpop.permute.xlu1 %1674  ;;  %v1421_v45 = vpop.permute.xlu0 %1420 }
 0x11c   : > { %v1998_v32 = vsel %vm1994_vm9, %v1965_v5, %v1675_v58 }
 0x11d   : > { %1310 = vrot.lane.b32.xlu1 %v719_v62, %s4278_s14  ;;  %4058 = vmatmul.mubr.msk.f32.gmra.mrb[2].mxu0 %vm2030_vm10, %v1998_v32  ;;  %v721_v32 = vld [vmem:[#allocation2 + $0xca] sm:$0xff] }
 0x11e   : > { %1056 = vrot.lane.b32.xlu0 %v4967_v47, %s4276_s28 }
 0x11f   : > { %v1295_v34 = vpop.permute.xlu1 %1294  ;;  %v4978_v52 = vpop.permute.xlu0 %1040 }
 0x121   : > { %930 = vrot.lane.b32.xlu1 %v719_v62, %s4275_s27  ;;  %v1834_v62 = vsel %vm1829_vm4, %v1801_v57, %v4918_v44 }
 0x122   : > { %1564 = vrot.lane.b32.xlu0 %v4596_v37, %s4280_s24  ;;  %v1867_v30 = vsel %vm1862_vm6, %v1834_v62, %v1165_v17  ;;  %v413_v17 = vld [vmem:[%s4500_s25 + $0xd8] sm:$0xff]  ;;  %v5049_v62 = vld [vmem:[#allocation2 + $0xe0] sm:$0xff] }
 0x123   : > { %v4983_v2 = vpop.permute.xlu1 %914  ;;  %v1549_v49 = vpop.permute.xlu0 %1548  ;;  %v1900_v50 = vsel %vm1895_vm5, %v1867_v30, %v1293_v11  ;;  %v1769_v11 = vsel %vm330_vm0, %v4691_v55, %v4762_v8  ;;  %446 = vst.msk [vmem:[#allocation2 + $0x159] sm:$0xff] %vm330_vm0, %v413_v17 }
 0x124   : > { %v1933_v4 = vsel %vm1928_vm7, %v1900_v50, %v1421_v45  ;;  %v1802_v58 = vsel %vm1796_vm2, %v1769_v11, %v4923_v29  ;;  %v1770_v50 = vsel %vm330_vm0, %v4711_v59, %v4755_v6 }
 0x125   : > { %1438 = vrot.lane.b32.xlu1 %v4985_v35, %s4279_s16  ;;  %v1966_v63 = vsel %vm1961_vm8, %v1933_v4, %v1549_v49  ;;  %v1835_v45 = vsel %vm1829_vm4, %v1802_v58, %v4943_v48 }
 0x126   : > { %1184 = vrot.lane.b32.xlu0 %v4596_v37, %s4277_s29  ;;  %v1868_v49 = vsel %vm1862_vm6, %v1835_v45, %v1167_v33  ;;  %v723_v45 = vld [vmem:[#allocation2 + $0xe2] sm:$0xff] }
 0x127   : > { %v1423_v46 = vpop.permute.xlu1 %1422  ;;  %v1169_v31 = vpop.permute.xlu0 %1168  ;;  %v1901_v55 = vsel %vm1895_vm5, %v1868_v49, %v1295_v34 }
 0x128   : > { %v1934_v56 = vsel %vm1928_vm7, %v1901_v55, %v1423_v46 }
 0x129   : > { %1058 = vrot.lane.b32.xlu1 %v4985_v35, %s4276_s28 }
 0x12a   : > { %1692 = vrot.lane.b32.xlu0 %v720_v43, %s4281_s22 }
 0x12b   : > { %v5005_v37 = vpop.permute.xlu1 %1042  ;;  %v1677_v41 = vpop.permute.xlu0 %1676 }
 0x12c   : > { %v1999_v44 = vsel %vm1994_vm9, %v1966_v63, %v1677_v41  ;;  %v1803_v63 = vsel %vm1796_vm2, %v1770_v50, %v4964_v54  ;;  %v722_v41 = vld [vmem:[#allocation2 + $0xda] sm:$0xff] }
 0x12d   : > { %1566 = vrot.lane.b32.xlu1 %v4648_v40, %s4280_s24  ;;  %4060 = vmatprep.mubr.msk.f32.mxu0 %vm2030_vm10, %v1999_v44  ;;  %v1836_v44 = vsel %vm1829_vm4, %v1803_v63, %v4978_v52 }
 0x12e   : > { %1312 = vrot.lane.b32.xlu0 %v720_v43, %s4278_s14  ;;  %v1869_v17 = vsel %vm1862_vm6, %v1836_v44, %v1169_v31  ;;  %v1771_v31 = vsel %vm330_vm0, %v4720_v60, %v4770_v10 }
 0x12f   : > { %v1551_v38 = vpop.permute.xlu1 %1550  ;;  %v1297_v5 = vpop.permute.xlu0 %1296 }
 0x130   : > { %v1967_v29 = vsel %vm1961_vm8, %v1934_v56, %v1551_v38  ;;  %v1902_v11 = vsel %vm1895_vm5, %v1869_v17, %v1297_v5 }
 0x131   : > { %1186 = vrot.lane.b32.xlu1 %v4648_v40, %s4277_s29  ;;  %v5031_v40 = vld [vmem:[#allocation2 + $0xd8] sm:$0xff] }
 0x132   : > { %932 = vrot.lane.b32.xlu0 %v720_v43, %s4275_s27 }
 0x133   : > { %v1171_v3 = vpop.permute.xlu1 %1170  ;;  %v5028_v8 = vpop.permute.xlu0 %916 }
 0x135   : > { %1694 = vrot.lane.b32.xlu1 %v721_v32, %s4281_s22 }
 0x136   : > { %1440 = vrot.lane.b32.xlu0 %v5031_v40, %s4279_s16 }
 0x137   : > { %v1679_v48 = vpop.permute.xlu1 %1678  ;;  %v1425_v43 = vpop.permute.xlu0 %1424 }
 0x138   : > { %v2000_v57 = vsel %vm1994_vm9, %v1967_v29, %v1679_v48 }
 0x139   : > { %1314 = vrot.lane.b32.xlu1 %v721_v32, %s4278_s14  ;;  %4061 = vmatmul.mubr.msk.f32.gmra.mrb[4].mxu0 %vm2030_vm10, %v2000_v57 }
 0x13a   : > { %1060 = vrot.lane.b32.xlu0 %v5031_v40, %s4276_s28 }
 0x13b   : > { %v1299_v33 = vpop.permute.xlu1 %1298  ;;  %v5042_v34 = vpop.permute.xlu0 %1044 }
 0x13d   : > { %934 = vrot.lane.b32.xlu1 %v721_v32, %s4275_s27  ;;  %v1804_v32 = vsel %vm1796_vm2, %v1771_v31, %v4983_v2 }
 0x13e   : > { %1568 = vrot.lane.b32.xlu0 %v4604_v39, %s4280_s24  ;;  %v1837_v49 = vsel %vm1829_vm4, %v1804_v32, %v5005_v37 }
 0x13f   : > { %v5047_v46 = vpop.permute.xlu1 %918  ;;  %v1553_v30 = vpop.permute.xlu0 %1552  ;;  %v1870_v56 = vsel %vm1862_vm6, %v1837_v49, %v1171_v3  ;;  %v1773_v49 = vsel %vm330_vm0, %v4758_v7, %v4777_v13  ;;  %v5159_v13 = vld [vmem:[#allocation2 + $0x129] sm:$0xff] }
 0x140   : > { %v1903_v29 = vsel %vm1895_vm5, %v1870_v56, %v1299_v33 }
 0x141   : > { %1442 = vrot.lane.b32.xlu1 %v5049_v62, %s4279_s16 }
 0x142   : > { %1188 = vrot.lane.b32.xlu0 %v4604_v39, %s4277_s29  ;;  %v1935_v39 = vsel %vm1928_vm7, %v1902_v11, %v1425_v43  ;;  %v692_v43 = vld [vmem:[#allocation2 + $0xf1] sm:$0xff] }
 0x143   : > { %v1427_v4 = vpop.permute.xlu1 %1426  ;;  %v1173_v38 = vpop.permute.xlu0 %1172  ;;  %v1968_v6 = vsel %vm1961_vm8, %v1935_v39, %v1553_v30  ;;  %v414_v30 = vld [vmem:[%s4500_s25 + $0xe0] sm:$0xff]  ;;  %v724_v11 = vld [vmem:[#allocation2 + $0xf2] sm:$0xff] }
 0x144   : > { %v1936_v60 = vsel %vm1928_vm7, %v1903_v29, %v1427_v4  ;;  %447 = vst.msk [vmem:[#allocation2 + $0x169] sm:$0xff] %vm330_vm0, %v414_v30  ;;  %v5110_v4 = vld [vmem:[#allocation2 + $0xf8] sm:$0xff]  ;;  %v1806_v29 = vsel %vm1796_vm2, %v1773_v49, %v5047_v46 }
 0x145   : > { %1062 = vrot.lane.b32.xlu1 %v5049_v62, %s4276_s28 }
 0x146   : > { %1696 = vrot.lane.b32.xlu0 %v722_v41, %s4281_s22 }
 0x147   : > { %v5067_v59 = vpop.permute.xlu1 %1046  ;;  %v1681_v54 = vpop.permute.xlu0 %1680 }
 0x148   : > { %v2001_v52 = vsel %vm1994_vm9, %v1968_v6, %v1681_v54 }
 0x149   : > { %1570 = vrot.lane.b32.xlu1 %v4654_v42, %s4280_s24  ;;  %4063 = vmatprep.mubr.msk.f32.mxu0 %vm2030_vm10, %v2001_v52  ;;  %v693_v52 = vld [vmem:[#allocation2 + $0xf9] sm:$0xff] }
 0x14a   : > { %1316 = vrot.lane.b32.xlu0 %v722_v41, %s4278_s14 }
 0x14b   : > { %v1555_v58 = vpop.permute.xlu1 %1554  ;;  %v1301_v5 = vpop.permute.xlu0 %1300 }
 0x14c   : > { %v1969_v10 = vsel %vm1961_vm8, %v1936_v60, %v1555_v58  ;;  %v415_v58 = vld [vmem:[%s4500_s25 + $0xe8] sm:$0xff]  ;;  %v1839_v60 = vsel %vm1829_vm4, %v1806_v29, %v5067_v59  ;;  %v5221_v29 = vld [vmem:[#allocation2 + $0x140] sm:$0xff] }
 0x14d   : > { %1190 = vrot.lane.b32.xlu1 %v4654_v42, %s4277_s29  ;;  %v5091_v42 = vld [vmem:[#allocation2 + $0xf0] sm:$0xff]  ;;  %448 = vst.msk [vmem:[#allocation2 + $0x171] sm:$0xff] %vm330_vm0, %v415_v58 }
 0x14e   : > { %936 = vrot.lane.b32.xlu0 %v722_v41, %s4275_s27  ;;  %v1772_v41 = vsel %vm330_vm0, %v4739_v1, %v4764_v9  ;;  %v663_v58 = vld [vmem:[#allocation2 + $0x110] sm:$0xff] }
 0x14f   : > { %v1175_v55 = vpop.permute.xlu1 %1174  ;;  %v5088_v48 = vpop.permute.xlu0 %920  ;;  %v1805_v17 = vsel %vm1796_vm2, %v1772_v41, %v5028_v8 }
 0x150   : > { %v1838_v39 = vsel %vm1829_vm4, %v1805_v17, %v5042_v34 }
 0x151   : > { %1698 = vrot.lane.b32.xlu1 %v723_v45, %s4281_s22  ;;  %v1871_v54 = vsel %vm1862_vm6, %v1838_v39, %v1173_v38  ;;  %v5137_v38 = vld [vmem:[#allocation2 + $0x121] sm:$0xff]  ;;  %v1774_v39 = vsel %vm330_vm0, %v4796_v20, %v4772_v12 }
 0x152   : > { %1444 = vrot.lane.b32.xlu0 %v5091_v42, %s4279_s16  ;;  %v1904_v1 = vsel %vm1895_vm5, %v1871_v54, %v1301_v5 }
 0x153   : > { %v1683_v2 = vpop.permute.xlu1 %1682  ;;  %v1429_v3 = vpop.permute.xlu0 %1428 }
 0x154   : > { %v2002_v37 = vsel %vm1994_vm9, %v1969_v10, %v1683_v2  ;;  %v1937_v8 = vsel %vm1928_vm7, %v1904_v1, %v1429_v3  ;;  %v1872_v2 = vsel %vm1862_vm6, %v1839_v60, %v1175_v55  ;;  %v5167_v55 = vld [vmem:[#allocation2 + $0x122] sm:$0xff]  ;;  %v5202_v1 = vld [vmem:[#allocation2 + $0x138] sm:$0xff] }
 0x155   : > { %1318 = vrot.lane.b32.xlu1 %v723_v45, %s4278_s14  ;;  %4064 = vmatmul.mubr.msk.f32.gmra.mrb[6].mxu0 %vm2030_vm10, %v2002_v37 }
 0x156   : > { %1064 = vrot.lane.b32.xlu0 %v5091_v42, %s4276_s28 }
 0x157   : > { %v1303_v57 = vpop.permute.xlu1 %1302  ;;  %v5102_v33 = vpop.permute.xlu0 %1048 }
 0x158   : > { %v1905_v37 = vsel %vm1895_vm5, %v1872_v2, %v1303_v57 }
 0x159   : > { %938 = vrot.lane.b32.xlu1 %v723_v45, %s4275_s27  ;;  %v725_v45 = vld [vmem:[#allocation2 + $0xfa] sm:$0xff] }
 0x15a   : > { %1572 = vrot.lane.b32.xlu0 %v692_v43, %s4280_s24 }
 0x15b   : > { %v5107_v50 = vpop.permute.xlu1 %922  ;;  %v1557_v63 = vpop.permute.xlu0 %1556 }
 0x15c   : > { %v1970_v34 = vsel %vm1961_vm8, %v1937_v8, %v1557_v63 }
 0x15d   : > { %1446 = vrot.lane.b32.xlu1 %v5110_v4, %s4279_s16 }
 0x15e   : > { %1192 = vrot.lane.b32.xlu0 %v692_v43, %s4277_s29 }
 0x15f   : > { %v1431_v44 = vpop.permute.xlu1 %1430  ;;  %v5122_v6 = vpop.permute.xlu0 %1176 }
 0x160   : > { %v1938_v7 = vsel %vm1928_vm7, %v1905_v37, %v1431_v44  ;;  %v473_v44 = vld [vmem:[#allocation2 + $0x108] sm:$0xff] }
 0x161   : > { %1066 = vrot.lane.b32.xlu1 %v5110_v4, %s4276_s28 }
 0x162   : > { %1700 = vrot.lane.b32.xlu0 %v724_v11, %s4281_s22 }
 0x163   : > { %v5130_v9 = vpop.permute.xlu1 %1050  ;;  %v1685_v31 = vpop.permute.xlu0 %1684 }
 0x164   : > { %v2003_v32 = vsel %vm1994_vm9, %v1970_v34, %v1685_v31 }
 0x165   : > { %1574 = vrot.lane.b32.xlu1 %v693_v52, %s4280_s24  ;;  %4066 = vmatprep.mubr.msk.f32.mxu0 %vm2030_vm10, %v2003_v32 }
 0x166   : > { %1194 = vrot.lane.b32.xlu0 %v693_v52, %s4277_s29  ;;  %v1807_v52 = vsel %vm1796_vm2, %v1774_v39, %v5088_v48  ;;  %v5248_v39 = vld [vmem:[#allocation2 + $0x141] sm:$0xff] }
 0x167   : > { %v1559_v5 = vpop.permute.xlu1 %1558  ;;  %v1305_v56 = vpop.permute.xlu0 %1304  ;;  %v1840_v12 = vsel %vm1829_vm4, %v1807_v52, %v5102_v33 }
 0x168   : > { %v1971_v46 = vsel %vm1961_vm8, %v1938_v7, %v1559_v5  ;;  %v1873_v48 = vsel %vm1862_vm6, %v1840_v12, %v5122_v6  ;;  %v694_v6 = vld [vmem:[#allocation2 + $0x109] sm:$0xff]  ;;  %v695_v7 = vld [vmem:[#allocation2 + $0x111] sm:$0xff] }
 0x169   : > { %820 = vrot.lane.b32.xlu1 %v5137_v38, %s4274_s26  ;;  %v1906_v8 = vsel %vm1895_vm5, %v1873_v48, %v1305_v56  ;;  %v1776_v48 = vsel %vm330_vm0, %v4846_v51, %v4779_v14 }
 0x16a   : > { %1702 = vrot.lane.b32.xlu0 %v725_v45, %s4281_s22 }
 0x16b   : > { %v5151_v10 = vpop.permute.xlu1 %1178  ;;  %v5155_v3 = vpop.permute.xlu0 %924 }
 0x16d   : > { %1320 = vrot.lane.b32.xlu1 %v724_v11, %s4278_s14 }
 0x16e   : > { %940 = vrot.lane.b32.xlu0 %v724_v11, %s4275_s27  ;;  %v5178_v11 = vld [vmem:[#allocation2 + $0x12a] sm:$0xff] }
 0x16f   : > { %v1687_v59 = vpop.permute.xlu1 %1686  ;;  %v1433_v30 = vpop.permute.xlu0 %1432 }
 0x170   : > { %v2004_v43 = vsel %vm1994_vm9, %v1971_v46, %v1687_v59  ;;  %v1939_v0 = vsel %vm1928_vm7, %v1906_v8, %v1433_v30  ;;  %v417_v59 = vld [vmem:[%s4500_s25 + $0xf8] sm:$0xff] }
 0x171   : > { %822 = vrot.lane.b32.xlu1 %v5159_v13, %s4274_s26  ;;  %4067 = vmatmul.mubr.msk.f32.gmra.mrb[8].mxu0 %vm2030_vm10, %v2004_v43  ;;  %450 = vst.msk [vmem:[#allocation2 + $0x189] sm:$0xff] %vm330_vm0, %v417_v59 }
 0x172   : > { %1322 = vrot.lane.b32.xlu0 %v725_v45, %s4278_s14 }
 0x173   : > { %v1307_v57 = vpop.permute.xlu1 %1306 }
 0x174   : > { %v5170_v63 = vpop.permute.xlu0 %1052 }
 0x175   : > { %948 = vrot.lane.b32.xlu1 %v5167_v55, %s4275_s27 }
 0x176   : > { %942 = vrot.lane.b32.xlu0 %v725_v45, %s4275_s27  ;;  %v1775_v45 = vsel %vm330_vm0, %v4816_v26, %v4784_v15  ;;  %v416_v15 = vld [vmem:[%s4500_s25 + $0xf0] sm:$0xff]  ;;  %s4284_s25 = smov 28  }
 0x177   : > { %v5175_v41 = vpop.permute.xlu1 %926  ;;  %v1808_v56 = vsel %vm1796_vm2, %v1775_v45, %v5107_v50  ;;  %449 = vst.msk [vmem:[#allocation2 + $0x181] sm:$0xff] %vm330_vm0, %v416_v15 }
 0x178   : > { %v1561_v17 = vpop.permute.xlu0 %1560  ;;  %v1841_v60 = vsel %vm1829_vm4, %v1808_v56, %v5130_v9  ;;  %v5236_v9 = vld [vmem:[#allocation2 + $0x139] sm:$0xff] }
 0x179   : > { %1448 = vrot.lane.b32.xlu1 %v473_v44, %s4279_s16  ;;  %v1972_v31 = vsel %vm1961_vm8, %v1939_v0, %v1561_v17  ;;  %v1874_v37 = vsel %vm1862_vm6, %v1841_v60, %v5151_v10  ;;  %v1809_v0 = vsel %vm1796_vm2, %v1776_v48, %v5155_v3  ;;  %v1778_v48 = vsel %vm330_vm0, %v4905_v36, %v4786_v16 }
 0x17a   : > { %1068 = vrot.lane.b32.xlu0 %v473_v44, %s4276_s28  ;;  %v1907_v26 = vsel %vm1895_vm5, %v1874_v37, %v1307_v57  ;;  %v726_v44 = vld [vmem:[#allocation2 + $0x10a] sm:$0xff] }
 0x17b   : > { %v1435_v54 = vpop.permute.xlu1 %1434 }
 0x17c   : > { %v1181_v20 = vpop.permute.xlu0 %1180  ;;  %v1940_v50 = vsel %vm1928_vm7, %v1907_v26, %v1435_v54  ;;  %v5292_v26 = vld [vmem:[#allocation2 + $0x120] sm:$0xff] }
 0x17d   : > { %950 = vrot.lane.b32.xlu1 %v5178_v11, %s4275_s27 }
 0x17e   : > { %1450 = vrot.lane.b32.xlu0 %v663_v58, %s4279_s16 }
 0x17f   : > { %v5206_v34 = vpop.permute.xlu1 %1054 }
 0x180   : > { %v1689_v33 = vpop.permute.xlu0 %1688 }
 0x181   : > { %1076 = vrot.lane.b32.xlu1 %v5202_v1, %s4276_s28  ;;  %v2005_v32 = vsel %vm1994_vm9, %v1972_v31, %v1689_v33  ;;  %v1842_v31 = vsel %vm1829_vm4, %v1809_v0, %v5170_v63 }
 0x182   : > { %1070 = vrot.lane.b32.xlu0 %v663_v58, %s4276_s28  ;;  %4069 = vmatprep.mubr.msk.f32.mxu0 %vm2030_vm10, %v2005_v32  ;;  %v5257_v58 = vld [vmem:[#allocation2 + $0x13a] sm:$0xff]  ;;  %v1875_v32 = vsel %vm1862_vm6, %v1842_v31, %v1181_v20  ;;  %v1777_v20 = vsel %vm330_vm0, %v4862_v61, %v4791_v18 }
 0x183   : > { %v1563_v5 = vpop.permute.xlu1 %1562  ;;  %v1810_v60 = vsel %vm1796_vm2, %v1777_v20, %v5175_v41  ;;  %v5300_v41 = vld [vmem:[#allocation2 + $0x142] sm:$0xff] }
 0x184   : > { %v1309_v49 = vpop.permute.xlu0 %1308  ;;  %v1973_v43 = vsel %vm1961_vm8, %v1940_v50, %v1563_v5  ;;  %v1843_v37 = vsel %vm1829_vm4, %v1810_v60, %v5206_v34 }
 0x185   : > { %1576 = vrot.lane.b32.xlu1 %v694_v6, %s4280_s24  ;;  %v1908_v5 = vsel %vm1895_vm5, %v1875_v32, %v1309_v49 }
 0x186   : > { %1196 = vrot.lane.b32.xlu0 %v694_v6, %s4277_s29  ;;  %v727_v6 = vld [vmem:[#allocation2 + $0x112] sm:$0xff] }
 0x187   : > { %v1183_v2 = vpop.permute.xlu1 %1182 }
 0x188   : > { %v5230_v46 = vpop.permute.xlu0 %928  ;;  %v1876_v15 = vsel %vm1862_vm6, %v1843_v37, %v1183_v2 }
 0x189   : > { %1078 = vrot.lane.b32.xlu1 %v5221_v29, %s4276_s28  ;;  %v1811_v0 = vsel %vm1796_vm2, %v1778_v48, %v5230_v46 }
 0x18a   : > { %1578 = vrot.lane.b32.xlu0 %v695_v7, %s4280_s24 }
 0x18b   : > { %v1691_v10 = vpop.permute.xlu1 %1690 }
 0x18c   : > { %v2006_v30 = vsel %vm1994_vm9, %v1973_v43, %v1691_v10  ;;  %v1437_v57 = vpop.permute.xlu0 %1436  ;;  %v5309_v10 = vld [vmem:[#allocation2 + $0x150] sm:$0xff] }
 0x18d   : > { %1204 = vrot.lane.b32.xlu1 %v5236_v9, %s4277_s29  ;;  %4070 = vmatmul.mubr.msk.f32.gmra.mrb[10].mxu0 %vm2030_vm10, %v2006_v30  ;;  %v1941_v51 = vsel %vm1928_vm7, %v1908_v5, %v1437_v57  ;;  %v5334_v5 = vld [vmem:[#allocation2 + $0x158] sm:$0xff] }
 0x18e   : > { %824 = vrot.lane.b32.xlu0 %v5236_v9, %s4274_s26 }
 0x18f   : > { %v1311_v17 = vpop.permute.xlu1 %1310 }
 0x190   : > { %v5250_v54 = vpop.permute.xlu0 %1056  ;;  %v1909_v50 = vsel %vm1895_vm5, %v1876_v15, %v1311_v17  ;;  %v5318_v17 = vld [vmem:[#allocation2 + $0x128] sm:$0xff] }
 0x191   : > { %1704 = vrot.lane.b32.xlu1 %v726_v44, %s4281_s22  ;;  %v1844_v31 = vsel %vm1829_vm4, %v1811_v0, %v5250_v54 }
 0x192   : > { %1206 = vrot.lane.b32.xlu0 %v5248_v39, %s4277_s29 }
 0x193   : > { %v5255_v52 = vpop.permute.xlu1 %930 }
 0x194   : > { %v1565_v12 = vpop.permute.xlu0 %1564 }
 0x195   : > { %1198 = vrot.lane.b32.xlu1 %v695_v7, %s4277_s29  ;;  %v1974_v45 = vsel %vm1961_vm8, %v1941_v51, %v1565_v12 }
 0x196   : > { %1332 = vrot.lane.b32.xlu0 %v5257_v58, %s4278_s14 }
 0x197   : > { %v1439_v8 = vpop.permute.xlu1 %1438 }
 0x198   : > { %v1185_v33 = vpop.permute.xlu0 %1184  ;;  %v1942_v61 = vsel %vm1928_vm7, %v1909_v50, %v1439_v8 }
 0x199   : > { %1324 = vrot.lane.b32.xlu1 %v726_v44, %s4278_s14 }
 0x19a   : > { %818 = vrot.lane.b32.xlu0 %v695_v7, %s4274_s26 }
 0x19b   : > { %v5273_v14 = vpop.permute.xlu1 %1058 }
 0x19c   : > { %v1693_v3 = vpop.permute.xlu0 %1692 }
 0x19d   : > { %1706 = vrot.lane.b32.xlu1 %v727_v6, %s4281_s22  ;;  %v2007_v63 = vsel %vm1994_vm9, %v1974_v45, %v1693_v3 }
 0x19e   : > { %944 = vrot.lane.b32.xlu0 %v726_v44, %s4275_s27  ;;  %4072 = vmatprep.mubr.msk.f32.mxu0 %vm2030_vm10, %v2007_v63  ;;  %v1779_v63 = vsel %vm330_vm0, %v4925_v53, %v4800_v21 }
 0x19f   : > { %v1567_v56 = vpop.permute.xlu1 %1566  ;;  %v1812_v20 = vsel %vm1796_vm2, %v1779_v63, %v5255_v52 }
 0x1a0   : > { %v1313_v49 = vpop.permute.xlu0 %1312  ;;  %v1975_v34 = vsel %vm1961_vm8, %v1942_v61, %v1567_v56 }
 0x1a1   : > { %826 = vrot.lane.b32.xlu1 %v5248_v39, %s4274_s26 }
 0x1a2   : > { %1326 = vrot.lane.b32.xlu0 %v727_v6, %s4278_s14 }
 0x1a3   : > { %v1187_v7 = vpop.permute.xlu1 %1186 }
 0x1a4   : > { %v5295_v18 = vpop.permute.xlu0 %932 }
 0x1a5   : > { %952 = vrot.lane.b32.xlu1 %v5257_v58, %s4275_s27 }
 0x1a6   : > { %1452 = vrot.lane.b32.xlu0 %v5292_v26, %s4279_s16 }
 0x1a7   : > { %v1695_v59 = vpop.permute.xlu1 %1694 }
 0x1a8   : > { %v2008_v2 = vsel %vm1994_vm9, %v1975_v34, %v1695_v59  ;;  %v1441_v43 = vpop.permute.xlu0 %1440  ;;  %v732_v59 = vld [vmem:[#allocation2 + $0x152] sm:$0xff] }
 0x1a9   : > { %1334 = vrot.lane.b32.xlu1 %v5300_v41, %s4278_s14  ;;  %4073 = vmatmul.mubr.msk.f32.gmra.mrb[12].mxu0 %vm2030_vm10, %v2008_v2 }
 0x1aa   : > { %946 = vrot.lane.b32.xlu0 %v727_v6, %s4275_s27  ;;  %v1877_v6 = vsel %vm1862_vm6, %v1844_v31, %v1185_v33  ;;  %v700_v33 = vld [vmem:[#allocation2 + $0x151] sm:$0xff] }
 0x1ab   : > { %v1315_v30 = vpop.permute.xlu1 %1314  ;;  %v1910_v16 = vsel %vm1895_vm5, %v1877_v6, %v1313_v49  ;;  %v1845_v49 = vsel %vm1829_vm4, %v1812_v20, %v5273_v14 }
 0x1ac   : > { %v1061_v57 = vpop.permute.xlu0 %1060  ;;  %v1943_v46 = vsel %vm1928_vm7, %v1910_v16, %v1441_v43  ;;  %v1878_v37 = vsel %vm1862_vm6, %v1845_v49, %v1187_v7  ;;  %v701_v7 = vld [vmem:[#allocation2 + $0x159] sm:$0xff]  ;;  %v5428_v49 = vld [vmem:[#allocation2 + $0x168] sm:$0xff] }
 0x1ad   : > { %1460 = vrot.lane.b32.xlu1 %v5309_v10, %s4279_s16  ;;  %v1911_v15 = vsel %vm1895_vm5, %v1878_v37, %v1315_v30  ;;  %v1780_v30 = vsel %vm330_vm0, %v4967_v47, %v4793_v19 }
 0x1ae   : > { %1072 = vrot.lane.b32.xlu0 %v5292_v26, %s4276_s28  ;;  %v1813_v48 = vsel %vm1796_vm2, %v1780_v30, %v5295_v18 }
 0x1af   : > { %v5316_v44 = vpop.permute.xlu1 %934 }
 0x1b0   : > { %v1569_v12 = vpop.permute.xlu0 %1568 }
 0x1b1   : > { %954 = vrot.lane.b32.xlu1 %v5300_v41, %s4275_s27  ;;  %v1976_v51 = vsel %vm1961_vm8, %v1943_v46, %v1569_v12  ;;  %v733_v46 = vld [vmem:[#allocation2 + $0x15a] sm:$0xff] }
 0x1b2   : > { %1454 = vrot.lane.b32.xlu0 %v5318_v17, %s4279_s16 }
 0x1b3   : > { %v1443_v8 = vpop.permute.xlu1 %1442 }
 0x1b4   : > { %v1189_v32 = vpop.permute.xlu0 %1188  ;;  %v1944_v21 = vsel %vm1928_vm7, %v1911_v15, %v1443_v8  ;;  %v1846_v8 = vsel %vm1829_vm4, %v1813_v48, %v1061_v57 }
 0x1b5   : > { %1080 = vrot.lane.b32.xlu1 %v5309_v10, %s4276_s28  ;;  %v1879_v31 = vsel %vm1862_vm6, %v1846_v8, %v1189_v32  ;;  %v1781_v32 = vsel %vm330_vm0, %v4985_v35, %v4807_v23 }
 0x1b6   : > { %1580 = vrot.lane.b32.xlu0 %v5137_v38, %s4280_s24 }
 0x1b7   : > { %v5339_v36 = vpop.permute.xlu1 %1062 }
 0x1b8   : > { %v1697_v54 = vpop.permute.xlu0 %1696 }
 0x1b9   : > { %1462 = vrot.lane.b32.xlu1 %v5334_v5, %s4279_s16  ;;  %v2009_v45 = vsel %vm1994_vm9, %v1976_v51, %v1697_v54 }
 0x1ba   : > { %1074 = vrot.lane.b32.xlu0 %v5318_v17, %s4276_s28  ;;  %4075 = vmatprep.mubr.msk.f32.mxu0 %vm2030_vm10, %v2009_v45  ;;  %v1814_v45 = vsel %vm1796_vm2, %v1781_v32, %v5316_v44 }
 0x1bb   : > { %v1571_v3 = vpop.permute.xlu1 %1570 }
 0x1bc   : > { %v1317_v56 = vpop.permute.xlu0 %1316  ;;  %v1977_v53 = vsel %vm1961_vm8, %v1944_v21, %v1571_v3 }
 0x1bd   : > { %1588 = vrot.lane.b32.xlu1 %v700_v33, %s4280_s24  ;;  %v1912_v6 = vsel %vm1895_vm5, %v1879_v31, %v1317_v56 }
 0x1be   : > { %1200 = vrot.lane.b32.xlu0 %v5137_v38, %s4277_s29 }
 0x1bf   : > { %v1191_v60 = vpop.permute.xlu1 %1190 }
 0x1c0   : > { %v5361_v50 = vpop.permute.xlu0 %936 }
 0x1c1   : > { %1082 = vrot.lane.b32.xlu1 %v5334_v5, %s4276_s28 }
 0x1c2   : > { %1582 = vrot.lane.b32.xlu0 %v5159_v13, %s4280_s24 }
 0x1c3   : > { %v1699_v52 = vpop.permute.xlu1 %1698 }
 0x1c4   : > { %v2010_v38 = vsel %vm1994_vm9, %v1977_v53, %v1699_v52  ;;  %v1445_v14 = vpop.permute.xlu0 %1444  ;;  %v5446_v53 = vld [vmem:[#allocation2 + $0x170] sm:$0xff] }
 0x1c5   : > { %1208 = vrot.lane.b32.xlu1 %v700_v33, %s4277_s29  ;;  %4076 = vmatmul.mubr.msk.f32.gmra.mrb[14].mxu0 %vm2030_vm10, %v2010_v38  ;;  %v1945_v47 = vsel %vm1928_vm7, %v1912_v6, %v1445_v14  ;;  %6610 = vst [vmem:[#allocation7_spill] sm:$0xff] %v5446_v53  ;;  %v702_v14 = vld [vmem:[#allocation2 + $0x169] sm:$0xff] }
 0x1c6   : > { %1708 = vrot.lane.b32.xlu0 %v5167_v55, %s4281_s22 }
 0x1c7   : > { %v1319_v61 = vpop.permute.xlu1 %1318 }
 0x1c8   : > { %v5374_v34 = vpop.permute.xlu0 %1064 }
 0x1c9   : > { %1590 = vrot.lane.b32.xlu1 %v701_v7, %s4280_s24 }
 0x1ca   : > { %828 = vrot.lane.b32.xlu0 %v700_v33, %s4274_s26  ;;  %v1847_v33 = vsel %vm1829_vm4, %v1814_v45, %v5339_v36 }
 0x1cb   : > { %v5378_v2 = vpop.permute.xlu1 %938 }
 0x1cc   : > { %v1573_v43 = vpop.permute.xlu0 %1572 }
 0x1cd   : > { %1716 = vrot.lane.b32.xlu1 %v732_v59, %s4281_s22  ;;  %v1978_v18 = vsel %vm1961_vm8, %v1945_v47, %v1573_v43 }
 0x1ce   : > { %1210 = vrot.lane.b32.xlu0 %v701_v7, %s4277_s29 }
 0x1cf   : > { %v1447_v12 = vpop.permute.xlu1 %1446 }
 0x1d0   : > { %v5388_v0 = vpop.permute.xlu0 %1192 }
 0x1d1   : > { %1202 = vrot.lane.b32.xlu1 %v5159_v13, %s4277_s29 }
 0x1d2   : > { %1336 = vrot.lane.b32.xlu0 %v732_v59, %s4278_s14 }
 0x1d3   : > { %v5395_v19 = vpop.permute.xlu1 %1066 }
 0x1d4   : > { %v4056_v16 = vpop.f32.mrb[0].mxu0  ;;  %v1701_v57 = vpop.permute.xlu0 %1700 }
 0x1d5   : > { %v2197_v51 = vpop.f32.mrb[1].mxu0  ;;  %1328 = vrot.lane.b32.xlu1 %v5167_v55, %s4278_s14  ;;  %v2011_v13 = vsel %vm1994_vm9, %v1978_v18, %v1701_v57  ;;  %v1880_v55 = vsel %vm1862_vm6, %v1847_v33, %v1191_v60  ;;  %v703_v57 = vld [vmem:[#allocation2 + $0x171] sm:$0xff] }
 0x1d6   : > { %1718 = vrot.lane.b32.xlu0 %v733_v46, %s4281_s22  ;;  %4078 = vmatprep.mubr.msk.f32.mxu0 %vm2030_vm10, %v2011_v13  ;;  %v1913_v23 = vsel %vm1895_vm5, %v1880_v55, %v1319_v61 }
 0x1d7   : > { %v1575_v54 = vpop.permute.xlu1 %1574  ;;  %v1946_v63 = vsel %vm1928_vm7, %v1913_v23, %v1447_v12  ;;  %v734_v23 = vld [vmem:[#allocation2 + $0x16a] sm:$0xff] }
 0x1d8   : > { %v5411_v3 = vpop.permute.xlu0 %1194  ;;  %v1979_v44 = vsel %vm1961_vm8, %v1946_v63, %v1575_v54 }
 0x1d9   : > { %1710 = vrot.lane.b32.xlu1 %v5178_v11, %s4281_s22 }
 0x1da   : > { %956 = vrot.lane.b32.xlu0 %v732_v59, %s4275_s27  ;;  %v5466_v59 = vld [vmem:[%s6600_s3] ss:$0 sm:$0xff] }
 0x1db   : > { %v5418_v35 = vpop.permute.xlu1 %820 }
 0x1dc   : > { %v1703_v56 = vpop.permute.xlu0 %1702 }
 0x1dd   : > { %830 = vrot.lane.b32.xlu1 %v701_v7, %s4274_s26  ;;  %v2012_v36 = vsel %vm1994_vm9, %v1979_v44, %v1703_v56 }
 0x1de   : > { %1338 = vrot.lane.b32.xlu0 %v733_v46, %s4278_s14  ;;  %4079 = vmatmul.mubr.msk.f32.gmra.mrb[16].mxu0 %vm2030_vm10, %v2012_v36 }
 0x1df   : > { %v5425_v20 = vpop.permute.xlu1 %1320 }
 0x1e0   : > { %v5430_v60 = vpop.permute.xlu0 %940 }
 0x1e1   : > { %1330 = vrot.lane.b32.xlu1 %v5178_v11, %s4278_s14  ;;  %v5454_v11 = vld [vmem:[%s6599_s2] ss:$0 sm:$0xff] }
 0x1e2   : > { %1464 = vrot.lane.b32.xlu0 %v5428_v49, %s4279_s16  ;;  %v2364_v7 = vmul.f32 %v4056_v16, %v5454_v11  ;;  %v2363_v43 = vmul.f32 %v5454_v11, %v2197_v51 }
 0x1e3   : > { %v5436_v37 = vpop.permute.xlu1 %822 }
 0x1e4   : > { %v5438_v15 = vpop.permute.xlu0 %1322  ;;  %v2403_v48 = vadd.f32 %v5466_v59, %v2364_v7  ;;  %v2402_v6 = vadd.f32 %v5466_v59, %v2363_v43 }
 0x1e5   : > { %1456 = vrot.lane.b32.xlu1 %v5202_v1, %s4279_s16 }
 0x1e6   : > { %1084 = vrot.lane.b32.xlu0 %v5428_v49, %s4276_s28  ;;  %v2435_v51 = vmax.f32 %v2403_v48, 0.0 }
 0x1e7   : > { %v5444_v21 = vpop.permute.xlu1 %948 }
 0x1e8   : > { %v5448_v52 = vpop.permute.xlu0 %942 }
 0x1e9   : > { %958 = vrot.lane.b32.xlu1 %v733_v46, %s4275_s27 }
 0x1ea   : > { %1466 = vrot.lane.b32.xlu0 %v5446_v53, %s4279_s16 }
 0x1eb   : > { %v1449_v38 = vpop.permute.xlu1 %1448 }
 0x1ec   : > { %v5459_v61 = vpop.permute.xlu0 %1068 }
 0x1ed   : > { %1458 = vrot.lane.b32.xlu1 %v5221_v29, %s4279_s16 }
 0x1ee   : > { %1592 = vrot.lane.b32.xlu0 %v702_v14, %s4280_s24 }
 0x1ef   : > { %v5470_v30 = vpop.permute.xlu1 %950 }
 0x1f0   : > { %v4059_v12 = vpop.f32.mrb[2].mxu0  ;;  %v5474_v31 = vpop.permute.xlu0 %1450 }
 0x1f1   : > { %v2366_v8 = vmul.f32 %v4059_v12, %v5454_v11  ;;  %1584 = vrot.lane.b32.xlu1 %v5236_v9, %s4280_s24  ;;  %v2207_v29 = vpop.f32.mrb[3].mxu0  ;;  %v2434_v9 = vmax.f32 %v2402_v6, 0.0  ;;  %v1782_v12 = vsel %vm330_vm0, %v5031_v40, %v4802_v22 }
 0x1f2   : > { %v2365_v47 = vmul.f32 %v5454_v11, %v2207_v29  ;;  %1212 = vrot.lane.b32.xlu0 %v702_v14, %s4277_s29 }
 0x1f3   : > { %v2405_v16 = vadd.f32 %v5466_v59, %v2366_v8  ;;  %v5482_v46 = vpop.permute.xlu1 %1076 }
 0x1f4   : > { %v2404_v18 = vadd.f32 %v5466_v59, %v2365_v47  ;;  %v5485_v32 = vpop.permute.xlu0 %1070 }
 0x1f5   : > { %v2437_v13 = vmax.f32 %v2405_v16, 0.0  ;;  %1086 = vrot.lane.b32.xlu1 %v5446_v53, %s4276_s28 }
 0x1f6   : > { %v2436_v54 = vmax.f32 %v2404_v18, 0.0  ;;  %1594 = vrot.lane.b32.xlu0 %v703_v57, %s4280_s24 }
 0x1f7   : > { %v2467_v45 = vmax.f32 %v2435_v51, %v2437_v13  ;;  %v1577_v33 = vpop.permute.xlu1 %1576 }
 0x1f8   : > { %v2466_v55 = vmax.f32 %v2434_v9, %v2436_v54  ;;  %v5490_v44 = vpop.permute.xlu0 %1196 }
 0x1f9   : > { %v2500_v63 = vrot.slane %v2467_v45, 1  ;;  %1586 = vrot.lane.b32.xlu1 %v5248_v39, %s4280_s24  ;;  %v1815_v39 = vsel %vm1796_vm2, %v1782_v12, %v5361_v50 }
 0x1fa   : > { %v2499_v56 = vrot.slane %v2466_v55, 1  ;;  %1720 = vrot.lane.b32.xlu0 %v734_v23, %s4281_s22  ;;  %v1848_v29 = vsel %vm1829_vm4, %v1815_v39, %v5374_v34 }
 0x1fb   : > { %v2540_v36 = vmax.f32 %v2467_v45, %v2500_v63  ;;  %v5495_v7 = vpop.permute.xlu1 %1078  ;;  %v1881_v22 = vsel %vm1862_vm6, %v1848_v29, %v5388_v0  ;;  %v735_v0 = vld [vmem:[#allocation2 + $0x172] sm:$0xff]  ;;  %v737_v29 = vld [vmem:[#allocation2 + $0x18a] sm:$0xff] }
 0x1fc   : > { %v2501_v43 = vsel %vm2498_vm12, %v2499_v56, %v2500_v63  ;;  %v1579_v8 = vpop.permute.xlu0 %1578  ;;  %v1914_v40 = vsel %vm1895_vm5, %v1881_v22, %v5425_v20 }
 0x1fd   : > { %2589 = vst.msk [vmem:[#allocation3 + $0x22] sm:$0x7f] %vm2588_vm13, %v2540_v36  ;;  %v2539_v48 = vmax.f32 %v2466_v55, %v2501_v43  ;;  %1712 = vrot.lane.b32.xlu1 %v5257_v58, %s4281_s22  ;;  %v1947_v58 = vsel %vm1928_vm7, %v1914_v40, %v1449_v38  ;;  %v1783_v38 = vsel %vm330_vm0, %v5049_v62, %v4814_v25  ;;  %v673_v55 = vld [vmem:[#allocation2 + $0x188] sm:$0xff] }
 0x1fe   : > { %1214 = vrot.lane.b32.xlu0 %v703_v57, %s4277_s29  ;;  %v1980_v50 = vsel %vm1961_vm8, %v1947_v58, %v1577_v33  ;;  %v705_v36 = vld [vmem:[#allocation2 + $0x189] sm:$0xff]  ;;  %v674_v58 = vld [vmem:[#allocation2 + $0x198] sm:$0xff] }
 0x1ff   : > { %2587 = vst.msk [vmem:[#allocation3 + $0x1a] sm:$0xff] %vm1796_vm2, %v2539_v48  ;;  %v5510_v6 = vpop.permute.xlu1 %1204 }
 0x200   : > { %v5516_v47 = vpop.permute.xlu0 %824 }
 0x201   : > { %832 = vrot.lane.b32.xlu1 %v702_v14, %s4274_s26 }
 0x202   : > { %1714 = vrot.lane.b32.xlu0 %v5300_v41, %s4281_s22  ;;  %v1816_v41 = vsel %vm1796_vm2, %v1783_v38, %v5378_v2 }
 0x203   : > { %v1705_v34 = vpop.permute.xlu1 %1704  ;;  %v1849_v51 = vsel %vm1829_vm4, %v1816_v41, %v5395_v19  ;;  %v672_v19 = vld [vmem:[#allocation2 + $0x180] sm:$0xff] }
 0x204   : > { %v2013_v16 = vsel %vm1994_vm9, %v1980_v50, %v1705_v34  ;;  %v5524_v18 = vpop.permute.xlu0 %1206  ;;  %v706_v41 = vld [vmem:[#allocation2 + $0x199] sm:$0xff] }
 0x205   : > { %1340 = vrot.lane.b32.xlu1 %v734_v23, %s4278_s14  ;;  %4081 = vmatprep.mubr.msk.f32.mxu0 %vm2030_vm10, %v2013_v16 }
 0x206   : > { %834 = vrot.lane.b32.xlu0 %v703_v57, %s4274_s26  ;;  %v1882_v57 = vsel %vm1862_vm6, %v1849_v51, %v5411_v3  ;;  %s4282_s26 = smov 20  }
 0x207   : > { %v5529_v20 = vpop.permute.xlu1 %1198  ;;  %v1915_v25 = vsel %vm1895_vm5, %v1882_v57, %v5438_v15 }
 0x208   : > { %v5534_v14 = vpop.permute.xlu0 %1332  ;;  %v1948_v2 = vsel %vm1928_vm7, %v1915_v25, %v5474_v31 }
 0x209   : > { %1722 = vrot.lane.b32.xlu1 %v735_v0, %s4281_s22  ;;  %v1981_v45 = vsel %vm1961_vm8, %v1948_v2, %v1579_v8  ;;  %v736_v8 = vld [vmem:[#allocation2 + $0x182] sm:$0xff] }
 0x20a   : > { %1342 = vrot.lane.b32.xlu0 %v735_v0, %s4278_s14 }
 0x20b   : > { %v5542_v13 = vpop.permute.xlu1 %1324 }
 0x20c   : > { %v4062_v9 = vpop.f32.mrb[4].mxu0  ;;  %v5548_v62 = vpop.permute.xlu0 %818 }
 0x20d   : > { %960 = vrot.lane.b32.xlu1 %v734_v23, %s4275_s27  ;;  %v2217_v54 = vpop.f32.mrb[5].mxu0  ;;  %v704_v23 = vld [vmem:[#allocation2 + $0x181] sm:$0xff]  ;;  %v2368_v50 = vmul.f32 %v4062_v9, %v5454_v11 }
 0x20e   : > { %962 = vrot.lane.b32.xlu0 %v735_v0, %s4275_s27  ;;  %v2367_v16 = vmul.f32 %v5454_v11, %v2217_v54 }
 0x20f   : > { %v1707_v33 = vpop.permute.xlu1 %1706  ;;  %v2407_v51 = vadd.f32 %v5466_v59, %v2368_v50  ;;  %v707_v50 = vld [vmem:[#allocation2 + $0x1a1] sm:$0xff] }
 0x210   : > { %v2014_v3 = vsel %vm1994_vm9, %v1981_v45, %v1707_v33  ;;  %v5556_v63 = vpop.permute.xlu0 %944  ;;  %v2406_v2 = vadd.f32 %v5466_v59, %v2367_v16  ;;  %v675_v45 = vld [vmem:[#allocation2 + $0x1a0] sm:$0xff] }
 0x211   : > { %1468 = vrot.lane.b32.xlu1 %v672_v19, %s4279_s16  ;;  %4082 = vmatmul.mubr.msk.f32.gmra.mrb[18].mxu0 %vm2030_vm10, %v2014_v3 }
 0x212   : > { %1470 = vrot.lane.b32.xlu0 %v673_v55, %s4279_s16 }
 0x213   : > { %v5561_v15 = vpop.permute.xlu1 %826 }
 0x214   : > { %v5563_v31 = vpop.permute.xlu0 %1326 }
 0x215   : > { %1088 = vrot.lane.b32.xlu1 %v672_v19, %s4276_s28 }
 0x216   : > { %1090 = vrot.lane.b32.xlu0 %v673_v55, %s4276_s28  ;;  %v738_v55 = vld [vmem:[#allocation2 + $0x19a] sm:$0xff]  ;;  %s4283_s28 = smov 24  }
 0x217   : > { %v5567_v56 = vpop.permute.xlu1 %952 }
 0x218   : > { %v5569_v43 = vpop.permute.xlu0 %1452 }
 0x219   : > { %1596 = vrot.lane.b32.xlu1 %v704_v23, %s4280_s24 }
 0x21a   : > { %1598 = vrot.lane.b32.xlu0 %v705_v36, %s4280_s24 }
 0x21b   : > { %v5573_v12 = vpop.permute.xlu1 %1334 }
 0x21c   : > { %v5575_v48 = vpop.permute.xlu0 %946 }
 0x21d   : > { %1216 = vrot.lane.b32.xlu1 %v704_v23, %s4277_s29  ;;  %v2439_v23 = vmax.f32 %v2407_v51, 0.0 }
 0x21e   : > { %1218 = vrot.lane.b32.xlu0 %v705_v36, %s4277_s29 }
 0x21f   : > { %v5579_v39 = vpop.permute.xlu1 %1460 }
 0x220   : > { %v5581_v22 = vpop.permute.xlu0 %1072 }
 0x221   : > { %1724 = vrot.lane.b32.xlu1 %v736_v8, %s4281_s22 }
 0x222   : > { %1726 = vrot.lane.b32.xlu0 %v737_v29, %s4281_s22 }
 0x223   : > { %v5585_v40 = vpop.permute.xlu1 %954 }
 0x224   : > { %v5588_v34 = vpop.permute.xlu0 %1454 }
 0x225   : > { %1344 = vrot.lane.b32.xlu1 %v736_v8, %s4278_s14 }
 0x226   : > { %1472 = vrot.lane.b32.xlu0 %v674_v58, %s4279_s16 }
 0x227   : > { %v5593_v0 = vpop.permute.xlu1 %1080 }
 0x228   : > { %v4065_v38 = vpop.f32.mrb[6].mxu0  ;;  %v1581_v25 = vpop.permute.xlu0 %1580 }
 0x229   : > { %v2370_v57 = vmul.f32 %v4065_v38, %v5454_v11  ;;  %1346 = vrot.lane.b32.xlu1 %v737_v29, %s4278_s14  ;;  %v2227_v9 = vpop.f32.mrb[7].mxu0  ;;  %v2438_v29 = vmax.f32 %v2406_v2, 0.0 }
 0x22a   : > { %v2369_v19 = vmul.f32 %v5454_v11, %v2227_v9  ;;  %1600 = vrot.lane.b32.xlu0 %v706_v41, %s4280_s24  ;;  %v2620_v41 = vld [vmem:[#allocation3 + $0x2] sm:$0xff] }
 0x22b   : > { %v2409_v54 = vadd.f32 %v5466_v59, %v2370_v57  ;;  %v5602_v33 = vpop.permute.xlu1 %1462 }
 0x22c   : > { %v2408_v3 = vadd.f32 %v5466_v59, %v2369_v19  ;;  %v5605_v8 = vpop.permute.xlu0 %1074  ;;  %v739_v19 = vld [vmem:[#allocation2 + $0x1a2] sm:$0xff] }
 0x22d   : > { %v2441_v36 = vmax.f32 %v2409_v54, 0.0  ;;  %1474 = vrot.lane.b32.xlu1 %v675_v45, %s4279_s16  ;;  %v1784_v45 = vsel %vm330_vm0, %v5091_v42, %v4809_v24  ;;  %v2621_v42 = vld [vmem:[#allocation3 + $0xa] sm:$0xff] }
 0x22e   : > { %v2440_v58 = vmax.f32 %v2408_v3, 0.0  ;;  %1728 = vrot.lane.b32.xlu0 %v738_v55, %s4281_s22  ;;  %v1817_v3 = vsel %vm1796_vm2, %v1784_v45, %v5430_v60 }
 0x22f   : > { %v2469_v16 = vmax.f32 %v2439_v23, %v2441_v36  ;;  %v1589_v38 = vpop.permute.xlu1 %1588  ;;  %v2636_v23 = vld [vmem:[#allocation3 + $0x4] sm:$0xff]  ;;  %v1850_v36 = vsel %vm1829_vm4, %v1817_v3, %v5459_v61 }
 0x230   : > { %v2468_v57 = vmax.f32 %v2438_v29, %v2440_v58  ;;  %v5609_v53 = vpop.permute.xlu0 %1200  ;;  %v1883_v24 = vsel %vm1862_vm6, %v1850_v36, %v5490_v44 }
 0x231   : > { %v2503_v9 = vrot.slane %v2469_v16, 1  ;;  %1602 = vrot.lane.b32.xlu1 %v707_v50, %s4280_s24  ;;  %v1916_v60 = vsel %vm1895_vm5, %v1883_v24, %v5542_v13 }
 0x232   : > { %v2502_v51 = vrot.slane %v2468_v57, 1  ;;  %2765 = vrot.lane.b32.xlu0 %v2620_v41, %s4275_s27  ;;  %v1949_v61 = vsel %vm1928_vm7, %v1916_v60, %v5569_v43 }
 0x233   : > { %v2542_v2 = vmax.f32 %v2469_v16, %v2503_v9  ;;  %v5616_v54 = vpop.permute.xlu1 %1082  ;;  %v1788_v16 = vsel %vm330_vm0, %v5292_v26, %v5418_v35 }
 0x234   : > { %v2504_v55 = vsel %vm2498_vm12, %v2502_v51, %v2503_v9  ;;  %v5624_v58 = vpop.permute.xlu0 %1582  ;;  %v1821_v13 = vsel %vm1796_vm2, %v1788_v16, %v5444_v21  ;;  %v5645_v9 = vld [vmem:[#allocation3 + $0x18] sm:$0xff]  ;;  %v2637_v51 = vld [vmem:[#allocation3 + $0xc] sm:$0xff] }
 0x235   : > { %2591 = vst.msk [vmem:[#allocation3 + $0x3a] sm:$0x7f] %vm2588_vm13, %v2542_v2  ;;  %v2541_v29 = vmax.f32 %v2468_v57, %v2504_v55  ;;  %1730 = vrot.lane.b32.xlu1 %v739_v19, %s4281_s22  ;;  %v1982_v57 = vsel %vm1961_vm8, %v1949_v61, %v1581_v25  ;;  %v1854_v43 = vsel %vm1829_vm4, %v1821_v13, %v5482_v46  ;;  %v2668_v46 = vld [vmem:[#allocation3 + $0x1a] sm:$0xff] }
 0x236   : > { %2829 = vrot.lane.b32.xlu0 %v2636_v23, %s4277_s29  ;;  %v1887_v26 = vsel %vm1862_vm6, %v1854_v43, %v5510_v6  ;;  %v5664_v55 = vld [vmem:[#allocation3 + $0x20] sm:$0xff]  ;;  %v3394_v43 = vld [vmem:[%s6601_s4 + $0x8] sm:$0xff] }
 0x237   : > { %2590 = vst.msk [vmem:[#allocation3 + $0x32] sm:$0xff] %vm1796_vm2, %v2541_v29  ;;  %v5633_v50 = vpop.permute.xlu1 %1208  ;;  %v1920_v35 = vsel %vm1895_vm5, %v1887_v26, %v5534_v14  ;;  %v2669_v14 = vld [vmem:[#allocation3 + $0x22] sm:$0xff]  ;;  %v1785_v29 = vsel %vm330_vm0, %v5110_v4, %v4824_v28 }
 0x238   : > { %v1709_v44 = vpop.permute.xlu0 %1708  ;;  %v1953_v25 = vsel %vm1928_vm7, %v1920_v35, %v5579_v39  ;;  %v1789_v39 = vsel %vm330_vm0, %v5318_v17, %v5436_v37  ;;  %v1818_v37 = vsel %vm1796_vm2, %v1785_v29, %v5448_v52  ;;  %v2684_v52 = vld [vmem:[#allocation3 + $0x1c] sm:$0xff]  ;;  %v3397_v29 = vld [vmem:[%s6601_s4 + $0x20] sm:$0xf] }
 0x239   : > { %2767 = vrot.lane.b32.xlu1 %v2621_v42, %s4275_s27  ;;  %v2015_v41 = vsel %vm1994_vm9, %v1982_v57, %v1709_v44  ;;  %v1986_v45 = vsel %vm1961_vm8, %v1953_v25, %v1589_v38  ;;  %v1822_v23 = vsel %vm1796_vm2, %v1789_v39, %v5470_v30  ;;  %v1851_v60 = vsel %vm1829_vm4, %v1818_v37, %v5485_v32  ;;  %v2685_v44 = vld [vmem:[#allocation3 + $0x24] sm:$0xff] }
 0x23a   : > { %4084 = vmatprep.mubr.msk.f32.mxu0 %vm2030_vm10, %v2015_v41  ;;  %2893 = vrot.lane.b32.xlu0 %v5645_v9, %s4279_s16  ;;  %v1855_v24 = vsel %vm1829_vm4, %v1822_v23, %v5495_v7  ;;  %v1884_v7 = vsel %vm1862_vm6, %v1851_v60, %v5529_v20 }
 0x23b   : > { %v1591_v19 = vpop.permute.xlu1 %1590  ;;  %v1888_v30 = vsel %vm1862_vm6, %v1855_v24, %v5524_v18  ;;  %v1917_v18 = vsel %vm1895_vm5, %v1884_v7, %v5563_v31 }
 0x23c   : > { %v5656_v21 = vpop.permute.xlu0 %828  ;;  %v1921_v28 = vsel %vm1895_vm5, %v1888_v30, %v5573_v12  ;;  %v1950_v12 = vsel %vm1928_vm7, %v1917_v18, %v5588_v34  ;;  %v2718_v23 = vld [vmem:[#allocation3 + $0x3a] sm:$0xff] }
 0x23d   : > { %2831 = vrot.lane.b32.xlu1 %v2637_v51, %s4277_s29  ;;  %v1954_v61 = vsel %vm1928_vm7, %v1921_v28, %v5602_v33  ;;  %v1983_v20 = vsel %vm1961_vm8, %v1950_v12, %v5624_v58  ;;  %v3393_v51 = vld [vmem:[%s6601_s4] sm:$0xff] }
 0x23e   : > { %2957 = vrot.lane.b32.xlu0 %v2668_v46, %s4281_s22  ;;  %v1987_v16 = vsel %vm1961_vm8, %v1954_v61, %v1591_v19  ;;  %v5725_v41 = vld [vmem:[#allocation3 + $0x30] sm:$0xff]  ;;  %v5737_v19 = vld [vmem:[#allocation3 + $0x38] sm:$0xff]  ;;  %v4140_v26 = vpack.c.bf16 %v3394_v43, %v3393_v51 }
 0x23f   : > { %v1717_v2 = vpop.permute.xlu1 %1716  ;;  %v2733_v61 = vld [vmem:[#allocation3 + $0x34] sm:$0xff] }
 0x240   : > { %v2019_v3 = vsel %vm1994_vm9, %v1986_v45, %v1717_v2  ;;  %v5666_v6 = vpop.permute.xlu0 %1210  ;;  %4141 = vmatprep.subr.bf16.mxu1 %v4140_v26  ;;  %v3396_v45 = vld [vmem:[%s6601_s4 + $0x18] sm:$0xff] }
 0x241   : > { %4090 = vmatprep.mubr.msk.f32.mxu1 %vm2030_vm10, %v2019_v3  ;;  %2895 = vrot.lane.b32.xlu1 %v5664_v55, %s4279_s16 }
 0x242   : > { %2959 = vrot.lane.b32.xlu0 %v2669_v14, %s4281_s22 }
 0x243   : > { %v5674_v38 = vpop.permute.xlu1 %1202 }
 0x244   : > { %v5679_v36 = vpop.f32.mrb[8].mxu0  ;;  %v5686_v42 = vpop.permute.xlu0 %1336 }
 0x245   : > { %2769 = vrot.lane.b32.xlu1 %v2668_v46, %s4275_s27  ;;  %v5689_v17 = vpop.f32.mrb[9].mxu0  ;;  %v3395_v46 = vld [vmem:[%s6601_s4 + $0x10] sm:$0xff]  ;;  %v2372_v37 = vmul.f32 %v5679_v36, %v5454_v11 }
 0x246   : > { %2771 = vrot.lane.b32.xlu0 %v2669_v14, %s4275_s27  ;;  %v4144_v2 = vpack.c.bf16 %v3396_v45, %v3395_v46  ;;  %v2717_v14 = vld [vmem:[#allocation3 + $0x32] sm:$0xff]  ;;  %v2371_v60 = vmul.f32 %v5454_v11, %v5689_v17 }
 0x247   : > { %v5699_v4 = vpop.permute.xlu1 %1328 }
 0x248   : > { %v1719_v32 = vpop.permute.xlu0 %1718 }
 0x249   : > { %3021 = vrot.lane.b32.xlu1 %v2684_v52, %s4282_s26  ;;  %v2020_v57 = vsel %vm1994_vm9, %v1987_v16, %v1719_v32  ;;  %v2410_v32 = vadd.f32 %v5466_v59, %v2371_v60 }
 0x24a   : > { %4091 = vmatmul.mubr.msk.f32.vlgmr.msra.gmra.mrb[0].mxu1 %vm2030_vm10, %v2020_v57  ;;  %3023 = vrot.lane.b32.xlu0 %v2685_v44, %s4282_s26 }
 0x24b   : > { %v1711_v33 = vpop.permute.xlu1 %1710  ;;  %4143 = vmatpush3.bf16.msra.mxu1 %v4140_v26  ;;  %v2442_v51 = vmax.f32 %v2410_v32, 0.0  ;;  %v1790_v26 = vsel %vm330_vm0, %v5202_v1, %v5516_v47 }
 0x24c   : > { %v2016_v31 = vsel %vm1994_vm9, %v1983_v20, %v1711_v33  ;;  %v5718_v13 = vpop.permute.xlu0 %956  ;;  %4145 = vmatprep.subr.bf16.mxu1 %v4144_v2 }
 0x24d   : > { %4085 = vmatmul.mubr.msk.f32.gmra.mrb[20].mxu0 %vm2030_vm10, %v2016_v31  ;;  %2833 = vrot.lane.b32.xlu1 %v2684_v52, %s4277_s29  ;;  %v2411_v52 = vadd.f32 %v5466_v59, %v2372_v37  ;;  %v4204_v37 = vld [vmem:[#allocation2 + $0x108] sm:$0xff] }
 0x24e   : > { %2835 = vrot.lane.b32.xlu0 %v2685_v44, %s4277_s29  ;;  %v1786_v60 = vsel %vm330_vm0, %v4204_v37, %v4818_v27 }
 0x24f   : > { %v5722_v34 = vpop.permute.xlu1 %830  ;;  %4147 = vmatpush3.bf16.msra.mxu1 %v4144_v2  ;;  %v2443_v20 = vmax.f32 %v2411_v52, 0.0  ;;  %v1823_v2 = vsel %vm1796_vm2, %v1790_v26, %v5567_v56  ;;  %v1819_v1 = vsel %vm1796_vm2, %v1786_v60, %v5556_v63  ;;  %v4206_v26 = vld [vmem:[#allocation2 + $0x140] sm:$0xff] }
 0x250   : > { %v5727_v58 = vpop.permute.xlu0 %1338  ;;  %4110 = vmatprep.subr.msk.mxu1 %vm3447_vm14, %v3397_v29 }
 0x251   : > { %3085 = vrot.lane.b32.xlu1 %v5725_v41, %s4283_s28 }
 0x252   : > { %3087 = vrot.lane.b32.xlu0 %v5737_v19, %s4283_s28 }
 0x253   : > { %v5739_v35 = vpop.permute.xlu1 %1330  ;;  %4111 = vmatpush3.msk.msra.mxu1 %vm3447_vm14, %v3397_v29  ;;  %v2734_v29 = vld [vmem:[#allocation3 + $0x3c] sm:$0xff] }
 0x254   : > { %v5743_v25 = vpop.permute.xlu0 %1464 }
 0x255   : > { %2897 = vrot.lane.b32.xlu1 %v5725_v41, %s4279_s16 }
 0x256   : > { %2899 = vrot.lane.b32.xlu0 %v5737_v19, %s4279_s16 }
 0x257   : > { %v5753_v3 = vpop.permute.xlu1 %1456 }
 0x258   : > { %v5757_v39 = vpop.permute.xlu0 %1084 }
 0x259   : > { %3149 = vrot.lane.b32.xlu1 %v2717_v14, %s4284_s25 }
 0x25a   : > { %3151 = vrot.lane.b32.xlu0 %v2718_v23, %s4284_s25 }
 0x25b   : > { %v5763_v24 = vpop.permute.xlu1 %958 }
 0x25c   : > { %v5768_v30 = vpop.permute.xlu0 %1466 }
 0x25d   : > { %2961 = vrot.lane.b32.xlu1 %v2717_v14, %s4281_s22 }
 0x25e   : > { %2773 = vrot.lane.b32.xlu0 %v2717_v14, %s4275_s27 }
 0x25f   : > { %v5773_v28 = vpop.permute.xlu1 %1458 }
 0x260   : > { %v4071_v7 = vpop.f32.mrb[10].mxu0  ;;  %v1593_v16 = vpop.permute.xlu0 %1592 }
 0x261   : > { %v2374_v18 = vmul.f32 %v4071_v7, %v5454_v11  ;;  %3213 = vrot.lane.b32.xlu1 %v2733_v61, %s4285_s21  ;;  %v2247_v36 = vpop.f32.mrb[11].mxu0  ;;  %v1856_v7 = vsel %vm1829_vm4, %v1823_v2, %v5593_v0 }
 0x262   : > { %v2373_v12 = vmul.f32 %v5454_v11, %v2247_v36  ;;  %3025 = vrot.lane.b32.xlu0 %v2733_v61, %s4282_s26  ;;  %v1889_v47 = vsel %vm1862_vm6, %v1856_v7, %v5633_v50 }
 0x263   : > { %v2413_v17 = vadd.f32 %v5466_v59, %v2374_v18  ;;  %v1585_v57 = vpop.permute.xlu1 %1584  ;;  %v1922_v27 = vsel %vm1895_vm5, %v1889_v47, %v5686_v42 }
 0x264   : > { %v2412_v44 = vadd.f32 %v5466_v59, %v2373_v12  ;;  %v5784_v31 = vpop.permute.xlu0 %1212  ;;  %v1955_v63 = vsel %vm1928_vm7, %v1922_v27, %v5743_v25 }
 0x265   : > { %v2445_v33 = vmax.f32 %v2413_v17, 0.0  ;;  %2963 = vrot.lane.b32.xlu1 %v2718_v23, %s4281_s22 }
 0x266   : > { %v2444_v43 = vmax.f32 %v2412_v44, 0.0  ;;  %2775 = vrot.lane.b32.xlu0 %v2718_v23, %s4275_s27  ;;  %v1852_v23 = vsel %vm1829_vm4, %v1819_v1, %v5581_v22  ;;  %v1988_v22 = vsel %vm1961_vm8, %v1955_v63, %v1593_v16 }
 0x267   : > { %v2471_v46 = vmax.f32 %v2443_v20, %v2445_v33  ;;  %v5790_v45 = vpop.permute.xlu1 %1086  ;;  %v1885_v0 = vsel %vm1862_vm6, %v1852_v23, %v5609_v53  ;;  %v4205_v20 = vld [vmem:[#allocation2 + $0x110] sm:$0xff] }
 0x268   : > { %v2470_v14 = vmax.f32 %v2442_v51, %v2444_v43  ;;  %v1595_v18 = vpop.permute.xlu0 %1594  ;;  %v1918_v50 = vsel %vm1895_vm5, %v1885_v0, %v5699_v4  ;;  %v1787_v25 = vsel %vm330_vm0, %v4205_v20, %v5548_v62 }
 0x269   : > { %v2506_v52 = vrot.slane %v2471_v46, 1  ;;  %3215 = vrot.lane.b32.xlu1 %v2734_v29, %s4285_s21  ;;  %v1951_v44 = vsel %vm1928_vm7, %v1918_v50, %v5753_v3  ;;  %v1792_v50 = vsel %vm330_vm0, %v5309_v10, %v5656_v21 }
 0x26a   : > { %v2505_v56 = vrot.slane %v2470_v14, 1  ;;  %3027 = vrot.lane.b32.xlu0 %v2734_v29, %s4282_s26  ;;  %v1984_v4 = vsel %vm1961_vm8, %v1951_v44, %v1585_v57  ;;  %v1793_v44 = vsel %vm330_vm0, %v5334_v5, %v5722_v34 }
 0x26b   : > { %v2544_v36 = vmax.f32 %v2471_v46, %v2506_v52  ;;  %v1587_v32 = vpop.permute.xlu1 %1586  ;;  %v1791_v46 = vsel %vm330_vm0, %v4206_v26, %v5561_v15 }
 0x26c   : > { %v2507_v12 = vsel %vm2498_vm12, %v2505_v56, %v2506_v52  ;;  %v1721_v17 = vpop.permute.xlu0 %1720 }
 0x26d   : > { %2593 = vst.msk [vmem:[#allocation3 + $0x52] sm:$0x7f] %vm2588_vm13, %v2544_v36  ;;  %v2543_v42 = vmax.f32 %v2470_v14, %v2507_v12  ;;  %2837 = vrot.lane.b32.xlu1 %v2733_v61, %s4277_s29  ;;  %v2021_v53 = vsel %vm1994_vm9, %v1988_v22, %v1721_v17  ;;  %v1820_v61 = vsel %vm1796_vm2, %v1787_v25, %v5575_v48 }
 0x26e   : > { %4093 = vmatprep.mubr.msk.f32.mxu1 %vm2030_vm10, %v2021_v53  ;;  %2839 = vrot.lane.b32.xlu0 %v2734_v29, %s4277_s29  ;;  %v1853_v33 = vsel %vm1829_vm4, %v1820_v61, %v5605_v8  ;;  %v1824_v14 = vsel %vm1796_vm2, %v1791_v46, %v5585_v40  ;;  %v1826_v25 = vsel %vm1796_vm2, %v1793_v44, %v5763_v24 }
 0x26f   : > { %2592 = vst.msk [vmem:[#allocation3 + $0x4a] sm:$0xff] %vm1796_vm2, %v2543_v42  ;;  %v1713_v16 = vpop.permute.xlu1 %1712  ;;  %v1886_v62 = vsel %vm1862_vm6, %v1853_v33, %v5674_v38  ;;  %v1857_v37 = vsel %vm1829_vm4, %v1824_v14, %v5616_v54  ;;  %v1825_v42 = vsel %vm1796_vm2, %v1792_v50, %v5718_v13  ;;  %v1859_v21 = vsel %vm1829_vm4, %v1826_v25, %v5790_v45 }
 0x270   : > { %v2017_v3 = vsel %vm1994_vm9, %v1984_v4, %v1713_v16  ;;  %v5833_v51 = vpop.permute.xlu0 %1214  ;;  %v1919_v57 = vsel %vm1895_vm5, %v1886_v62, %v5739_v35  ;;  %v1890_v15 = vsel %vm1862_vm6, %v1857_v37, %v5666_v6  ;;  %v1858_v53 = vsel %vm1829_vm4, %v1825_v42, %v5757_v39 }
 0x271   : > { %4087 = vmatprep.mubr.msk.f32.mxu0 %vm2030_vm10, %v2017_v3  ;;  %v1952_v48 = vsel %vm1928_vm7, %v1919_v57, %v5773_v28  ;;  %v1923_v40 = vsel %vm1895_vm5, %v1890_v15, %v5727_v58  ;;  %v1891_v10 = vsel %vm1862_vm6, %v1858_v53, %v5784_v31  ;;  %v1892_v34 = vsel %vm1862_vm6, %v1859_v21, %v5833_v51 }
 0x272   : > { %v1985_v8 = vsel %vm1961_vm8, %v1952_v48, %v1587_v32  ;;  %v1956_v54 = vsel %vm1928_vm7, %v1923_v40, %v5768_v30 }
 0x273   : > { %v5840_v43 = vpop.permute.xlu1 %832  ;;  %v1989_v7 = vsel %vm1961_vm8, %v1956_v54, %v1595_v18 }
 0x274   : > { %v1715_v2 = vpop.permute.xlu0 %1714  ;;  %v2720_v58 = vld [vmem:[#allocation3 + $0x52] sm:$0xff]  ;;  %v1794_v57 = vsel %vm330_vm0, %v5428_v49, %v5840_v43 }
 0x275   : > { %v2018_v38 = vsel %vm1994_vm9, %v1985_v8, %v1715_v2  ;;  %v2736_v17 = vld [vmem:[#allocation3 + $0x54] sm:$0xff] }
 0x276   : > { %v5850_v29 = vld [vmem:[#allocation3 + $0x50] sm:$0xff]  ;;  %v5852_v35 = vld [vmem:[#allocation3 + $0x48] sm:$0xff]  ;;  %4088 = vmatmul.mubr.msk.f32.gmra.mrb[22].mxu0 %vm2030_vm10, %v2018_v38 }
 0x277   : > { %v1341_v28 = vpop.permute.xlu1 %1340  ;;  %3091 = vrot.lane.b32.xlu0 %v5850_v29, %s4283_s28  ;;  %3089 = vrot.lane.b32.xlu1 %v5852_v35, %s4283_s28  ;;  %v2719_v30 = vld [vmem:[#allocation3 + $0x4a] sm:$0xff] }
 0x278   : > { %v5865_v60 = vpop.permute.xlu0 %834  ;;  %v2735_v32 = vld [vmem:[#allocation3 + $0x4c] sm:$0xff]  ;;  %v1924_v13 = vsel %vm1895_vm5, %v1891_v10, %v1341_v28 }
 0x27b   : > { %v1723_v52 = vpop.permute.xlu1 %1722  ;;  %2903 = vrot.lane.b32.xlu0 %v5850_v29, %s4279_s16  ;;  %2901 = vrot.lane.b32.xlu1 %v5852_v35, %s4279_s16 }
 0x27c   : > { %v2022_v1 = vsel %vm1994_vm9, %v1989_v7, %v1723_v52  ;;  %v4074_v6 = vpop.f32.mrb[12].mxu0  ;;  %v1343_v47 = vpop.permute.xlu0 %1342  ;;  %v6611_v7 = vld [vmem:[#allocation7_spill] sm:$0xff] }
 0x27d   : > { %v2257_v56 = vpop.f32.mrb[13].mxu0  ;;  %4094 = vmatmul.mubr.msk.f32.gmra.mrb[2].mxu1 %vm2030_vm10, %v2022_v1  ;;  %v1925_v4 = vsel %vm1895_vm5, %v1892_v34, %v1343_v47  ;;  %v2376_v45 = vmul.f32 %v4074_v6, %v5454_v11  ;;  %v1795_v52 = vsel %vm330_vm0, %v6611_v7, %v5865_v60  ;;  %vm3342_vm0 = vcmask 195584  }
 0x27e   : > { %v2375_v51 = vmul.f32 %v5454_v11, %v2257_v56 }
 0x27f   : > { %v961_v23 = vpop.permute.xlu1 %960  ;;  %3155 = vrot.lane.b32.xlu0 %v2720_v58, %s4284_s25  ;;  %3153 = vrot.lane.b32.xlu1 %v2719_v30, %s4284_s25  ;;  %v2415_v46 = vadd.f32 %v5466_v59, %v2376_v45 }
 0x280   : > { %v5878_v18 = vpop.permute.xlu0 %962  ;;  %v2414_v38 = vadd.f32 %v5466_v59, %v2375_v51  ;;  %v1827_v37 = vsel %vm1796_vm2, %v1794_v57, %v961_v23 }
 0x281   : > { %v2447_v1 = vmax.f32 %v2415_v46, 0.0 }
 0x283   : > { %v1469_v27 = vpop.permute.xlu1 %1468  ;;  %2777 = vrot.lane.b32.xlu0 %v2719_v30, %s4275_s27  ;;  %2965 = vrot.lane.b32.xlu1 %v2719_v30, %s4281_s22 }
 0x284   : > { %v1471_v36 = vpop.permute.xlu0 %1470  ;;  %v1957_v39 = vsel %vm1928_vm7, %v1924_v13, %v1469_v27  ;;  %v1828_v27 = vsel %vm1796_vm2, %v1795_v52, %v5878_v18  ;;  %v2605_v52 = vld [vmem:[#allocation3 + $0x8] sm:$0xff] }
 0x285   : > { %v1958_v31 = vsel %vm1928_vm7, %v1925_v4, %v1471_v36 }
 0x287   : > { %v1089_v0 = vpop.permute.xlu1 %1088  ;;  %3029 = vrot.lane.b32.xlu0 %v2735_v32, %s4282_s26  ;;  %3217 = vrot.lane.b32.xlu1 %v2735_v32, %s4285_s21 }
 0x288   : > { %v5884_v63 = vpop.permute.xlu0 %1090  ;;  %v1860_v15 = vsel %vm1829_vm4, %v1827_v37, %v1089_v0 }
 0x28b   : > { %v1597_v12 = vpop.permute.xlu1 %1596  ;;  %2779 = vrot.lane.b32.xlu0 %v2720_v58, %s4275_s27  ;;  %2967 = vrot.lane.b32.xlu1 %v2720_v58, %s4281_s22  ;;  %v2446_v58 = vmax.f32 %v2414_v38, 0.0 }
 0x28c   : > { %v1599_v22 = vpop.permute.xlu0 %1598  ;;  %v1990_v24 = vsel %vm1961_vm8, %v1957_v39, %v1597_v12 }
 0x28d   : > { %v1991_v3 = vsel %vm1961_vm8, %v1958_v31, %v1599_v22  ;;  %v1861_v22 = vsel %vm1829_vm4, %v1828_v27, %v5884_v63  ;;  %vm3398_vm4 = vcmask 293888  }
 0x28f   : > { %v1217_v20 = vpop.permute.xlu1 %1216  ;;  %3031 = vrot.lane.b32.xlu0 %v2736_v17, %s4282_s26  ;;  %3219 = vrot.lane.b32.xlu1 %v2736_v17, %s4285_s21 }
 0x290   : > { %v1219_v5 = vpop.permute.xlu0 %1218  ;;  %v1893_v40 = vsel %vm1862_vm6, %v1860_v15, %v1217_v20 }
 0x291   : > { %v1894_v44 = vsel %vm1862_vm6, %v1861_v22, %v1219_v5 }
 0x293   : > { %v1725_v16 = vpop.permute.xlu1 %1724  ;;  %2843 = vrot.lane.b32.xlu0 %v2736_v17, %s4277_s29  ;;  %2841 = vrot.lane.b32.xlu1 %v2735_v32, %s4277_s29 }
 0x294   : > { %v2023_v61 = vsel %vm1994_vm9, %v1990_v24, %v1725_v16  ;;  %v1727_v33 = vpop.permute.xlu0 %1726 }
 0x295   : > { %4096 = vmatprep.mubr.msk.f32.mxu1 %vm2030_vm10, %v2023_v61  ;;  %v2024_v62 = vsel %vm1994_vm9, %v1991_v3, %v1727_v33 }
 0x296   : > { %4097 = vmatmul.mubr.msk.f32.gmra.mrb[4].mxu1 %vm2030_vm10, %v2024_v62 }
 0x297   : > { %v1345_v48 = vpop.permute.xlu1 %1344 }
 0x298   : > { %v4077_v26 = vpop.f32.mrb[14].mxu0  ;;  %v1473_v2 = vpop.permute.xlu0 %1472  ;;  %v1926_v6 = vsel %vm1895_vm5, %v1893_v40, %v1345_v48 }
 0x299   : > { %v2378_v8 = vmul.f32 %v4077_v26, %v5454_v11  ;;  %v2267_v14 = vpop.f32.mrb[15].mxu0  ;;  %v1959_v36 = vsel %vm1928_vm7, %v1926_v6, %v1473_v2 }
 0x29a   : > { %v2377_v28 = vmul.f32 %v5454_v11, %v2267_v14 }
 0x29b   : > { %v2417_v49 = vadd.f32 %v5466_v59, %v2378_v8  ;;  %v1347_v43 = vpop.permute.xlu1 %1346 }
 0x29c   : > { %v2416_v54 = vadd.f32 %v5466_v59, %v2377_v28  ;;  %v1601_v56 = vpop.permute.xlu0 %1600  ;;  %v1927_v20 = vsel %vm1895_vm5, %v1894_v44, %v1347_v43  ;;  %v2604_v28 = vld [vmem:[#allocation3] sm:$0xff]  ;;  %vm3674_vm5 = vcmask 1045504  }
 0x29d   : > { %v2449_v47 = vmax.f32 %v2417_v49, 0.0  ;;  %v1992_v0 = vsel %vm1961_vm8, %v1959_v36, %v1601_v56 }
 0x29e   : > { %v2448_v11 = vmax.f32 %v2416_v54, 0.0 }
 0x29f   : > { %v2473_v23 = vmax.f32 %v2447_v1, %v2449_v47  ;;  %v1475_v30 = vpop.permute.xlu1 %1474 }
 0x2a0   : > { %v2472_v32 = vmax.f32 %v2446_v58, %v2448_v11  ;;  %v1729_v12 = vpop.permute.xlu0 %1728  ;;  %v1960_v10 = vsel %vm1928_vm7, %v1927_v20, %v1475_v30 }
 0x2a1   : > { %v2509_v59 = vrot.slane %v2473_v23, 1  ;;  %v2025_v50 = vsel %vm1994_vm9, %v1992_v0, %v1729_v12 }
 0x2a2   : > { %v2508_v60 = vrot.slane %v2472_v32, 1  ;;  %4099 = vmatprep.mubr.msk.f32.mxu1 %vm2030_vm10, %v2025_v50 }
 0x2a3   : > { %v2546_v42 = vmax.f32 %v2473_v23, %v2509_v59  ;;  %v1603_v17 = vpop.permute.xlu1 %1602 }
 0x2a4   : > { %v2510_v18 = vsel %vm2498_vm12, %v2508_v60, %v2509_v59  ;;  %v2766_v25 = vpop.permute.xlu0 %2765  ;;  %v1993_v63 = vsel %vm1961_vm8, %v1960_v10, %v1603_v17  ;;  %vm3795_vm8 = vcmask 8200  }
 0x2a5   : > { %2595 = vst.msk [vmem:[#allocation3 + $0x6a] sm:$0x7f] %vm2588_vm13, %v2546_v42  ;;  %v2545_v53 = vmax.f32 %v2472_v32, %v2510_v18  ;;  %v3261_v43 = vsel %vm1796_vm2, %v2604_v28, %v2766_v25  ;;  %v6024_v25 = vld [vmem:[%s6599_s2] ss:$0 sm:$0xff] }
 0x2a7   : > { %2594 = vst.msk [vmem:[#allocation3 + $0x62] sm:$0xff] %vm1796_vm2, %v2545_v53  ;;  %v1731_v21 = vpop.permute.xlu1 %1730 }
 0x2a8   : > { %v2026_v13 = vsel %vm1994_vm9, %v1993_v63, %v1731_v21  ;;  %v2830_v34 = vpop.permute.xlu0 %2829 }
 0x2a9   : > { %4100 = vmatmul.mubr.msk.f32.gmra.mrb[6].mxu1 %vm2030_vm10, %v2026_v13  ;;  %v3277_v7 = vsel %vm1862_vm6, %v3261_v43, %v2830_v34  ;;  %v6033_v13 = vld [vmem:[%s6600_s3] ss:$0 sm:$0xff] }
 0x2ab   : > { %v2768_v5 = vpop.permute.xlu1 %2767 }
 0x2ac   : > { %v2894_v39 = vpop.permute.xlu0 %2893  ;;  %v2722_v51 = vld [vmem:[#allocation3 + $0x6a] sm:$0xff]  ;;  %v3262_v6 = vsel %vm1796_vm2, %v2605_v52, %v2768_v5 }
 0x2ad   : > { %v2738_v15 = vld [vmem:[#allocation3 + $0x6c] sm:$0xff]  ;;  %v3293_v47 = vsel %vm1928_vm7, %v3277_v7, %v2894_v39 }
 0x2ae   : > { %v5955_v4 = vld [vmem:[#allocation3 + $0x68] sm:$0xff]  ;;  %v5957_v24 = vld [vmem:[#allocation3 + $0x60] sm:$0xff] }
 0x2af   : > { %v2832_v16 = vpop.permute.xlu1 %2831  ;;  %3095 = vrot.lane.b32.xlu0 %v5955_v4, %s4283_s28  ;;  %3093 = vrot.lane.b32.xlu1 %v5957_v24, %s4283_s28  ;;  %v2721_v62 = vld [vmem:[#allocation3 + $0x62] sm:$0xff] }
 0x2b0   : > { %v2958_v31 = vpop.permute.xlu0 %2957  ;;  %v2737_v8 = vld [vmem:[#allocation3 + $0x64] sm:$0xff]  ;;  %v3278_v30 = vsel %vm1862_vm6, %v3262_v6, %v2832_v16 }
 0x2b1   : > { %v5963_v61 = vpop.f32.mrb[16].mxu0  ;;  %v3309_v58 = vsel %vm1994_vm9, %v3293_v47, %v2958_v31 }
 0x2b2   : > { %v5969_v3 = vpop.f32.mrb[17].mxu0  ;;  %v2380_v10 = vmul.f32 %v6024_v25, %v5963_v61 }
 0x2b3   : > { %v2896_v45 = vpop.permute.xlu1 %2895  ;;  %2907 = vrot.lane.b32.xlu0 %v5955_v4, %s4279_s16  ;;  %2905 = vrot.lane.b32.xlu1 %v5957_v24, %s4279_s16  ;;  %v2379_v63 = vmul.f32 %v6024_v25, %v5969_v3 }
 0x2b4   : > { %v2960_v33 = vpop.permute.xlu0 %2959  ;;  %v3294_v0 = vsel %vm1928_vm7, %v3278_v30, %v2896_v45  ;;  %v2419_v34 = vadd.f32 %v6033_v13, %v2380_v10 }
 0x2b5   : > { %v3310_v50 = vsel %vm1994_vm9, %v3294_v0, %v2960_v33  ;;  %v2418_v31 = vadd.f32 %v6033_v13, %v2379_v63 }
 0x2b7   : > { %v5971_v57 = vpop.permute.xlu1 %2769  ;;  %3159 = vrot.lane.b32.xlu0 %v2722_v51, %s4284_s25  ;;  %3157 = vrot.lane.b32.xlu1 %v2721_v62, %s4284_s25 }
 0x2b8   : > { %v5975_v48 = vpop.permute.xlu0 %2771 }
 0x2bb   : > { %v3022_v26 = vpop.permute.xlu1 %3021  ;;  %2969 = vrot.lane.b32.xlu1 %v2721_v62, %s4281_s22  ;;  %2781 = vrot.lane.b32.xlu0 %v2721_v62, %s4275_s27 }
 0x2bc   : > { %v3024_v46 = vpop.permute.xlu0 %3023  ;;  %v3326_v11 = vsel %vm3325_vm15, %v3309_v58, %v3022_v26 }
 0x2bd   : > { %v3327_v22 = vsel %vm3325_vm15, %v3310_v50, %v3024_v46  ;;  %v2450_v46 = vmax.f32 %v2418_v31, 0.0 }
 0x2bf   : > { %v5979_v2 = vpop.permute.xlu1 %2833  ;;  %3221 = vrot.lane.b32.xlu1 %v2737_v8, %s4285_s21  ;;  %3033 = vrot.lane.b32.xlu0 %v2737_v8, %s4282_s26 }
 0x2c0   : > { %v5983_v14 = vpop.permute.xlu0 %2835 }
 0x2c3   : > { %v3086_v38 = vpop.permute.xlu1 %3085  ;;  %2971 = vrot.lane.b32.xlu1 %v2722_v51, %s4281_s22  ;;  %2783 = vrot.lane.b32.xlu0 %v2722_v51, %s4275_s27  ;;  %v2451_v51 = vmax.f32 %v2419_v34, 0.0 }
 0x2c4   : > { %v3088_v37 = vpop.permute.xlu0 %3087  ;;  %v3343_v27 = vsel %vm3342_vm0, %v3326_v11, %v3086_v38  ;;  %v3263_v11 = vsel %vm1796_vm2, %v5645_v9, %v5971_v57 }
 0x2c5   : > { %v3344_v17 = vsel %vm3342_vm0, %v3327_v22, %v3088_v37  ;;  %v3279_v30 = vsel %vm1862_vm6, %v3263_v11, %v5979_v2 }
 0x2c7   : > { %v5987_v49 = vpop.permute.xlu1 %2897  ;;  %3223 = vrot.lane.b32.xlu1 %v2738_v15, %s4285_s21  ;;  %3035 = vrot.lane.b32.xlu0 %v2738_v15, %s4282_s26 }
 0x2c8   : > { %v5992_v40 = vpop.permute.xlu0 %2899 }
 0x2cb   : > { %v3150_v54 = vpop.permute.xlu1 %3149  ;;  %2845 = vrot.lane.b32.xlu1 %v2737_v8, %s4277_s29  ;;  %2847 = vrot.lane.b32.xlu0 %v2738_v15, %s4277_s29 }
 0x2cc   : > { %v3152_v1 = vpop.permute.xlu0 %3151  ;;  %v3360_v36 = vsel %vm3359_vm1, %v3343_v27, %v3150_v54 }
 0x2cd   : > { %v3361_v44 = vsel %vm3359_vm1, %v3344_v17, %v3152_v1 }
 0x2cf   : > { %v5999_v56 = vpop.permute.xlu1 %2961 }
 0x2d0   : > { %v6003_v23 = vpop.permute.xlu0 %2773 }
 0x2d3   : > { %v3214_v32 = vpop.permute.xlu1 %3213 }
 0x2d4   : > { %v3377_v59 = vsel %vm3376_vm3, %v3360_v36, %v3214_v32  ;;  %v3026_v12 = vpop.permute.xlu0 %3025  ;;  %v3295_v36 = vsel %vm1928_vm7, %v3279_v30, %v5987_v49 }
 0x2d5   : > { %4112 = vmatprep.mubr.msk.f32.mxu1 %vm3398_vm4, %v3377_v59  ;;  %v3311_v59 = vsel %vm1994_vm9, %v3295_v36, %v5999_v56  ;;  %v3264_v56 = vsel %vm1796_vm2, %v5664_v55, %v5975_v48 }
 0x2d6   : > { %v3328_v0 = vsel %vm3325_vm15, %v3311_v59, %v3026_v12  ;;  %v3280_v12 = vsel %vm1862_vm6, %v3264_v56, %v5983_v14 }
 0x2d7   : > { %v6011_v60 = vpop.permute.xlu1 %2963 }
 0x2d8   : > { %v6015_v42 = vpop.permute.xlu0 %2775 }
 0x2db   : > { %v3216_v18 = vpop.permute.xlu1 %3215 }
 0x2dc   : > { %v3378_v53 = vsel %vm3376_vm3, %v3361_v44, %v3216_v18  ;;  %v3028_v20 = vpop.permute.xlu0 %3027  ;;  %v3296_v18 = vsel %vm1928_vm7, %v3280_v12, %v5992_v40 }
 0x2dd   : > { %4113 = vmatmul.mubr.msk.f32.vlgmr.msra.gmra.mrb[8].mxu1 %vm3398_vm4, %v3378_v53  ;;  %v3312_v10 = vsel %vm1994_vm9, %v3296_v18, %v6011_v60 }
 0x2de   : > { %v3329_v55 = vsel %vm3325_vm15, %v3312_v10, %v3028_v20 }
 0x2df   : > { %v6040_v45 = vpop.permute.xlu1 %2837 }
 0x2e0   : > { %v6036_v5 = vpop.permute.xlu0 %2839 }
 0x2e4   : > { %v4083_v21 = vpop.f32.mrb[18].mxu0 }
 0x2e5   : > { %v2382_v39 = vmul.f32 %v6024_v25, %v4083_v21  ;;  %v2287_v16 = vpop.f32.mrb[19].mxu0 }
 0x2e6   : > { %v2381_v61 = vmul.f32 %v6024_v25, %v2287_v16 }
 0x2e7   : > { %v2421_v3 = vadd.f32 %v6033_v13, %v2382_v39 }
 0x2e8   : > { %v2420_v33 = vadd.f32 %v6033_v13, %v2381_v61 }
 0x2e9   : > { %v2453_v62 = vmax.f32 %v2421_v3, 0.0  ;;  %v3092_v26 = vpop.permute.xlu0 %3091  ;;  %v3090_v38 = vpop.permute.xlu1 %3089 }
 0x2ea   : > { %v2452_v8 = vmax.f32 %v2420_v33, 0.0  ;;  %v3345_v50 = vsel %vm3342_vm0, %v3328_v0, %v3090_v38  ;;  %v3346_v48 = vsel %vm3342_vm0, %v3329_v55, %v3092_v26  ;;  %v3266_v0 = vsel %vm1796_vm2, %v5737_v19, %v6015_v42 }
 0x2eb   : > { %v2475_v37 = vmax.f32 %v2451_v51, %v2453_v62 }
 0x2ec   : > { %v2474_v28 = vmax.f32 %v2450_v46, %v2452_v8 }
 0x2ed   : > { %v2512_v15 = vrot.slane %v2475_v37, 1  ;;  %v6045_v43 = vpop.permute.xlu0 %2903  ;;  %v6047_v7 = vpop.permute.xlu1 %2901 }
 0x2ee   : > { %v2511_v54 = vrot.slane %v2474_v28, 1 }
 0x2ef   : > { %v2548_v52 = vmax.f32 %v2475_v37, %v2512_v15 }
 0x2f0   : > { %v2513_v1 = vsel %vm2498_vm12, %v2511_v54, %v2512_v15 }
 0x2f1   : > { %2597 = vst.msk [vmem:[#allocation3 + $0x82] sm:$0x7f] %vm2588_vm13, %v2548_v52  ;;  %v2547_v6 = vmax.f32 %v2474_v28, %v2513_v1  ;;  %v3156_v47 = vpop.permute.xlu0 %3155  ;;  %v3154_v58 = vpop.permute.xlu1 %3153  ;;  %v3265_v1 = vsel %vm1796_vm2, %v5725_v41, %v6003_v23 }
 0x2f2   : > { %v3362_v9 = vsel %vm3359_vm1, %v3345_v50, %v3154_v58  ;;  %v3363_v63 = vsel %vm3359_vm1, %v3346_v48, %v3156_v47 }
 0x2f3   : > { %2596 = vst.msk [vmem:[#allocation3 + $0x7a] sm:$0xff] %vm1796_vm2, %v2547_v6  ;;  %v3281_v6 = vsel %vm1862_vm6, %v3265_v1, %v6040_v45 }
 0x2f4   : > { %v3297_v47 = vsel %vm1928_vm7, %v3281_v6, %v6047_v7 }
 0x2f5   : > { %v2778_v27 = vpop.permute.xlu0 %2777  ;;  %v6059_v32 = vpop.permute.xlu1 %2965 }
 0x2f6   : > { %v3267_v16 = vsel %vm1796_vm2, %v5852_v35, %v2778_v27  ;;  %v3313_v30 = vsel %vm1994_vm9, %v3297_v47, %v6059_v32  ;;  %v3282_v32 = vsel %vm1862_vm6, %v3266_v0, %v6036_v5 }
 0x2f7   : > { %v3298_v50 = vsel %vm1928_vm7, %v3282_v32, %v6045_v43 }
 0x2f8   : > { %v2724_v40 = vld [vmem:[#allocation3 + $0x82] sm:$0xff] }
 0x2f9   : > { %v6065_v22 = vpop.permute.xlu0 %3029  ;;  %v3218_v57 = vpop.permute.xlu1 %3217 }
 0x2fa   : > { %v6068_v17 = vld [vmem:[#allocation3 + $0x80] sm:$0xff]  ;;  %v6070_v2 = vld [vmem:[#allocation3 + $0x78] sm:$0xff]  ;;  %v3379_v49 = vsel %vm3376_vm3, %v3362_v9, %v3218_v57  ;;  %v3330_v36 = vsel %vm3325_vm15, %v3313_v30, %v6065_v22 }
 0x2fb   : > { %3099 = vrot.lane.b32.xlu0 %v6068_v17, %s4283_s28  ;;  %3097 = vrot.lane.b32.xlu1 %v6070_v2, %s4283_s28  ;;  %v2723_v34 = vld [vmem:[#allocation3 + $0x7a] sm:$0xff] }
 0x2fc   : > { %4115 = vmatprep.mubr.msk.f32.mxu1 %vm3398_vm4, %v3379_v49  ;;  %v2739_v33 = vld [vmem:[#allocation3 + $0x7c] sm:$0xff] }
 0x2fd   : > { %v2780_v44 = vpop.permute.xlu0 %2779  ;;  %v6085_v53 = vpop.permute.xlu1 %2967 }
 0x2fe   : > { %v3268_v60 = vsel %vm1796_vm2, %v5850_v29, %v2780_v44  ;;  %v2740_v29 = vld [vmem:[#allocation3 + $0x84] sm:$0xff]  ;;  %v3314_v57 = vsel %vm1994_vm9, %v3298_v50, %v6085_v53 }
 0x2ff   : > { %2911 = vrot.lane.b32.xlu0 %v6068_v17, %s4279_s16  ;;  %2909 = vrot.lane.b32.xlu1 %v6070_v2, %s4279_s16 }
 0x301   : > { %v3032_v14 = vpop.permute.xlu0 %3031  ;;  %v3220_v21 = vpop.permute.xlu1 %3219 }
 0x302   : > { %v3380_v39 = vsel %vm3376_vm3, %v3363_v63, %v3220_v21  ;;  %v3331_v56 = vsel %vm3325_vm15, %v3314_v57, %v3032_v14 }
 0x303   : > { %3163 = vrot.lane.b32.xlu0 %v2724_v40, %s4284_s25  ;;  %3161 = vrot.lane.b32.xlu1 %v2723_v34, %s4284_s25 }
 0x304   : > { %4116 = vmatmul.mubr.msk.f32.gmra.mrb[10].mxu1 %vm3398_vm4, %v3380_v39 }
 0x305   : > { %v2844_v20 = vpop.permute.xlu0 %2843  ;;  %v2842_v31 = vpop.permute.xlu1 %2841 }
 0x306   : > { %v3284_v61 = vsel %vm1862_vm6, %v3268_v60, %v2844_v20  ;;  %v3283_v3 = vsel %vm1862_vm6, %v3267_v16, %v2842_v31 }
 0x307   : > { %2973 = vrot.lane.b32.xlu1 %v2723_v34, %s4281_s22  ;;  %2785 = vrot.lane.b32.xlu0 %v2723_v34, %s4275_s27 }
 0x30b   : > { %3225 = vrot.lane.b32.xlu1 %v2739_v33, %s4285_s21  ;;  %3037 = vrot.lane.b32.xlu0 %v2739_v33, %s4282_s26 }
 0x30f   : > { %2975 = vrot.lane.b32.xlu1 %v2724_v40, %s4281_s22  ;;  %2787 = vrot.lane.b32.xlu0 %v2724_v40, %s4275_s27 }
 0x313   : > { %3227 = vrot.lane.b32.xlu1 %v2740_v29, %s4285_s21  ;;  %3039 = vrot.lane.b32.xlu0 %v2740_v29, %s4282_s26 }
 0x317   : > { %2849 = vrot.lane.b32.xlu1 %v2739_v33, %s4277_s29  ;;  %2851 = vrot.lane.b32.xlu0 %v2740_v29, %s4277_s29 }
 0x31d   : > { %v4092_v35 = vpop.f32.mrb[0].mxu1 }
 0x31e   : > { %v2317_v51 = vpop.f32.mrb[1].mxu1  ;;  %v2388_v60 = vmul.f32 %v6024_v25, %v4092_v35 }
 0x31f   : > { %v2387_v16 = vmul.f32 %v6024_v25, %v2317_v51 }
 0x320   : > { %v4086_v62 = vpop.f32.mrb[20].mxu0 }
 0x321   : > { %v3096_v26 = vpop.permute.xlu0 %3095  ;;  %v3094_v46 = vpop.permute.xlu1 %3093  ;;  %v2384_v14 = vmul.f32 %v6024_v25, %v4086_v62 }
 0x322   : > { %v2297_v8 = vpop.f32.mrb[21].mxu0  ;;  %v3347_v59 = vsel %vm3342_vm0, %v3330_v36, %v3094_v46  ;;  %v3348_v19 = vsel %vm3342_vm0, %v3331_v56, %v3096_v26  ;;  %v2427_v26 = vadd.f32 %v6033_v13, %v2388_v60 }
 0x323   : > { %v2383_v63 = vmul.f32 %v6024_v25, %v2297_v8  ;;  %v2423_v40 = vadd.f32 %v6033_v13, %v2384_v14 }
 0x324   : > { %v2459_v1 = vmax.f32 %v2427_v26, 0.0 }
 0x325   : > { %v2908_v38 = vpop.permute.xlu0 %2907  ;;  %v2906_v37 = vpop.permute.xlu1 %2905 }
 0x326   : > { %v3300_v28 = vsel %vm1928_vm7, %v3284_v61, %v2908_v38  ;;  %v3299_v15 = vsel %vm1928_vm7, %v3283_v3, %v2906_v37  ;;  %v2455_v61 = vmax.f32 %v2423_v40, 0.0  ;;  %v2426_v37 = vadd.f32 %v6033_v13, %v2387_v16 }
 0x329   : > { %v3160_v54 = vpop.permute.xlu0 %3159  ;;  %v3158_v52 = vpop.permute.xlu1 %3157 }
 0x32a   : > { %v3364_v41 = vsel %vm3359_vm1, %v3347_v59, %v3158_v52  ;;  %v3365_v42 = vsel %vm3359_vm1, %v3348_v19, %v3160_v54 }
 0x32d   : > { %v2970_v58 = vpop.permute.xlu1 %2969  ;;  %v2782_v11 = vpop.permute.xlu0 %2781 }
 0x32e   : > { %v6128_v27 = vsel %vm1994_vm9, %v3299_v15, %v2970_v58  ;;  %v3269_v43 = vsel %vm1796_vm2, %v5957_v24, %v2782_v11  ;;  %v2458_v58 = vmax.f32 %v2426_v37, 0.0 }
 0x331   : > { %v3222_v23 = vpop.permute.xlu1 %3221  ;;  %v6134_v45 = vpop.permute.xlu0 %3033 }
 0x332   : > { %v3381_v7 = vsel %vm3376_vm3, %v3364_v41, %v3222_v23 }
 0x333   : > { %4118 = vmatprep.mubr.msk.f32.mxu1 %vm3398_vm4, %v3381_v7 }
 0x335   : > { %v2972_v22 = vpop.permute.xlu1 %2971  ;;  %v2784_v9 = vpop.permute.xlu0 %2783 }
 0x336   : > { %v6148_v49 = vsel %vm1994_vm9, %v3300_v28, %v2972_v22  ;;  %v3270_v18 = vsel %vm1796_vm2, %v5955_v4, %v2784_v9  ;;  %v2422_v4 = vadd.f32 %v6033_v13, %v2383_v63 }
 0x338   : > { %v2454_v33 = vmax.f32 %v2422_v4, 0.0 }
 0x339   : > { %v3224_v12 = vpop.permute.xlu1 %3223  ;;  %v6153_v44 = vpop.permute.xlu0 %3035 }
 0x33a   : > { %v3382_v5 = vsel %vm3376_vm3, %v3365_v42, %v3224_v12 }
 0x33b   : > { %4119 = vmatmul.mubr.msk.f32.gmra.mrb[12].mxu1 %vm3398_vm4, %v3382_v5 }
 0x33d   : > { %v2846_v53 = vpop.permute.xlu1 %2845  ;;  %v2848_v10 = vpop.permute.xlu0 %2847 }
 0x33e   : > { %v6162_v55 = vsel %vm1862_vm6, %v3269_v43, %v2846_v53  ;;  %v6165_v48 = vsel %vm1862_vm6, %v3270_v18, %v2848_v10 }
 0x349   : > { %v4089_v21 = vpop.f32.mrb[22].mxu0 }
 0x34a   : > { %v2386_v24 = vmul.f32 %v6024_v25, %v4089_v21  ;;  %v2307_v34 = vpop.f32.mrb[23].mxu0 }
 0x34b   : > { %v2385_v39 = vmul.f32 %v6024_v25, %v2307_v34 }
 0x34c   : > { %v2425_v20 = vadd.f32 %v6033_v13, %v2386_v24 }
 0x34d   : > { %v2424_v31 = vadd.f32 %v6033_v13, %v2385_v39 }
 0x34e   : > { %v2457_v3 = vmax.f32 %v2425_v20, 0.0 }
 0x34f   : > { %v2456_v29 = vmax.f32 %v2424_v31, 0.0 }
 0x350   : > { %v4095_v62 = vpop.f32.mrb[2].mxu1  ;;  %v2477_v46 = vmax.f32 %v2455_v61, %v2457_v3 }
 0x351   : > { %v2390_v8 = vmul.f32 %v6024_v25, %v4095_v62  ;;  %v2327_v38 = vpop.f32.mrb[3].mxu1  ;;  %v2476_v35 = vmax.f32 %v2454_v33, %v2456_v29 }
 0x352   : > { %v2389_v28 = vmul.f32 %v6024_v25, %v2327_v38  ;;  %v2515_v15 = vrot.slane %v2477_v46, 1 }
 0x353   : > { %v2429_v51 = vadd.f32 %v6033_v13, %v2390_v8  ;;  %v2514_v54 = vrot.slane %v2476_v35, 1 }
 0x354   : > { %v2428_v52 = vadd.f32 %v6033_v13, %v2389_v28  ;;  %v2550_v6 = vmax.f32 %v2477_v46, %v2515_v15 }
 0x355   : > { %v2461_v47 = vmax.f32 %v2429_v51, 0.0  ;;  %v2516_v11 = vsel %vm2498_vm12, %v2514_v54, %v2515_v15 }
 0x356   : > { %v2460_v30 = vmax.f32 %v2428_v52, 0.0  ;;  %2599 = vst.msk [vmem:[#allocation3 + $0x9a] sm:$0x7f] %vm2588_vm13, %v2550_v6  ;;  %v2549_v36 = vmax.f32 %v2476_v35, %v2516_v11 }
 0x357   : > { %v2479_v59 = vmax.f32 %v2459_v1, %v2461_v47 }
 0x358   : > { %v2478_v41 = vmax.f32 %v2458_v58, %v2460_v30  ;;  %2598 = vst.msk [vmem:[#allocation3 + $0x92] sm:$0xff] %vm1796_vm2, %v2549_v36 }
 0x359   : > { %v2518_v23 = vrot.slane %v2479_v59, 1 }
 0x35a   : > { %v2517_v7 = vrot.slane %v2478_v41, 1 }
 0x35b   : > { %v2552_v0 = vmax.f32 %v2479_v59, %v2518_v23 }
 0x35c   : > { %v2519_v32 = vsel %vm2498_vm12, %v2517_v7, %v2518_v23 }
 0x35d   : > { %2601 = vst.msk [vmem:[#allocation3 + $0xb2] sm:$0x7f] %vm2588_vm13, %v2552_v0  ;;  %v2551_v50 = vmax.f32 %v2478_v41, %v2519_v32  ;;  %v2726_v57 = vld [vmem:[#allocation3 + $0x9a] sm:$0xff] }
 0x35e   : > { %v2742_v21 = vld [vmem:[#allocation3 + $0x9c] sm:$0xff] }
 0x35f   : > { %2600 = vst.msk [vmem:[#allocation3 + $0xaa] sm:$0xff] %vm1796_vm2, %v2551_v50  ;;  %v6189_v22 = vld [vmem:[#allocation3 + $0x98] sm:$0xff]  ;;  %v6191_v9 = vld [vmem:[#allocation3 + $0x90] sm:$0xff] }
 0x360   : > { %3103 = vrot.lane.b32.xlu0 %v6189_v22, %s4283_s28  ;;  %3101 = vrot.lane.b32.xlu1 %v6191_v9, %s4283_s28  ;;  %v2725_v56 = vld [vmem:[#allocation3 + $0x92] sm:$0xff] }
 0x361   : > { %v2741_v43 = vld [vmem:[#allocation3 + $0x94] sm:$0xff] }
 0x364   : > { %2915 = vrot.lane.b32.xlu0 %v6189_v22, %s4279_s16  ;;  %2913 = vrot.lane.b32.xlu1 %v6191_v9, %s4279_s16  ;;  %v2728_v30 = vld [vmem:[#allocation3 + $0xb2] sm:$0xff] }
 0x365   : > { %v2744_v41 = vld [vmem:[#allocation3 + $0xb4] sm:$0xff] }
 0x366   : > { %v6235_v62 = vld [vmem:[#allocation3 + $0xa8] sm:$0xff]  ;;  %v6237_v26 = vld [vmem:[#allocation3 + $0xb0] sm:$0xff] }
 0x367   : > { %v2743_v59 = vld [vmem:[#allocation3 + $0xac] sm:$0xff] }
 0x368   : > { %3167 = vrot.lane.b32.xlu0 %v2726_v57, %s4284_s25  ;;  %3165 = vrot.lane.b32.xlu1 %v2725_v56, %s4284_s25 }
 0x369   : > { %v4098_v19 = vpop.f32.mrb[4].mxu1 }
 0x36a   : > { %v2337_v42 = vpop.f32.mrb[5].mxu1  ;;  %v2392_v40 = vmul.f32 %v6024_v25, %v4098_v19 }
 0x36b   : > { %v2391_v34 = vmul.f32 %v6024_v25, %v2337_v42  ;;  %v2715_v42 = vld [vmem:[#allocation3 + $0xd8] sm:$0xff] }
 0x36c   : > { %2977 = vrot.lane.b32.xlu1 %v2725_v56, %s4281_s22  ;;  %2789 = vrot.lane.b32.xlu0 %v2725_v56, %s4275_s27  ;;  %v2431_v60 = vadd.f32 %v6033_v13, %v2392_v40 }
 0x36d   : > { %v3100_v12 = vpop.permute.xlu0 %3099  ;;  %v3098_v5 = vpop.permute.xlu1 %3097  ;;  %v2430_v3 = vadd.f32 %v6033_v13, %v2391_v34  ;;  %v6299_v34 = vld [vmem:[%s6602_s5] ss:$0 sm:$0xff] }
 0x36e   : > { %v2463_v46 = vmax.f32 %v2431_v60, 0.0  ;;  %v6305_v60 = vld [vmem:[%s6603_s6] ss:$0 sm:$0xff] }
 0x370   : > { %3229 = vrot.lane.b32.xlu1 %v2741_v43, %s4285_s21  ;;  %3041 = vrot.lane.b32.xlu0 %v2741_v43, %s4282_s26 }
 0x371   : > { %v2912_v18 = vpop.permute.xlu0 %2911  ;;  %v2910_v53 = vpop.permute.xlu1 %2909 }
 0x372   : > { %v3302_v10 = vsel %vm1928_vm7, %v6165_v48, %v2912_v18  ;;  %v3301_v14 = vsel %vm1928_vm7, %v6162_v55, %v2910_v53  ;;  %v3332_v55 = vsel %vm3325_vm15, %v6128_v27, %v6134_v45  ;;  %v2747_v18 = vld [vmem:[#allocation3 + $0xdc] sm:$0xff] }
 0x373   : > { %v3349_v4 = vsel %vm3342_vm0, %v3332_v55, %v3098_v5 }
 0x374   : > { %2979 = vrot.lane.b32.xlu1 %v2726_v57, %s4281_s22  ;;  %2791 = vrot.lane.b32.xlu0 %v2726_v57, %s4275_s27 }
 0x375   : > { %v3162_v63 = vpop.permute.xlu1 %3161  ;;  %v3164_v37 = vpop.permute.xlu0 %3163 }
 0x376   : > { %v3366_v20 = vsel %vm3359_vm1, %v3349_v4, %v3162_v63 }
 0x378   : > { %3231 = vrot.lane.b32.xlu1 %v2742_v21, %s4285_s21  ;;  %3043 = vrot.lane.b32.xlu0 %v2742_v21, %s4282_s26 }
 0x379   : > { %v2974_v24 = vpop.permute.xlu1 %2973  ;;  %v6284_v5 = vpop.permute.xlu0 %2785 }
 0x37a   : > { %v6218_v48 = vsel %vm1994_vm9, %v3301_v14, %v2974_v24  ;;  %v2748_v14 = vld [vmem:[#allocation3 + $0xe4] sm:$0xff] }
 0x37c   : > { %v4101_v39 = vpop.f32.mrb[6].mxu1  ;;  %2853 = vrot.lane.b32.xlu1 %v2741_v43, %s4277_s29  ;;  %2855 = vrot.lane.b32.xlu0 %v2742_v21, %s4277_s29  ;;  %v2716_v43 = vld [vmem:[#allocation3 + $0xe0] sm:$0xff] }
 0x37d   : > { %v2394_v16 = vmul.f32 %v6024_v25, %v4101_v39  ;;  %v2347_v31 = vpop.f32.mrb[7].mxu1  ;;  %v3226_v61 = vpop.permute.xlu1 %3225 }
 0x37e   : > { %v2393_v33 = vmul.f32 %v6024_v25, %v2347_v31  ;;  %v3383_v27 = vsel %vm3376_vm3, %v3366_v20, %v3226_v61  ;;  %v2462_v25 = vmax.f32 %v2430_v3, 0.0  ;;  %v3038_v53 = vpop.permute.xlu0 %3037 }
 0x37f   : > { %v2433_v45 = vadd.f32 %v6033_v13, %v2394_v16  ;;  %4121 = vmatprep.mubr.msk.f32.mxu1 %vm3398_vm4, %v3383_v27 }
 0x380   : > { %v2432_v29 = vadd.f32 %v6033_v13, %v2393_v33  ;;  %3105 = vrot.lane.b32.xlu1 %v6235_v62, %s4283_s28  ;;  %3107 = vrot.lane.b32.xlu0 %v6237_v26, %s4283_s28  ;;  %v3333_v13 = vsel %vm3325_vm15, %v6148_v49, %v6153_v44  ;;  %v2727_v44 = vld [vmem:[#allocation3 + $0xaa] sm:$0xff] }
 0x381   : > { %v2465_v8 = vmax.f32 %v2433_v45, 0.0  ;;  %v2976_v38 = vpop.permute.xlu1 %2975  ;;  %v3350_v51 = vsel %vm3342_vm0, %v3333_v13, %v3100_v12  ;;  %v2731_v12 = vld [vmem:[#allocation3 + $0xda] sm:$0xff] }
 0x382   : > { %v2464_v35 = vmax.f32 %v2432_v29, 0.0  ;;  %v6244_v28 = vsel %vm1994_vm9, %v3302_v10, %v2976_v38  ;;  %v3367_v52 = vsel %vm3359_vm1, %v3350_v51, %v3164_v37  ;;  %v2732_v10 = vld [vmem:[#allocation3 + $0xe2] sm:$0xff]  ;;  %v6291_v63 = vpop.permute.xlu0 %2787 }
 0x383   : > { %v2481_v15 = vmax.f32 %v2463_v46, %v2465_v8 }
 0x384   : > { %v2480_v54 = vmax.f32 %v2462_v25, %v2464_v35  ;;  %2917 = vrot.lane.b32.xlu1 %v6235_v62, %s4279_s16  ;;  %2919 = vrot.lane.b32.xlu0 %v6237_v26, %s4279_s16 }
 0x385   : > { %v2521_v1 = vrot.slane %v2481_v15, 1  ;;  %v3228_v6 = vpop.permute.xlu1 %3227 }
 0x386   : > { %v2520_v47 = vrot.slane %v2480_v54, 1  ;;  %v3384_v58 = vsel %vm3376_vm3, %v3367_v52, %v3228_v6  ;;  %v3040_v21 = vpop.permute.xlu0 %3039 }
 0x387   : > { %v2554_v11 = vmax.f32 %v2481_v15, %v2521_v1  ;;  %4122 = vmatmul.mubr.msk.f32.gmra.mrb[14].mxu1 %vm3398_vm4, %v3384_v58  ;;  %v3334_v58 = vsel %vm3325_vm15, %v6218_v48, %v3038_v53  ;;  %v3335_v48 = vsel %vm3325_vm15, %v6244_v28, %v3040_v21  ;;  %v3271_v28 = vsel %vm1796_vm2, %v6070_v2, %v6284_v5 }
 0x388   : > { %v2522_v49 = vsel %vm2498_vm12, %v2520_v47, %v2521_v1  ;;  %3169 = vrot.lane.b32.xlu1 %v2727_v44, %s4284_s25  ;;  %3171 = vrot.lane.b32.xlu0 %v2728_v30, %s4284_s25  ;;  %v3272_v2 = vsel %vm1796_vm2, %v6068_v17, %v6291_v63 }
 0x389   : > { %2603 = vst.msk [vmem:[#allocation3 + $0xca] sm:$0x7f] %vm2588_vm13, %v2554_v11  ;;  %v2553_v36 = vmax.f32 %v2480_v54, %v2522_v49  ;;  %v2850_v40 = vpop.permute.xlu1 %2849 }
 0x38a   : > { %v6294_v24 = vpop.permute.xlu0 %2851  ;;  %v3287_v21 = vsel %vm1862_vm6, %v3271_v28, %v2850_v40 }
 0x38b   : > { %2602 = vst.msk [vmem:[#allocation3 + $0xc2] sm:$0xff] %vm1796_vm2, %v2553_v36  ;;  %v3288_v5 = vsel %vm1862_vm6, %v3272_v2, %v6294_v24 }
 0x38c   : > { %2981 = vrot.lane.b32.xlu1 %v2727_v44, %s4281_s22  ;;  %2793 = vrot.lane.b32.xlu0 %v2727_v44, %s4275_s27 }
 0x390   : > { %3233 = vrot.lane.b32.xlu1 %v2743_v59, %s4285_s21  ;;  %3045 = vrot.lane.b32.xlu0 %v2743_v59, %s4282_s26  ;;  %v2730_v32 = vld [vmem:[#allocation3 + $0xca] sm:$0xff] }
 0x391   : > { %v2746_v56 = vld [vmem:[#allocation3 + $0xcc] sm:$0xff] }
 0x392   : > { %v2713_v23 = vld [vmem:[#allocation3 + $0xc0] sm:$0xff]  ;;  %v2714_v7 = vld [vmem:[#allocation3 + $0xc8] sm:$0xff] }
 0x393   : > { %v2729_v0 = vld [vmem:[#allocation3 + $0xc2] sm:$0xff] }
 0x394   : > { %2983 = vrot.lane.b32.xlu1 %v2728_v30, %s4281_s22  ;;  %2795 = vrot.lane.b32.xlu0 %v2728_v30, %s4275_s27  ;;  %v2745_v57 = vld [vmem:[#allocation3 + $0xc4] sm:$0xff] }
 0x398   : > { %3235 = vrot.lane.b32.xlu1 %v2744_v41, %s4285_s21  ;;  %3047 = vrot.lane.b32.xlu0 %v2744_v41, %s4282_s26 }
 0x39c   : > { %2857 = vrot.lane.b32.xlu1 %v2743_v59, %s4277_s29  ;;  %2859 = vrot.lane.b32.xlu0 %v2744_v41, %s4277_s29 }
 0x3a0   : > { %3109 = vrot.lane.b32.xlu1 %v2713_v23, %s4283_s28  ;;  %3111 = vrot.lane.b32.xlu0 %v2714_v7, %s4283_s28 }
 0x3a4   : > { %2921 = vrot.lane.b32.xlu1 %v2713_v23, %s4279_s16  ;;  %2923 = vrot.lane.b32.xlu0 %v2714_v7, %s4279_s16 }
 0x3a8   : > { %3173 = vrot.lane.b32.xlu1 %v2729_v0, %s4284_s25  ;;  %3175 = vrot.lane.b32.xlu0 %v2730_v32, %s4284_s25 }
 0x3ac   : > { %2985 = vrot.lane.b32.xlu1 %v2729_v0, %s4281_s22  ;;  %2987 = vrot.lane.b32.xlu0 %v2730_v32, %s4281_s22 }
 0x3b0   : > { %v4114_v50 = vpop.f32.mrb[8].mxu1  ;;  %3237 = vrot.lane.b32.xlu1 %v2745_v57, %s4285_s21  ;;  %3239 = vrot.lane.b32.xlu0 %v2746_v56, %s4285_s21 }
 0x3b1   : > { %v3517_v19 = vpop.f32.mrb[9].mxu1  ;;  %v3604_v39 = vmul.f32 %v4114_v50, %v6299_v34 }
 0x3b2   : > { %v3603_v20 = vmul.f32 %v6299_v34, %v3517_v19 }
 0x3b3   : > { %v3627_v61 = vadd.f32 %v6305_v60, %v3604_v39 }
 0x3b4   : > { %3049 = vrot.lane.b32.xlu1 %v2745_v57, %s4282_s26  ;;  %3113 = vrot.lane.b32.xlu0 %v2715_v42, %s4283_s28  ;;  %v3626_v45 = vadd.f32 %v6305_v60, %v3603_v20 }
 0x3b5   : > { %v3643_v25 = vmax.f32 %v3627_v61, 0.0 }
 0x3b6   : > { %v3642_v13 = vmax.f32 %v3626_v45, 0.0 }
 0x3b8   : > { %3051 = vrot.lane.b32.xlu1 %v2746_v56, %s4282_s26  ;;  %3177 = vrot.lane.b32.xlu0 %v2731_v12, %s4284_s25  ;;  %s323_s26 = sand.u32 1, %s4263_s10  }
 0x3b9   : > { %s324_s27 = scalar_lea.vmem [#allocation4], %s323_s26 }
 0x3ba   : > { %s3857_s29 = sshll.u32 %s324_s27, 4  ;;  %s6557_s29 = int_to_ptr.vmem [resolvable:$true] %s3857_s29 }
 0x3bb   : > { %s4209_s13 = scalar_lea.vmem %s6557_s29, 16 }
 0x3bc   : > { %3115 = vrot.lane.b32.xlu1 %v2716_v43, %s4283_s28  ;;  %3241 = vrot.lane.b32.xlu0 %v2747_v18, %s4285_s21  ;;  %s6555_s28 = scalar_lea.hbm %s6606_s9, %s3988_s17  ;;  %p4210_p11 = scmp.ne.s32.totalorder %s6557_s29, %s4209_s13 }
 0x3be   : > { %p4211_p12 = pnand %p4210_p11, %p4375_p5 }
 0x3c0   : > { %3179 = vrot.lane.b32.xlu1 %v2732_v10, %s4284_s25  ;;  %s3845_s25 = scalar_lea.sflag [#allocation5], %s323_s26  ;;  %p4212_p13 = pneg %p4211_p12 }
 0x3c4   : > { %3243 = vrot.lane.b32.xlu1 %v2748_v14, %s4285_s21  ;;  %s4286_s21 = smov [#allocation4]  }
 0x3c5   : > { %s4213_s14 = sshll.u32 %s4286_s21, 4  ;;  %s4214_s14 = int_to_ptr.vmem [resolvable:$false] %s4213_s14 }
 0x3c6   : > { %s4215_s24 = scalar_lea.vmem %s4214_s14, 32  ;;  %p4216_p0 = scmp.lt.s32.totalorder %s6557_s29, %s4214_s14 }
 0x3c7   : > { %p4217_p1 = scmp.lt.s32.totalorder %s4215_s24, %s4209_s13 }
 0x3c9   : > { %p4218_p2 = por %p4217_p1, %p4216_p0 }
 0x3cb   : > { %p4219_p3 = pnand %p4218_p2, %p4212_p13 }
 0x3d2   : > { %v3104_v55 = vpop.permute.xlu0 %3103  ;;  %v3102_v4 = vpop.permute.xlu1 %3101 }
 0x3d3   : > { %v3351_v11 = vsel %vm3342_vm0, %v3334_v58, %v3102_v4  ;;  %v3352_v0 = vsel %vm3342_vm0, %v3335_v48, %v3104_v55 }
 0x3d6   : > { %v6308_v31 = vpop.permute.xlu0 %2915  ;;  %v2914_v27 = vpop.permute.xlu1 %2913 }
 0x3d7   : > { %v4117_v16 = vpop.f32.mrb[10].mxu1  ;;  %v3303_v4 = vsel %vm1928_vm7, %v3287_v21, %v2914_v27  ;;  %v3304_v27 = vsel %vm1928_vm7, %v3288_v5, %v6308_v31 }
 0x3d8   : > { %v3606_v3 = vmul.f32 %v4117_v16, %v6299_v34  ;;  %v3527_v33 = vpop.f32.mrb[11].mxu1 }
 0x3d9   : > { %v3605_v29 = vmul.f32 %v6299_v34, %v3527_v33 }
 0x3da   : > { %v3629_v46 = vadd.f32 %v6305_v60, %v3606_v3  ;;  %v3168_v38 = vpop.permute.xlu0 %3167  ;;  %v3166_v35 = vpop.permute.xlu1 %3165 }
 0x3db   : > { %v3628_v8 = vadd.f32 %v6305_v60, %v3605_v29  ;;  %v3368_v36 = vsel %vm3359_vm1, %v3351_v11, %v3166_v35  ;;  %v3369_v50 = vsel %vm3359_vm1, %v3352_v0, %v3168_v38 }
 0x3dc   : > { %v3645_v37 = vmax.f32 %v3629_v46, 0.0 }
 0x3dd   : > { %v3644_v15 = vmax.f32 %v3628_v8, 0.0 }
 0x3de   : > { %v6316_v51 = vmax.f32 %v3643_v25, %v3645_v37  ;;  %v6318_v52 = vpop.permute.xlu0 %2789  ;;  %v2978_v6 = vpop.permute.xlu1 %2977 }
 0x3df   : > { %v3658_v54 = vmax.f32 %v3642_v13, %v3644_v15  ;;  %v3319_v20 = vsel %vm1994_vm9, %v3303_v4, %v2978_v6 }
 0x3e0   : > { %v3676_v1 = vrot.slane %v6316_v51, 2 }
 0x3e1   : > { %v3675_v47 = vrot.slane %v3658_v54, 2 }
 0x3e2   : > { %v3042_v44 = vpop.permute.xlu0 %3041  ;;  %v3230_v59 = vpop.permute.xlu1 %3229 }
 0x3e3   : > { %v3677_v49 = vsel %vm3674_vm5, %v3675_v47, %v3676_v1  ;;  %v3385_v41 = vsel %vm3376_vm3, %v3368_v36, %v3230_v59  ;;  %v3336_v16 = vsel %vm3325_vm15, %v3319_v20, %v3042_v44  ;;  %v3273_v36 = vsel %vm1796_vm2, %v6191_v9, %v6318_v52 }
 0x3e4   : > { %v6327_v30 = vmax.f32 %v3658_v54, %v3677_v49  ;;  %4124 = vmatprep.mubr.msk.f32.mxu1 %vm3398_vm4, %v3385_v41 }
 0x3e6   : > { %v2792_v23 = vpop.permute.xlu0 %2791  ;;  %v2980_v7 = vpop.permute.xlu1 %2979 }
 0x3e7   : > { %v3320_v8 = vsel %vm1994_vm9, %v3304_v27, %v2980_v7  ;;  %v3274_v44 = vsel %vm1796_vm2, %v6189_v22, %v2792_v23 }
 0x3ea   : > { %v3044_v32 = vpop.permute.xlu0 %3043  ;;  %v3232_v57 = vpop.permute.xlu1 %3231 }
 0x3eb   : > { %v3386_v56 = vsel %vm3376_vm3, %v3369_v50, %v3232_v57  ;;  %v3337_v38 = vsel %vm3325_vm15, %v3320_v8, %v3044_v32 }
 0x3ec   : > { %4125 = vmatmul.mubr.msk.f32.gmra.mrb[16].mxu1 %vm3398_vm4, %v3386_v56 }
 0x3ee   : > { %v2856_v19 = vpop.permute.xlu0 %2855  ;;  %v2854_v42 = vpop.permute.xlu1 %2853 }
 0x3ef   : > { %v3290_v59 = vsel %vm1862_vm6, %v3274_v44, %v2856_v19  ;;  %v3289_v41 = vsel %vm1862_vm6, %v3273_v36, %v2854_v42  ;;  %v3973_v36 = vld [vmem:[%s6604_s7 + $0x48] sm:$0x3f] }
 0x3f2   : > { %v3108_v12 = vpop.permute.xlu0 %3107  ;;  %v3106_v43 = vpop.permute.xlu1 %3105 }
 0x3f3   : > { %v3353_v61 = vsel %vm3342_vm0, %v3336_v16, %v3106_v43  ;;  %v3354_v25 = vsel %vm3342_vm0, %v3337_v38, %v3108_v12 }
 0x3f6   : > { %v2920_v18 = vpop.permute.xlu0 %2919  ;;  %v2918_v53 = vpop.permute.xlu1 %2917 }
 0x3f7   : > { %v3306_v7 = vsel %vm1928_vm7, %v3290_v59, %v2920_v18  ;;  %v3305_v0 = vsel %vm1928_vm7, %v3289_v41, %v2918_v53  ;;  %v3981_v59 = vld [vmem:[%s6604_s7 + $0x88] sm:$0x3f] }
 0x3fa   : > { %v3172_v10 = vpop.permute.xlu0 %3171  ;;  %v3170_v14 = vpop.permute.xlu1 %3169 }
 0x3fb   : > { %v3370_v33 = vsel %vm3359_vm1, %v3353_v61, %v3170_v14  ;;  %v3371_v35 = vsel %vm3359_vm1, %v3354_v25, %v3172_v10 }
 0x3fe   : > { %v2794_v55 = vpop.permute.xlu0 %2793  ;;  %v2982_v39 = vpop.permute.xlu1 %2981 }
 0x3ff   : > { %v3321_v57 = vsel %vm1994_vm9, %v3305_v0, %v2982_v39  ;;  %v3275_v53 = vsel %vm1796_vm2, %v6235_v62, %v2794_v55  ;;  %v3706_v0 = vld [vmem:[%s6604_s7 + $0x18] sm:$0x3f] }
 0x402   : > { %v3046_v3 = vpop.permute.xlu0 %3045  ;;  %v3234_v45 = vpop.permute.xlu1 %3233 }
 0x403   : > { %v3387_v29 = vsel %vm3376_vm3, %v3370_v33, %v3234_v45  ;;  %v3338_v23 = vsel %vm3325_vm15, %v3321_v57, %v3046_v3  ;;  %v3975_v57 = vld [vmem:[%s6604_s7 + $0x58] sm:$0x3f] }
 0x404   : > { %4127 = vmatprep.mubr.msk.f32.mxu1 %vm3398_vm4, %v3387_v29 }
 0x406   : > { %v2796_v40 = vpop.permute.xlu0 %2795  ;;  %v2984_v46 = vpop.permute.xlu1 %2983 }
 0x407   : > { %v3322_v32 = vsel %vm1994_vm9, %v3306_v7, %v2984_v46  ;;  %v3276_v45 = vsel %vm1796_vm2, %v6237_v26, %v2796_v40  ;;  %vm3726_vm2 = vcmask 62464   ;;  %v3703_v7 = vld [vmem:[%s6604_s7] sm:$0xff] }
 0x40a   : > { %v3048_v37 = vpop.permute.xlu0 %3047  ;;  %v3236_v17 = vpop.permute.xlu1 %3235 }
 0x40b   : > { %v3388_v63 = vsel %vm3376_vm3, %v3371_v35, %v3236_v17  ;;  %v3339_v22 = vsel %vm3325_vm15, %v3322_v32, %v3048_v37 }
 0x40c   : > { %4128 = vmatmul.mubr.msk.f32.gmra.mrb[18].mxu1 %vm3398_vm4, %v3388_v63 }
 0x40e   : > { %v4120_v24 = vpop.f32.mrb[12].mxu1  ;;  %v2860_v15 = vpop.permute.xlu0 %2859 }
 0x40f   : > { %v3537_v13 = vpop.f32.mrb[13].mxu1  ;;  %v2858_v54 = vpop.permute.xlu1 %2857  ;;  %v3292_v29 = vsel %vm1862_vm6, %v3276_v45, %v2860_v15  ;;  %v3608_v26 = vmul.f32 %v4120_v24, %v6299_v34 }
 0x410   : > { %v3291_v14 = vsel %vm1862_vm6, %v3275_v53, %v2858_v54  ;;  %v3607_v40 = vmul.f32 %v6299_v34, %v3537_v13  ;;  %v3704_v13 = vld [vmem:[%s6604_s7 + $0x8] sm:$0x3f] }
 0x411   : > { %v3631_v17 = vadd.f32 %v6305_v60, %v3608_v26 }
 0x412   : > { %v3112_v31 = vpop.permute.xlu0 %3111  ;;  %v3630_v54 = vadd.f32 %v6305_v60, %v3607_v40 }
 0x413   : > { %v3110_v6 = vpop.permute.xlu1 %3109  ;;  %v3356_v9 = vsel %vm3342_vm0, %v3339_v22, %v3112_v31  ;;  %v3983_v22 = vld [vmem:[%s6604_s7 + $0x98] sm:$0x3f] }
 0x414   : > { %v3355_v52 = vsel %vm3342_vm0, %v3338_v23, %v3110_v6 }
 0x416   : > { %v2924_v47 = vpop.permute.xlu0 %2923 }
 0x417   : > { %v2922_v58 = vpop.permute.xlu1 %2921  ;;  %v3308_v2 = vsel %vm1928_vm7, %v3292_v29, %v2924_v47  ;;  %v3696_v47 = vmax.f32 %v6316_v51, %v3676_v1 }
 0x418   : > { %v3307_v21 = vsel %vm1928_vm7, %v3291_v14, %v2922_v58  ;;  %v3647_v58 = vmax.f32 %v3631_v17, 0.0  ;;  %vm3748_vm7 = vcmask 0  }
 0x419   : > { %v3712_v51 = vmul.f32 %v3704_v13, %v3696_v47  ;;  %v3760_v32 = vmul.f32 %v3973_v36, %v3696_v47 }
 0x41a   : > { %v3176_v11 = vpop.permute.xlu0 %3175 }
 0x41b   : > { %v3174_v49 = vpop.permute.xlu1 %3173  ;;  %v3373_v56 = vsel %vm3359_vm1, %v3356_v9, %v3176_v11  ;;  %v3972_v9 = vld [vmem:[%s6604_s7 + $0x40] sm:$0xff] }
 0x41c   : > { %v3372_v42 = vsel %vm3359_vm1, %v3355_v52, %v3174_v49  ;;  %v3646_v49 = vmax.f32 %v3630_v54, 0.0  ;;  %v3980_v52 = vld [vmem:[%s6604_s7 + $0x80] sm:$0xff] }
 0x41e   : > { %v2988_v48 = vpop.permute.xlu0 %2987 }
 0x41f   : > { %v2986_v50 = vpop.permute.xlu1 %2985  ;;  %v3324_v27 = vsel %vm1994_vm9, %v3308_v2, %v2988_v48 }
 0x420   : > { %v3323_v4 = vsel %vm1994_vm9, %v3307_v21, %v2986_v50  ;;  %v3807_v50 = vmul.f32 %v3981_v59, %v3696_v47  ;;  %v3774_v21 = vsel %vm3726_vm2, %v3760_v32, 0.0 }
 0x422   : > { %v3240_v19 = vpop.permute.xlu0 %3239 }
 0x423   : > { %v3238_v12 = vpop.permute.xlu1 %3237  ;;  %v3390_v43 = vsel %vm3376_vm3, %v3373_v56, %v3240_v19  ;;  %v3727_v19 = vsel %vm3726_vm2, %v3712_v51, 0.0 }
 0x424   : > { %v3389_v18 = vsel %vm3376_vm3, %v3372_v42, %v3238_v12  ;;  %v3711_v42 = vmul.f32 %v3703_v7, %v6327_v30  ;;  %v3708_v7 = vld [vmem:[%s6604_s7 + $0x28] sm:$0x3f] }
 0x425   : > { %4130 = vmatprep.mubr.msk.f32.mxu1 %vm3398_vm4, %v3389_v18 }
 0x426   : > { %4131 = vmatmul.mubr.msk.f32.gmra.mrb[20].mxu1 %vm3398_vm4, %v3390_v43  ;;  %v3114_v10 = vpop.permute.xlu0 %3113  ;;  %v3705_v43 = vld [vmem:[%s6604_s7 + $0x10] sm:$0xff] }
 0x427   : > { %v3050_v28 = vpop.permute.xlu1 %3049 }
 0x428   : > { %v3340_v39 = vsel %vm3325_vm15, %v3323_v4, %v3050_v28  ;;  %v3974_v28 = vld [vmem:[%s6604_s7 + $0x50] sm:$0xff]  ;;  %v3821_v4 = vsel %vm3726_vm2, %v3807_v50, 0.0 }
 0x429   : > { %v3357_v61 = vsel %vm3342_vm0, %v3340_v39, %v3114_v10  ;;  %v3759_v39 = vmul.f32 %v3972_v9, %v6327_v30 }
 0x42a   : > { %v3178_v20 = vpop.permute.xlu0 %3177 }
 0x42b   : > { %v3052_v16 = vpop.permute.xlu1 %3051  ;;  %v3374_v3 = vsel %vm3359_vm1, %v3357_v61, %v3178_v20  ;;  %v3806_v20 = vmul.f32 %v3980_v52, %v6327_v30 }
 0x42c   : > { %v3341_v46 = vsel %vm3325_vm15, %v3324_v27, %v3052_v16  ;;  %v3982_v16 = vld [vmem:[%s6604_s7 + $0x90] sm:$0xff] }
 0x42e   : > { %v3242_v33 = vpop.permute.xlu0 %3241 }
 0x42f   : > { %v3116_v62 = vpop.permute.xlu1 %3115  ;;  %v3391_v55 = vsel %vm3376_vm3, %v3374_v3, %v3242_v33 }
 0x430   : > { %4133 = vmatprep.mubr.msk.f32.mxu1 %vm3398_vm4, %v3391_v55  ;;  %v3358_v8 = vsel %vm3342_vm0, %v3341_v46, %v3116_v62  ;;  %v3767_v46 = vsel %vm1862_vm6, %v3759_v39, 0.0 }
 0x433   : > { %v3180_v5 = vpop.permute.xlu1 %3179 }
 0x434   : > { %v3375_v38 = vsel %vm3359_vm1, %v3358_v8, %v3180_v5  ;;  %v3719_v5 = vsel %vm1862_vm6, %v3711_v42, 0.0  ;;  %v3984_v42 = vld [vmem:[%s6604_s7 + $0xa0] sm:$0xff] }
 0x437   : > { %v3244_v25 = vpop.permute.xlu1 %3243 }
 0x438   : > { %v3392_v37 = vsel %vm3376_vm3, %v3375_v38, %v3244_v25  ;;  %v3814_v25 = vsel %vm1862_vm6, %v3806_v20, 0.0 }
 0x439   : > { %4134 = vmatmul.mubr.msk.f32.gmra.mrb[22].mxu1 %vm3398_vm4, %v3392_v37 }
 0x45a   : > { %v4123_v35 = vpop.f32.mrb[14].mxu1 }
 0x45b   : > { %v3610_v63 = vmul.f32 %v4123_v35, %v6299_v34  ;;  %v3547_v15 = vpop.f32.mrb[15].mxu1 }
 0x45c   : > { %v3609_v31 = vmul.f32 %v6299_v34, %v3547_v15 }
 0x45d   : > { %v3633_v6 = vadd.f32 %v6305_v60, %v3610_v63 }
 0x45e   : > { %v3632_v24 = vadd.f32 %v6305_v60, %v3609_v31 }
 0x45f   : > { %v3649_v11 = vmax.f32 %v3633_v6, 0.0 }
 0x460   : > { %v3648_v44 = vmax.f32 %v3632_v24, 0.0 }
 0x461   : > { %v3661_v41 = vmax.f32 %v3647_v58, %v3649_v11 }
 0x462   : > { %v3660_v1 = vmax.f32 %v3646_v49, %v3648_v44 }
 0x463   : > { %v3679_v48 = vrot.slane %v3661_v41, 2 }
 0x464   : > { %v3678_v23 = vrot.slane %v3660_v1, 2 }
 0x465   : > { %v3698_v56 = vmax.f32 %v3661_v41, %v3679_v48 }
 0x466   : > { %v3680_v12 = vsel %vm3674_vm5, %v3678_v23, %v3679_v48  ;;  %v3977_v48 = vld [vmem:[%s6604_s7 + $0x68] sm:$0x3f] }
 0x467   : > { %v3714_v18 = vmul.f32 %v3706_v0, %v3698_v56  ;;  %v3762_v53 = vmul.f32 %v3975_v57, %v3698_v56  ;;  %v3809_v10 = vmul.f32 %v3983_v22, %v3698_v56  ;;  %v3697_v14 = vmax.f32 %v3660_v1, %v3680_v12  ;;  %v3985_v0 = vld [vmem:[%s6604_s7 + $0xa8] sm:$0x3f]  ;;  %v3707_v22 = vld [vmem:[%s6604_s7 + $0x20] sm:$0xff] }
 0x469   : > { %v3728_v61 = vsel %vm3726_vm2, %v3714_v18, 0.0  ;;  %v3775_v3 = vsel %vm3726_vm2, %v3762_v53, 0.0  ;;  %v3822_v33 = vsel %vm3726_vm2, %v3809_v10, 0.0  ;;  %v3713_v62 = vmul.f32 %v3705_v43, %v3697_v14 }
 0x46a   : > { %v3729_v55 = vadd.f32 %v3728_v61, %v3727_v19  ;;  %v3776_v45 = vadd.f32 %v3775_v3, %v3774_v21  ;;  %v3823_v29 = vadd.f32 %v3822_v33, %v3821_v4  ;;  %v3761_v2 = vmul.f32 %v3974_v28, %v3697_v14  ;;  %v3976_v19 = vld [vmem:[%s6604_s7 + $0x60] sm:$0xff] }
 0x46b   : > { %v3720_v27 = vsel %vm1862_vm6, %v3713_v62, 0.0  ;;  %v3808_v30 = vmul.f32 %v3982_v16, %v3697_v14 }
 0x46c   : > { %v3721_v8 = vadd.f32 %v3720_v27, %v3719_v5  ;;  %v3768_v38 = vsel %vm1862_vm6, %v3761_v2, 0.0 }
 0x46d   : > { %v3769_v37 = vadd.f32 %v3768_v38, %v3767_v46  ;;  %v3815_v26 = vsel %vm1862_vm6, %v3808_v30, 0.0 }
 0x46e   : > { %v3816_v40 = vadd.f32 %v3815_v26, %v3814_v25 }
 0x4bf   : > { %v4126_v35 = vpop.f32.mrb[16].mxu1 }
 0x4c0   : > { %v3557_v17 = vpop.f32.mrb[17].mxu1  ;;  %v3612_v63 = vmul.f32 %v4126_v35, %v6299_v34 }
 0x4c1   : > { %v3611_v15 = vmul.f32 %v6299_v34, %v3557_v17 }
 0x4c2   : > { %v3635_v31 = vadd.f32 %v6305_v60, %v3612_v63 }
 0x4c3   : > { %v3634_v24 = vadd.f32 %v6305_v60, %v3611_v15 }
 0x4c4   : > { %v3651_v49 = vmax.f32 %v3635_v31, 0.0  ;;  %v3979_v31 = vld [vmem:[%s6604_s7 + $0x78] sm:$0x3f] }
 0x4c5   : > { %v3650_v36 = vmax.f32 %v3634_v24, 0.0  ;;  %v3709_v24 = vld [vmem:[%s6604_s7 + $0x30] sm:$0xff] }
 0x4df   : > { %v4129_v54 = vpop.f32.mrb[18].mxu1 }
 0x4e0   : > { %v3614_v6 = vmul.f32 %v4129_v54, %v6299_v34  ;;  %v3567_v47 = vpop.f32.mrb[19].mxu1  ;;  %v3710_v54 = vld [vmem:[%s6604_s7 + $0x38] sm:$0x3f] }
 0x4e1   : > { %v3613_v13 = vmul.f32 %v6299_v34, %v3567_v47 }
 0x4e2   : > { %v3637_v58 = vadd.f32 %v6305_v60, %v3614_v6 }
 0x4e3   : > { %v3636_v11 = vadd.f32 %v6305_v60, %v3613_v13 }
 0x4e4   : > { %v3653_v44 = vmax.f32 %v3637_v58, 0.0 }
 0x4e5   : > { %v3652_v59 = vmax.f32 %v3636_v11, 0.0 }
 0x4e6   : > { %v3663_v41 = vmax.f32 %v3651_v49, %v3653_v44  ;;  %v3978_v44 = vld [vmem:[%s6604_s7 + $0x70] sm:$0xff] }
 0x4e7   : > { %v3662_v51 = vmax.f32 %v3650_v36, %v3652_v59  ;;  %v3986_v36 = vld [vmem:[%s6604_s7 + $0xb0] sm:$0xff] }
 0x4e8   : > { %v3682_v1 = vrot.slane %v3663_v41, 2 }
 0x4e9   : > { %v3681_v32 = vrot.slane %v3662_v51, 2 }
 0x4ea   : > { %v3700_v50 = vmax.f32 %v3663_v41, %v3682_v1 }
 0x4eb   : > { %v3683_v57 = vsel %vm3674_vm5, %v3681_v32, %v3682_v1 }
 0x4ec   : > { %v3716_v23 = vmul.f32 %v3708_v7, %v3700_v50  ;;  %v3764_v9 = vmul.f32 %v3977_v48, %v3700_v50  ;;  %v3811_v52 = vmul.f32 %v3985_v0, %v3700_v50  ;;  %v3699_v56 = vmax.f32 %v3662_v51, %v3683_v57 }
 0x4ee   : > { %v3730_v12 = vsel %vm3726_vm2, %v3716_v23, 0.0  ;;  %v3777_v43 = vsel %vm3726_vm2, %v3764_v9, 0.0  ;;  %v3824_v18 = vsel %vm3726_vm2, %v3811_v52, 0.0  ;;  %v3715_v53 = vmul.f32 %v3707_v22, %v3699_v56 }
 0x4ef   : > { %v3731_v10 = vadd.f32 %v3730_v12, %v3729_v55  ;;  %v3778_v14 = vadd.f32 %v3777_v43, %v3776_v45  ;;  %v3825_v28 = vadd.f32 %v3824_v18, %v3823_v29  ;;  %v3763_v21 = vmul.f32 %v3976_v19, %v3699_v56 }
 0x4f0   : > { %v3722_v4 = vsel %vm1862_vm6, %v3715_v53, 0.0  ;;  %v3810_v39 = vmul.f32 %v3984_v42, %v3699_v56 }
 0x4f1   : > { %v3723_v20 = vadd.f32 %v3722_v4, %v3721_v8  ;;  %v3770_v16 = vsel %vm1862_vm6, %v3763_v21, 0.0 }
 0x4f2   : > { %v3771_v61 = vadd.f32 %v3770_v16, %v3769_v37  ;;  %v3817_v3 = vsel %vm1862_vm6, %v3810_v39, 0.0 }
 0x4f3   : > { %v3818_v33 = vadd.f32 %v3817_v3, %v3816_v40 }
 0x4f9   : > { %v4132_v62 = vpop.f32.mrb[20].mxu1 }
 0x4fa   : > { %v3577_v2 = vpop.f32.mrb[21].mxu1  ;;  %v3616_v5 = vmul.f32 %v4132_v62, %v6299_v34 }
 0x4fb   : > { %v3615_v27 = vmul.f32 %v6299_v34, %v3577_v2 }
 0x4fc   : > { %v3639_v45 = vadd.f32 %v6305_v60, %v3616_v5 }
 0x4fd   : > { %v3638_v46 = vadd.f32 %v6305_v60, %v3615_v27 }
 0x4fe   : > { %v3655_v37 = vmax.f32 %v3639_v45, 0.0 }
 0x4ff   : > { %v3654_v40 = vmax.f32 %v3638_v46, 0.0 }
 0x50c   : > { %v4135_v55 = vpop.f32.mrb[22].mxu1 }
 0x50d   : > { %v3618_v29 = vmul.f32 %v4135_v55, %v6299_v34  ;;  %v3587_v30 = vpop.f32.mrb[23].mxu1 }
 0x50e   : > { %v3617_v8 = vmul.f32 %v6299_v34, %v3587_v30  ;;  %v3987_v34 = vld [vmem:[%s6604_s7 + $0xb8] sm:$0x3f] }
 0x50f   : > { %v3641_v38 = vadd.f32 %v6305_v60, %v3618_v29 }
 0x510   : > { %v3640_v25 = vadd.f32 %v6305_v60, %v3617_v8 }
 0x511   : > { %v3657_v26 = vmax.f32 %v3641_v38, 0.0 }
 0x512   : > { %v3656_v35 = vmax.f32 %v3640_v25, 0.0 }
 0x513   : > { %v3665_v17 = vmax.f32 %v3655_v37, %v3657_v26  ;;  %v3746_v26 = vld [vmem:[%s6605_s8] sm:$0x1] }
 0x514   : > { %v3664_v63 = vmax.f32 %v3654_v40, %v3656_v35  ;;  %v3793_v40 = vld [vmem:[%s6605_s8] sm:$0x1] }
 0x515   : > { %v3685_v15 = vrot.slane %v3665_v17, 2 }
 0x516   : > { %v3684_v60 = vrot.slane %v3664_v63, 2 }
 0x517   : > { %v3702_v6 = vmax.f32 %v3665_v17, %v3685_v15 }
 0x518   : > { %v3686_v47 = vsel %vm3674_vm5, %v3684_v60, %v3685_v15 }
 0x519   : > { %v3718_v13 = vmul.f32 %v3710_v54, %v3702_v6  ;;  %v3766_v58 = vmul.f32 %v3979_v31, %v3702_v6  ;;  %v3813_v11 = vmul.f32 %v3987_v34, %v3702_v6  ;;  %v3701_v49 = vmax.f32 %v3664_v63, %v3686_v47  ;;  %v3840_v54 = vld [vmem:[%s6605_s8] sm:$0x1] }
 0x51b   : > { %v3732_v59 = vsel %vm3726_vm2, %v3718_v13, 0.0  ;;  %v3779_v41 = vsel %vm3726_vm2, %v3766_v58, 0.0  ;;  %v3826_v51 = vsel %vm3726_vm2, %v3813_v11, 0.0  ;;  %v3717_v1 = vmul.f32 %v3709_v24, %v3701_v49 }
 0x51c   : > { %v3765_v7 = vmul.f32 %v3978_v44, %v3701_v49  ;;  %v3812_v48 = vmul.f32 %v3986_v36, %v3701_v49  ;;  %v3780_v0 = vadd.f32 %v3779_v41, %v3778_v14  ;;  %v3733_v32 = vadd.f32 %v3732_v59, %v3731_v10 }
 0x51d   : > { %v3724_v50 = vsel %vm1862_vm6, %v3717_v1, 0.0  ;;  %v3827_v57 = vadd.f32 %v3826_v51, %v3825_v28 }
 0x51e   : > { %v3772_v22 = vsel %vm1862_vm6, %v3765_v7, 0.0  ;;  %v3819_v23 = vsel %vm1862_vm6, %v3812_v48, 0.0  ;;  %v3725_v9 = vadd.f32 %v3724_v50, %v3723_v20  ;;  %v3782_v19 = vsel %vm3726_vm2, %v3780_v0, 0.0 }
 0x51f   : > { %v3773_v52 = vadd.f32 %v3772_v22, %v3771_v61  ;;  %v3820_v56 = vadd.f32 %v3819_v23, %v3818_v33  ;;  %v3735_v12 = vsel %vm3726_vm2, %v3733_v32, 0.0  ;;  %v3829_v10 = vsel %vm3726_vm2, %v3827_v57, 0.0 }
 0x520   : > { %v3734_v42 = vsel %vm1862_vm6, %v3725_v9, 0.0 }
 0x521   : > { %v3781_v43 = vsel %vm1862_vm6, %v3773_v52, 0.0  ;;  %v3736_v18 = vadd.f32 %v3735_v12, %v3734_v42  ;;  %v3828_v53 = vsel %vm1862_vm6, %v3820_v56, 0.0 }
 0x522   : > { %v3783_v14 = vadd.f32 %v3782_v19, %v3781_v43  ;;  %v3830_v28 = vadd.f32 %v3829_v10, %v3828_v53 }
 0x523   : > { %v3737_v21 = vrot.slane %v3736_v18, 4 }
 0x524   : > { %v3784_v4 = vrot.slane %v3783_v14, 4  ;;  %v3831_v39 = vrot.slane %v3830_v28, 4 }
 0x525   : > { %v3738_v20 = vadd.f32 %v3737_v21, %v3736_v18 }
 0x526   : > { %v3785_v16 = vadd.f32 %v3784_v4, %v3783_v14  ;;  %v3832_v61 = vadd.f32 %v3831_v39, %v3830_v28 }
 0x527   : > { %v3739_v3 = vrot.slane %v3738_v20, 2 }
 0x528   : > { %v3786_v33 = vrot.slane %v3785_v16, 2  ;;  %v3833_v62 = vrot.slane %v3832_v61, 2 }
 0x529   : > { %v3740_v2 = vadd.f32 %v3739_v3, %v3738_v20 }
 0x52a   : > { %v3787_v5 = vadd.f32 %v3786_v33, %v3785_v16  ;;  %v3834_v27 = vadd.f32 %v3833_v62, %v3832_v61 }
 0x52b   : > { %v3741_v55 = vrot.slane %v3740_v2, 1 }
 0x52c   : > { %v3788_v45 = vrot.slane %v3787_v5, 1  ;;  %v3835_v29 = vrot.slane %v3834_v27, 1 }
 0x52d   : > { %v3742_v30 = vadd.f32 %v3741_v55, %v3740_v2 }
 0x52e   : > { %v3789_v46 = vadd.f32 %v3788_v45, %v3787_v5  ;;  %v3836_v38 = vadd.f32 %v3835_v29, %v3834_v27 }
 0x52f   : > { %v3743_v8 = vsel %vm1862_vm6, %v3742_v30, 0.0 }
 0x530   : > { %v3790_v25 = vsel %vm1862_vm6, %v3789_v46, 0.0  ;;  %3744 = vadd.xlane.f32.xlu0 %v3743_v8  ;;  %v3837_v37 = vsel %vm1862_vm6, %v3836_v38, 0.0  ;;  %vm3842_vm6 = vcmask 16400  }
 0x531   : > { %3791 = vadd.xlane.f32.xlu1 %v3790_v25 }
 0x534   : > { %3838 = vadd.xlane.f32.xlu0 %v3837_v37 }
 0x5bd   : > { %v3745_v35 = vpop.xlane.xlu0 %3744 }
 0x5be   : > { %v3792_v17 = vpop.xlane.xlu1 %3791  ;;  %v3747_v63 = vadd.f32 %v3746_v26, %v3745_v35 }
 0x5bf   : > { %v3794_v15 = vadd.f32 %v3793_v40, %v3792_v17 }
 0x5c0   : > { %3749 = vst.msk [vmem:[%s324_s27] sm:$0x1] %vm3748_vm7, %v3747_v63 }
 0x5c1   : > { %v3839_v31 = vpop.xlane.xlu0 %3838  ;;  %3796 = vst.msk [vmem:[%s324_s27] sm:$0x1] %vm3795_vm8, %v3794_v15 }
 0x5c2   : > { %v3841_v34 = vadd.f32 %v3840_v54, %v3839_v31 }
 0x5c4   : > { %3843 = vst.msk [vmem:[%s324_s27] sm:$0x1] %vm3842_vm6, %v3841_v34 }
 0x5c5   : > { %4222 = shalt.err (!%p4219_p3)
}
 0x5c6   : > { %s4223_s26 = scalar_lea.hbm %s6555_s28, 16  ;;  %s4227_s27 = scalar_lea.hbm %s6606_s9, 32 }
 0x5c7   : > { %p4224_p4 = scmp.ne.s32.totalorder %s6555_s28, %s4223_s26  ;;  %p4228_p9 = scmp.lt.u32.totalorder %s6555_s28, %s6606_s9 }
 0x5c8   : > { %p4229_p10 = scmp.lt.u32.totalorder %s4227_s27, %s4223_s26  ;;  %p4231_p12 = scmp.lt.u32.totalorder %s4223_s26, %s6555_s28 }
 0x5c9   : > { %p4225_p7 = pnand %p4224_p4, %p4375_p5 }
 0x5ca   : > { %p4230_p11 = por %p4229_p10, %p4228_p9 }
 0x5cb   : > { %p4226_p8 = pneg %p4225_p7 }
 0x5cc   : > { %p4232_p13 = por %p4231_p12, %p4230_p11 }
 0x5ce   : > { %p4233_p0 = pnand %p4232_p13, %p4226_p8 }
 0x5d0   : > { %4236 = shalt.err (!%p4233_p0)
}
 0x5d1   : > { %4152 = dma.vmem_to_hbm [thread:$0]  (%p4375_p5), %s6557_s29, 16, %s6555_s28, %s3845_s25  }
 0x5d2 PF: > { %p4158_p1 = scmp.ge.s32.totalorder %s4271_s12, 2  ;;  %s3869_s13 = sand.u32 1, %s4259_s30  }
 0x5d3   : > { %s3870_s21 = scalar_lea.sflag [#allocation5], %s3869_s13 }
 0x5d4   : > { %p4155_p2 = pnand %p4158_p1, %p4379_p6 }
 0x5d6   : > { %4254 = dma.done.wait (!%p4155_p2), %s3870_s21, 16  }
 0x5d7   : > { %4256 = vsyncadd (!%p4155_p2), %s3870_s21, 4294967280  ;;  %p19_p3 = scmp.ge.s32.totalorder %s4362_s15, 4   ;;  %s6612_s30 = smov %s4263_s10 }
 0x5d8   : > { %s6613_s10 = smov %s4267_s11  ;;  %s6614_s11 = smov %s4373_s18 }
 0x5d9   : > { %s6615_s12 = smov %s4362_s15  ;;  %21 = sbr.rel (!%p19_p3) target bundleno = 3 (0x3), region = 97 }
 0x5e0   :  { %3874 = vsyncpa [#allocation5], 1 }
 0x5e1   :  { %3876 = vsyncpa [#allocation5 + $0x1], 1 }

</bundles_post_ra>
